<compile_context>
chip_gen: v7x
topology: tpu7x:2x2x1
jax: 0.10.0
libtpu: 0.0.40
codegen_flags: <defaults>
</compile_context>

<pallas_src>
import functools

import numpy as np
import jax
import jax.numpy as jnp
from jax.experimental import pallas as pl
from jax.experimental.pallas import tpu as pltpu


OUT_LANES = 128  # lane-dense padding of the final (Cout == 1) prediction conv


# ---------------------------------------------------------------------------
# Skeleton-topology helpers (verbatim ports of the PyTorch reference code)
# ---------------------------------------------------------------------------
def get_channels_list(channels):
    n_channels = channels
    joint_num = n_channels // 6
    base_channel = 128
    n_layers = 4
    channels_list = [n_channels]
    for i in range(n_layers - 1):
        channels_list.append(base_channel * 2 ** ((i + 1) // 2))
    channels_list += [n_channels]
    channels_list = [((n - 1) // joint_num + 1) * joint_num for n in channels_list]
    return channels_list


def dfs(parents, x, vis, dist):
    fa = parents
    vis[x] = 1
    for y in range(len(fa)):
        if (fa[y] == x or fa[x] == y) and vis[y] == 0:
            dist[y] = dist[x] + 1
            dfs(parents, y, vis, dist)


def get_neighbor(parents, contact_ids, threshold=2.0, enforce_contact=True):
    fa = parents
    neighbor_list = []
    for x in range(0, len(fa)):
        vis = [0 for _ in range(len(fa))]
        dist = [0 for _ in range(len(fa))]
        dfs(parents, x, vis, dist)
        neighbor = []
        for j in range(0, len(fa)):
            if dist[j] <= threshold:
                neighbor.append(j)
        neighbor_list.append(neighbor)
    contact_list = []
    if True:
        for i, p_id in enumerate(contact_ids):
            v_id = len(neighbor_list)
            neighbor_list[p_id].append(v_id)
            neighbor_list.append(neighbor_list[p_id])
            contact_list.append(v_id)
    root_neighbor = neighbor_list[0]
    id_root = len(neighbor_list)
    if enforce_contact:
        root_neighbor = root_neighbor + contact_list
        for j in contact_list:
            neighbor_list[j] = list(set(neighbor_list[j]))
    root_neighbor = list(set(root_neighbor))
    for j in root_neighbor:
        neighbor_list[j].append(id_root)
    root_neighbor.append(id_root)
    neighbor_list.append(root_neighbor)
    return neighbor_list


# ---------------------------------------------------------------------------
# In-kernel reflect-padded time taps
# ---------------------------------------------------------------------------
def _reflect_taps(h, k, pad, T, use_roll):
    """Return k arrays tap_j with tap_j[:, t, :] = x_reflect_pad[:, t + j, :]."""
    if pad == 0:
        # pad == 0 only happens for kernel_size == 1 in this module
        return [h]
    if use_roll and k == 3 and pad == 1:
        # XLU sublane rotations; boundary rows fixed with the opposite roll,
        # which already holds exactly the reflected value (x[1] / x[T-2]).
        r_prev = pltpu.roll(h, shift=1, axis=1)    # r_prev[t] = h[t-1] (wrap)
        r_next = pltpu.roll(h, shift=-1, axis=1)   # r_next[t] = h[t+1] (wrap)
        t_idx = jax.lax.broadcasted_iota(jnp.int32, h.shape, 1)
        prev = jnp.where(t_idx == 0, r_next, r_prev)       # reflect: h[1] at t=0
        nxt = jnp.where(t_idx == T - 1, r_prev, r_next)    # reflect: h[T-2] at end
        return [prev, h, nxt]
    # TODO(synk): generic kernel_size path still builds the padded array via
    # sublane concatenation (slower); only kernel_size=3 uses the roll path.
    left = [h[:, i:i + 1, :] for i in range(pad, 0, -1)]
    right = [h[:, i:i + 1, :] for i in range(T - 2, T - 2 - pad, -1)]
    hp = jnp.concatenate(left + [h] + right, axis=1)
    return [hp[:, j:j + T, :] for j in range(k)]


# ---------------------------------------------------------------------------
# Fused Pallas kernel: one full SkeletonBlock stage per grid step.
# ---------------------------------------------------------------------------
def _skeleton_block_kernel(*refs, k, pad, T, N, neg_slope, acts, use_roll):
    """refs = (x_ref, w0, b0, w1, b1, ..., o_ref).

    x_ref block : (1, N, T, C0)          channels-last input for this stage
    w_i   block : (1, k, Cin_i, Cout_i)  per-tap conv weights (bf16)
    b_i   block : (1, 1, Cout_i)         bias (f32)
    o_ref block : (1, N, T, 128)         lane-dense prediction (col 0 is real)
    """
    x_ref, o_ref = refs[0], refs[-1]
    wb_refs = refs[1:-1]

    h = x_ref[0]                                              # (N, T, C0) f32
    for li, has_act in enumerate(acts):
        w = wb_refs[2 * li][0]                                # (k, Cin, Cout) bf16
        b = wb_refs[2 * li + 1][0]                            # (1, Cout)      f32
        cin = h.shape[-1]
        cout = w.shape[-1]

        taps = _reflect_taps(h, k, pad, T, use_roll)          # k x (N, T, cin)

        # tap-accumulated matmuls: bf16 x bf16 -> f32 accumulation on the MXU
        y = None
        for j in range(k):
            xt = taps[j].reshape(N * T, cin).astype(jnp.bfloat16)
            yj = jnp.dot(xt, w[j], preferred_element_type=jnp.float32)
            y = yj if y is None else y + yj                   # (N*T, Cout) f32

        y = y + b
        if has_act:
            y = jnp.where(y >= 0, y, neg_slope * y)           # LeakyReLU(0.2)
        h = y.reshape(N, T, cout)

    o_ref[0] = h                                              # (N, T, 128) dense


def skeleton_stages_fused(x_stages, w_taps, biases, acts, *, kernel_size,
                          padding, negative_slope=0.2, core_parallel=False,
                          use_roll=True):
    """Run all stages (one SkeletonBlock each) in a single pallas_call.

    x_stages : (S, N, T, C0)       channels-last f32 inputs, one per stage
    w_taps   : per-layer weights, each (S, k, Cin_l, Cout_l) bf16
    biases   : per-layer biases,  each (S, 1, Cout_l)       f32
    acts     : tuple of bools (LeakyReLU after that layer or not)
    returns  : (S, N, T, OUT_LANES) f32; channel 0 is the prediction
    """
    S, N, T, C0 = x_stages.shape
    kernel = functools.partial(
        _skeleton_block_kernel, k=kernel_size, pad=padding, T=T, N=N,
        neg_slope=negative_slope, acts=tuple(bool(a) for a in acts),
        use_roll=use_roll)

    in_specs = [pl.BlockSpec((1, N, T, C0), lambda s: (s, 0, 0, 0))]
    operands = [x_stages]
    for w, b in zip(w_taps, biases):
        in_specs.append(pl.BlockSpec((1,) + w.shape[1:], lambda s: (s, 0, 0, 0)))
        in_specs.append(pl.BlockSpec((1,) + b.shape[1:], lambda s: (s, 0, 0)))
        operands.append(w)
        operands.append(b)

    if core_parallel:
        # v7x: one independent stage per TensorCore
        semantics = (pltpu.CORE_PARALLEL,)
    else:
        # v5e/v6e: a cheap S-iteration loop on the single TensorCore
        semantics = (pltpu.PARALLEL,)

    return pl.pallas_call(
        kernel,
        out_shape=jax.ShapeDtypeStruct((S, N, T, OUT_LANES), jnp.float32),
        grid=(S,),
        in_specs=in_specs,
        out_specs=pl.BlockSpec((1, N, T, OUT_LANES), lambda s: (s, 0, 0, 0)),
        compiler_params=pltpu.CompilerParams(dimension_semantics=semantics),
    )(*operands)


# ---------------------------------------------------------------------------
# Parameter construction (deterministic; SkeletonConv == neighbor-masked conv)
# ---------------------------------------------------------------------------
def init_discriminator_params(key, parents, contacts, kernel_size, stages=2):
    neighbors = get_neighbor(parents, contacts, threshold=2, enforce_contact=True)
    num_features = (len(parents) + len(contacts) + 1) * 6
    channels = get_channels_list(num_features)
    channels[-1] = 1
    joint_num = len(neighbors)

    # joint-level adjacency mask for the skeleton convolutions
    adj = np.zeros((joint_num, joint_num), np.float32)
    for oj, nb in enumerate(neighbors):
        for ij in nb:
            adj[oj, ij] = 1.0

    params = []
    for _ in range(stages):
        layers = []
        # skeleton conv blocks (pairwise(channels[:-1])), LeakyReLU activation
        for li in range(len(channels) - 2):
            cin, cout = channels[li], channels[li + 1]
            key, kw, kb = jax.random.split(key, 3)
            w = jax.random.normal(kw, (cout, cin, kernel_size), jnp.float32) * 0.05
            mask = np.kron(adj, np.ones((cout // joint_num, cin // joint_num),
                                        np.float32))
            w = w * jnp.asarray(mask)[:, :, None]      # zero non-neighbor weights
            b = jax.random.normal(kb, (cout,), jnp.float32) * 0.01
            layers.append((w, b, True))
        # prediction conv: channels[-1] == 1  ->  plain Conv1d, no activation
        cin, cout = channels[-2], channels[-1]
        key, kw, kb = jax.random.split(key, 3)
        w = jax.random.normal(kw, (cout, cin, kernel_size), jnp.float32) * 0.05
        b = jax.random.normal(kb, (cout,), jnp.float32) * 0.01
        layers.append((w, b, False))
        params.append(layers)
    return params, num_features


def pack_discriminator_params(params):
    """One-time packing into the fused-kernel layout (hoisted off the hot path).

    Per layer: weights (S, k, Cin, Cout) bf16 (last layer Cout padded to 128),
               biases  (S, 1, Cout)      f32.
    """
    S = len(params)
    n_layers = len(params[0])
    w_taps, biases, acts = [], [], []
    for li in range(n_layers):
        ws, bs = [], []
        for s in range(S):
            w, b, _ = params[s][li]                     # w: (Cout, Cin, k)
            cout, cin, k = w.shape
            wt = jnp.transpose(w, (2, 1, 0))            # (k, Cin, Cout)
            if li == n_layers - 1:
                # lane-dense output: zero-pad prediction Cout 1 -> OUT_LANES
                wt = jnp.pad(wt, ((0, 0), (0, 0), (0, OUT_LANES - cout)))
                b = jnp.pad(b, (0, OUT_LANES - cout))
            ws.append(wt.astype(jnp.bfloat16))
            bs.append(b.reshape(1, -1).astype(jnp.float32))
        w_taps.append(jnp.stack(ws, axis=0))            # (S, k, Cin, Cout)
        biases.append(jnp.stack(bs, axis=0))            # (S, 1, Cout)
        acts.append(bool(params[0][li][2]))
    return w_taps, biases, tuple(acts)


# ---------------------------------------------------------------------------
# Forward pass (packed weights, one fused pallas_call for all stages)
# ---------------------------------------------------------------------------
def _prefer_core_parallel():
    try:
        kind = jax.devices()[0].device_kind.lower()
    except Exception:
        return False
    return "v7" in kind


def discriminator_forward(packed, fake0, fake1, kernel_size, padding):
    w_taps, biases, acts = packed
    inputs = [fake0] + ([fake1] if fake1 is not None else [])
    S = len(inputs)

    # channels-last stacked inputs: (S, N, T, C0)
    x_stages = jnp.stack([jnp.transpose(x, (0, 2, 1)) for x in inputs], axis=0)

    if S != w_taps[0].shape[0]:
        w_taps = [w[:S] for w in w_taps]
        biases = [b[:S] for b in biases]

    # configuration attempts: prefer CORE_PARALLEL on v7x and the roll-based
    # reflect pad everywhere; fall back gracefully if a path does not lower.
    attempts = []
    if _prefer_core_parallel():
        attempts.append(dict(core_parallel=True, use_roll=True))
    attempts.append(dict(core_parallel=False, use_roll=True))
    attempts.append(dict(core_parallel=False, use_roll=False))

    out = None
    last_err = None
    for cfg in attempts:
        try:
            out = skeleton_stages_fused(
                x_stages, w_taps, biases, acts,
                kernel_size=kernel_size, padding=padding, **cfg)
            out = jax.block_until_ready(out)
            break
        except Exception as e:      # lowering/compile failure -> next config
            last_err = e
            out = None
    if out is None:
        raise last_err

    pred = out[..., 0]                                   # (S, N, T)
    preds = [pred[s][:, None, :] for s in range(S)]      # each (N, 1, T)
    return {"stage0": preds[0],
            "stage1": preds[1] if fake1 is not None else None}


# ---------------------------------------------------------------------------
# Pure-JAX reference (PyTorch Conv1d semantics, bf16 inputs / f32 accumulation
# to mirror the kernel's MXU numerics) for a correctness check
# ---------------------------------------------------------------------------
def _conv1d_ref(x, w, b, padding, neg_slope):
    T = x.shape[-1]
    k = w.shape[-1]
    xp = jnp.pad(x, ((0, 0), (0, 0), (padding, padding)), mode="reflect")
    xp = xp.astype(jnp.bfloat16).astype(jnp.float32)
    wr = w.astype(jnp.bfloat16).astype(jnp.float32)
    acc = jnp.zeros((x.shape[0], w.shape[0], T), jnp.float32)
    for j in range(k):
        acc = acc + jnp.einsum("oc,nct->not", wr[:, :, j], xp[:, :, j:j + T],
                               precision=jax.lax.Precision.HIGHEST)
    acc = acc + b[None, :, None]
    if neg_slope is not None:
        acc = jnp.where(acc >= 0, acc, neg_slope * acc)
    return acc


def _discriminator_ref(params, fake0, fake1, padding):
    outs = []
    for s, layers in enumerate(params):
        h = fake0 if s == 0 else fake1
        for (w, b, has_act) in layers:
            h = _conv1d_ref(h, w, b, padding, 0.2 if has_act else None)
        outs.append(h)
    return outs


# ---------------------------------------------------------------------------
if __name__ == "__main__":
    # small skeleton: 7 joints, 2 contact joints  ->  joint_num = 10,
    # num_features = 60, channels = [60, 130, 260, 260, 1]
    parents = [0, 0, 1, 2, 0, 4, 5]
    contacts = [3, 6]
    kernel_size = 3
    padding = (kernel_size - 1) // 2

    root = jax.random.PRNGKey(0)
    k_params, k_in0, k_in1 = jax.random.split(root, 3)

    params, num_features = init_discriminator_params(
        k_params, parents, contacts, kernel_size, stages=2)
    packed = pack_discriminator_params(params)            # packed ONCE at init

    N, T = 2, 16
    fake0 = jax.random.normal(k_in0, (N, num_features, T), jnp.float32)
    fake1 = jax.random.normal(k_in1, (N, num_features, T), jnp.float32)

    out = discriminator_forward(packed, fake0, fake1, kernel_size, padding)
    jax.block_until_ready(out)

    assert out["stage0"].shape == (N, 1, T)
    assert out["stage1"].shape == (N, 1, T)
    assert out["stage0"].dtype == jnp.float32

    # numerical check against the pure-JAX reference
    ref = _discriminator_ref(params, fake0, fake1, padding)
    np.testing.assert_allclose(np.asarray(out["stage0"]), np.asarray(ref[0]),
                               rtol=2e-3, atol=2e-3)
    np.testing.assert_allclose(np.asarray(out["stage1"]), np.asarray(ref[1]),
                               rtol=2e-3, atol=2e-3)

    print("KERNEL_OK")
</pallas_src>

<mosaic_0001>
module attributes {stable_mosaic.version = 11 : i64} {
  func.func @_skeleton_block_kernel(%arg0: i32, %arg1: memref<1x2x16x60xf32, #tpu.memory_space<vmem>>, %arg2: memref<1x3x60x130xbf16, #tpu.memory_space<vmem>>, %arg3: memref<1x1x130xf32, #tpu.memory_space<vmem>>, %arg4: memref<1x3x130x260xbf16, #tpu.memory_space<vmem>>, %arg5: memref<1x1x260xf32, #tpu.memory_space<vmem>>, %arg6: memref<1x3x260x260xbf16, #tpu.memory_space<vmem>>, %arg7: memref<1x1x260xf32, #tpu.memory_space<vmem>>, %arg8: memref<1x3x260x128xbf16, #tpu.memory_space<vmem>>, %arg9: memref<1x1x128xf32, #tpu.memory_space<vmem>>, %arg10: memref<1x2x16x128xf32, #tpu.memory_space<vmem>>) attributes {dimension_semantics = [#tpu.dimension_semantics<parallel>], iteration_bounds = array<i64: 2>, scalar_prefetch = 0 : i64, scratch_operands = 0 : i64, tpu.core_type = #tpu.core_type<tc>, window_params = [{transform_indices = @transform_0, window_bounds = array<i64: 1, 2, 16, 60>}, {transform_indices = @transform_1, window_bounds = array<i64: 1, 3, 60, 130>}, {transform_indices = @transform_2, window_bounds = array<i64: 1, 1, 130>}, {transform_indices = @transform_3, window_bounds = array<i64: 1, 3, 130, 260>}, {transform_indices = @transform_4, window_bounds = array<i64: 1, 1, 260>}, {transform_indices = @transform_5, window_bounds = array<i64: 1, 3, 260, 260>}, {transform_indices = @transform_6, window_bounds = array<i64: 1, 1, 260>}, {transform_indices = @transform_7, window_bounds = array<i64: 1, 3, 260, 128>}, {transform_indices = @transform_8, window_bounds = array<i64: 1, 1, 128>}, {transform_indices = @transform_9, window_bounds = array<i64: 1, 2, 16, 128>}]} {
    %c0 = arith.constant 0 : index
    %c0_0 = arith.constant 0 : index
    %c0_1 = arith.constant 0 : index
    %c0_2 = arith.constant 0 : index
    %0 = vector.load %arg1[%c0, %c0_0, %c0_1, %c0_2] : memref<1x2x16x60xf32, #tpu.memory_space<vmem>>, vector<1x2x16x60xf32>
    %1 = vector.shape_cast %0 : vector<1x2x16x60xf32> to vector<2x16x60xf32>
    %c0_3 = arith.constant 0 : index
    %c0_4 = arith.constant 0 : index
    %c0_5 = arith.constant 0 : index
    %c0_6 = arith.constant 0 : index
    %2 = vector.load %arg2[%c0_3, %c0_4, %c0_5, %c0_6] : memref<1x3x60x130xbf16, #tpu.memory_space<vmem>>, vector<1x3x60x130xbf16>
    %3 = vector.shape_cast %2 : vector<1x3x60x130xbf16> to vector<3x60x130xbf16>
    %c0_7 = arith.constant 0 : index
    %c0_8 = arith.constant 0 : index
    %c0_9 = arith.constant 0 : index
    %4 = vector.load %arg3[%c0_7, %c0_8, %c0_9] : memref<1x1x130xf32, #tpu.memory_space<vmem>>, vector<1x1x130xf32>
    %5 = vector.shape_cast %4 : vector<1x1x130xf32> to vector<1x130xf32>
    %6 = vector.extract_strided_slice %1 {offsets = [0, 1, 0], sizes = [2, 1, 60], strides = [1, 1, 1]} : vector<2x16x60xf32> to vector<2x1x60xf32>
    %7 = vector.extract_strided_slice %1 {offsets = [0, 14, 0], sizes = [2, 1, 60], strides = [1, 1, 1]} : vector<2x16x60xf32> to vector<2x1x60xf32>
    %8 = tpu.concatenate %6, %1, %7 in 1 : vector<2x1x60xf32>, vector<2x16x60xf32>, vector<2x1x60xf32> -> vector<2x18x60xf32>
    %9 = vector.extract_strided_slice %8 {offsets = [0, 0, 0], sizes = [2, 16, 60], strides = [1, 1, 1]} : vector<2x18x60xf32> to vector<2x16x60xf32>
    %10 = vector.extract_strided_slice %8 {offsets = [0, 1, 0], sizes = [2, 16, 60], strides = [1, 1, 1]} : vector<2x18x60xf32> to vector<2x16x60xf32>
    %11 = vector.extract_strided_slice %8 {offsets = [0, 2, 0], sizes = [2, 16, 60], strides = [1, 1, 1]} : vector<2x18x60xf32> to vector<2x16x60xf32>
    %12 = vector.shape_cast %9 : vector<2x16x60xf32> to vector<32x60xf32>
    %13 = arith.truncf %12 : vector<32x60xf32> to vector<32x60xbf16>
    %14 = vector.extract_strided_slice %3 {offsets = [0, 0, 0], sizes = [1, 60, 130], strides = [1, 1, 1]} : vector<3x60x130xbf16> to vector<1x60x130xbf16>
    %15 = vector.shape_cast %14 : vector<1x60x130xbf16> to vector<60x130xbf16>
    %cst = arith.constant dense<0.000000e+00> : vector<32x130xf32>
    %16 = tpu.matmul %13, %15, %cst {dimension_numbers = #tpu.dot_dimension_numbers<[1], [0], [0], [1], [0, 0, 1, 1], [], []>} : vector<32x60xbf16>, vector<60x130xbf16>, vector<32x130xf32> -> vector<32x130xf32>
    %17 = vector.shape_cast %10 : vector<2x16x60xf32> to vector<32x60xf32>
    %18 = arith.truncf %17 : vector<32x60xf32> to vector<32x60xbf16>
    %19 = vector.extract_strided_slice %3 {offsets = [1, 0, 0], sizes = [1, 60, 130], strides = [1, 1, 1]} : vector<3x60x130xbf16> to vector<1x60x130xbf16>
    %20 = vector.shape_cast %19 : vector<1x60x130xbf16> to vector<60x130xbf16>
    %cst_10 = arith.constant dense<0.000000e+00> : vector<32x130xf32>
    %21 = tpu.matmul %18, %20, %cst_10 {dimension_numbers = #tpu.dot_dimension_numbers<[1], [0], [0], [1], [0, 0, 1, 1], [], []>} : vector<32x60xbf16>, vector<60x130xbf16>, vector<32x130xf32> -> vector<32x130xf32>
    %22 = arith.addf %16, %21 : vector<32x130xf32>
    %23 = vector.shape_cast %11 : vector<2x16x60xf32> to vector<32x60xf32>
    %24 = arith.truncf %23 : vector<32x60xf32> to vector<32x60xbf16>
    %25 = vector.extract_strided_slice %3 {offsets = [2, 0, 0], sizes = [1, 60, 130], strides = [1, 1, 1]} : vector<3x60x130xbf16> to vector<1x60x130xbf16>
    %26 = vector.shape_cast %25 : vector<1x60x130xbf16> to vector<60x130xbf16>
    %cst_11 = arith.constant dense<0.000000e+00> : vector<32x130xf32>
    %27 = tpu.matmul %24, %26, %cst_11 {dimension_numbers = #tpu.dot_dimension_numbers<[1], [0], [0], [1], [0, 0, 1, 1], [], []>} : vector<32x60xbf16>, vector<60x130xbf16>, vector<32x130xf32> -> vector<32x130xf32>
    %28 = arith.addf %22, %27 : vector<32x130xf32>
    %29 = vector.broadcast %5 : vector<1x130xf32> to vector<32x130xf32>
    %30 = arith.addf %28, %29 : vector<32x130xf32>
    %cst_12 = arith.constant 0.000000e+00 : f32
    %31 = vector.broadcast %cst_12 : f32 to vector<32x130xf32>
    %32 = arith.cmpf oge, %30, %31 : vector<32x130xf32>
    %cst_13 = arith.constant 2.000000e-01 : f32
    %33 = vector.broadcast %cst_13 : f32 to vector<32x130xf32>
    %34 = arith.mulf %33, %30 : vector<32x130xf32>
    %35 = arith.select %32, %30, %34 : vector<32x130xi1>, vector<32x130xf32>
    %36 = vector.shape_cast %35 : vector<32x130xf32> to vector<2x16x130xf32>
    %c0_14 = arith.constant 0 : index
    %c0_15 = arith.constant 0 : index
    %c0_16 = arith.constant 0 : index
    %c0_17 = arith.constant 0 : index
    %37 = vector.load %arg4[%c0_14, %c0_15, %c0_16, %c0_17] : memref<1x3x130x260xbf16, #tpu.memory_space<vmem>>, vector<1x3x130x260xbf16>
    %38 = vector.shape_cast %37 : vector<1x3x130x260xbf16> to vector<3x130x260xbf16>
    %c0_18 = arith.constant 0 : index
    %c0_19 = arith.constant 0 : index
    %c0_20 = arith.constant 0 : index
    %39 = vector.load %arg5[%c0_18, %c0_19, %c0_20] : memref<1x1x260xf32, #tpu.memory_space<vmem>>, vector<1x1x260xf32>
    %40 = vector.shape_cast %39 : vector<1x1x260xf32> to vector<1x260xf32>
    %41 = vector.extract_strided_slice %36 {offsets = [0, 1, 0], sizes = [2, 1, 130], strides = [1, 1, 1]} : vector<2x16x130xf32> to vector<2x1x130xf32>
    %42 = vector.extract_strided_slice %36 {offsets = [0, 14, 0], sizes = [2, 1, 130], strides = [1, 1, 1]} : vector<2x16x130xf32> to vector<2x1x130xf32>
    %43 = tpu.concatenate %41, %36, %42 in 1 : vector<2x1x130xf32>, vector<2x16x130xf32>, vector<2x1x130xf32> -> vector<2x18x130xf32>
    %44 = vector.extract_strided_slice %43 {offsets = [0, 0, 0], sizes = [2, 16, 130], strides = [1, 1, 1]} : vector<2x18x130xf32> to vector<2x16x130xf32>
    %45 = vector.extract_strided_slice %43 {offsets = [0, 1, 0], sizes = [2, 16, 130], strides = [1, 1, 1]} : vector<2x18x130xf32> to vector<2x16x130xf32>
    %46 = vector.extract_strided_slice %43 {offsets = [0, 2, 0], sizes = [2, 16, 130], strides = [1, 1, 1]} : vector<2x18x130xf32> to vector<2x16x130xf32>
    %47 = vector.shape_cast %44 : vector<2x16x130xf32> to vector<32x130xf32>
    %48 = arith.truncf %47 : vector<32x130xf32> to vector<32x130xbf16>
    %49 = vector.extract_strided_slice %38 {offsets = [0, 0, 0], sizes = [1, 130, 260], strides = [1, 1, 1]} : vector<3x130x260xbf16> to vector<1x130x260xbf16>
    %50 = vector.shape_cast %49 : vector<1x130x260xbf16> to vector<130x260xbf16>
    %cst_21 = arith.constant dense<0.000000e+00> : vector<32x260xf32>
    %51 = tpu.matmul %48, %50, %cst_21 {dimension_numbers = #tpu.dot_dimension_numbers<[1], [0], [0], [1], [0, 0, 1, 1], [], []>} : vector<32x130xbf16>, vector<130x260xbf16>, vector<32x260xf32> -> vector<32x260xf32>
    %52 = vector.shape_cast %45 : vector<2x16x130xf32> to vector<32x130xf32>
    %53 = arith.truncf %52 : vector<32x130xf32> to vector<32x130xbf16>
    %54 = vector.extract_strided_slice %38 {offsets = [1, 0, 0], sizes = [1, 130, 260], strides = [1, 1, 1]} : vector<3x130x260xbf16> to vector<1x130x260xbf16>
    %55 = vector.shape_cast %54 : vector<1x130x260xbf16> to vector<130x260xbf16>
    %cst_22 = arith.constant dense<0.000000e+00> : vector<32x260xf32>
    %56 = tpu.matmul %53, %55, %cst_22 {dimension_numbers = #tpu.dot_dimension_numbers<[1], [0], [0], [1], [0, 0, 1, 1], [], []>} : vector<32x130xbf16>, vector<130x260xbf16>, vector<32x260xf32> -> vector<32x260xf32>
    %57 = arith.addf %51, %56 : vector<32x260xf32>
    %58 = vector.shape_cast %46 : vector<2x16x130xf32> to vector<32x130xf32>
    %59 = arith.truncf %58 : vector<32x130xf32> to vector<32x130xbf16>
    %60 = vector.extract_strided_slice %38 {offsets = [2, 0, 0], sizes = [1, 130, 260], strides = [1, 1, 1]} : vector<3x130x260xbf16> to vector<1x130x260xbf16>
    %61 = vector.shape_cast %60 : vector<1x130x260xbf16> to vector<130x260xbf16>
    %cst_23 = arith.constant dense<0.000000e+00> : vector<32x260xf32>
    %62 = tpu.matmul %59, %61, %cst_23 {dimension_numbers = #tpu.dot_dimension_numbers<[1], [0], [0], [1], [0, 0, 1, 1], [], []>} : vector<32x130xbf16>, vector<130x260xbf16>, vector<32x260xf32> -> vector<32x260xf32>
    %63 = arith.addf %57, %62 : vector<32x260xf32>
    %64 = vector.broadcast %40 : vector<1x260xf32> to vector<32x260xf32>
    %65 = arith.addf %63, %64 : vector<32x260xf32>
    %cst_24 = arith.constant 0.000000e+00 : f32
    %66 = vector.broadcast %cst_24 : f32 to vector<32x260xf32>
    %67 = arith.cmpf oge, %65, %66 : vector<32x260xf32>
    %cst_25 = arith.constant 2.000000e-01 : f32
    %68 = vector.broadcast %cst_25 : f32 to vector<32x260xf32>
    %69 = arith.mulf %68, %65 : vector<32x260xf32>
    %70 = arith.select %67, %65, %69 : vector<32x260xi1>, vector<32x260xf32>
    %71 = vector.shape_cast %70 : vector<32x260xf32> to vector<2x16x260xf32>
    %c0_26 = arith.constant 0 : index
    %c0_27 = arith.constant 0 : index
    %c0_28 = arith.constant 0 : index
    %c0_29 = arith.constant 0 : index
    %72 = vector.load %arg6[%c0_26, %c0_27, %c0_28, %c0_29] : memref<1x3x260x260xbf16, #tpu.memory_space<vmem>>, vector<1x3x260x260xbf16>
    %73 = vector.shape_cast %72 : vector<1x3x260x260xbf16> to vector<3x260x260xbf16>
    %c0_30 = arith.constant 0 : index
    %c0_31 = arith.constant 0 : index
    %c0_32 = arith.constant 0 : index
    %74 = vector.load %arg7[%c0_30, %c0_31, %c0_32] : memref<1x1x260xf32, #tpu.memory_space<vmem>>, vector<1x1x260xf32>
    %75 = vector.shape_cast %74 : vector<1x1x260xf32> to vector<1x260xf32>
    %76 = vector.extract_strided_slice %71 {offsets = [0, 1, 0], sizes = [2, 1, 260], strides = [1, 1, 1]} : vector<2x16x260xf32> to vector<2x1x260xf32>
    %77 = vector.extract_strided_slice %71 {offsets = [0, 14, 0], sizes = [2, 1, 260], strides = [1, 1, 1]} : vector<2x16x260xf32> to vector<2x1x260xf32>
    %78 = tpu.concatenate %76, %71, %77 in 1 : vector<2x1x260xf32>, vector<2x16x260xf32>, vector<2x1x260xf32> -> vector<2x18x260xf32>
    %79 = vector.extract_strided_slice %78 {offsets = [0, 0, 0], sizes = [2, 16, 260], strides = [1, 1, 1]} : vector<2x18x260xf32> to vector<2x16x260xf32>
    %80 = vector.extract_strided_slice %78 {offsets = [0, 1, 0], sizes = [2, 16, 260], strides = [1, 1, 1]} : vector<2x18x260xf32> to vector<2x16x260xf32>
    %81 = vector.extract_strided_slice %78 {offsets = [0, 2, 0], sizes = [2, 16, 260], strides = [1, 1, 1]} : vector<2x18x260xf32> to vector<2x16x260xf32>
    %82 = vector.shape_cast %79 : vector<2x16x260xf32> to vector<32x260xf32>
    %83 = arith.truncf %82 : vector<32x260xf32> to vector<32x260xbf16>
    %84 = vector.extract_strided_slice %73 {offsets = [0, 0, 0], sizes = [1, 260, 260], strides = [1, 1, 1]} : vector<3x260x260xbf16> to vector<1x260x260xbf16>
    %85 = vector.shape_cast %84 : vector<1x260x260xbf16> to vector<260x260xbf16>
    %cst_33 = arith.constant dense<0.000000e+00> : vector<32x260xf32>
    %86 = tpu.matmul %83, %85, %cst_33 {dimension_numbers = #tpu.dot_dimension_numbers<[1], [0], [0], [1], [0, 0, 1, 1], [], []>} : vector<32x260xbf16>, vector<260x260xbf16>, vector<32x260xf32> -> vector<32x260xf32>
    %87 = vector.shape_cast %80 : vector<2x16x260xf32> to vector<32x260xf32>
    %88 = arith.truncf %87 : vector<32x260xf32> to vector<32x260xbf16>
    %89 = vector.extract_strided_slice %73 {offsets = [1, 0, 0], sizes = [1, 260, 260], strides = [1, 1, 1]} : vector<3x260x260xbf16> to vector<1x260x260xbf16>
    %90 = vector.shape_cast %89 : vector<1x260x260xbf16> to vector<260x260xbf16>
    %cst_34 = arith.constant dense<0.000000e+00> : vector<32x260xf32>
    %91 = tpu.matmul %88, %90, %cst_34 {dimension_numbers = #tpu.dot_dimension_numbers<[1], [0], [0], [1], [0, 0, 1, 1], [], []>} : vector<32x260xbf16>, vector<260x260xbf16>, vector<32x260xf32> -> vector<32x260xf32>
    %92 = arith.addf %86, %91 : vector<32x260xf32>
    %93 = vector.shape_cast %81 : vector<2x16x260xf32> to vector<32x260xf32>
    %94 = arith.truncf %93 : vector<32x260xf32> to vector<32x260xbf16>
    %95 = vector.extract_strided_slice %73 {offsets = [2, 0, 0], sizes = [1, 260, 260], strides = [1, 1, 1]} : vector<3x260x260xbf16> to vector<1x260x260xbf16>
    %96 = vector.shape_cast %95 : vector<1x260x260xbf16> to vector<260x260xbf16>
    %cst_35 = arith.constant dense<0.000000e+00> : vector<32x260xf32>
    %97 = tpu.matmul %94, %96, %cst_35 {dimension_numbers = #tpu.dot_dimension_numbers<[1], [0], [0], [1], [0, 0, 1, 1], [], []>} : vector<32x260xbf16>, vector<260x260xbf16>, vector<32x260xf32> -> vector<32x260xf32>
    %98 = arith.addf %92, %97 : vector<32x260xf32>
    %99 = vector.broadcast %75 : vector<1x260xf32> to vector<32x260xf32>
    %100 = arith.addf %98, %99 : vector<32x260xf32>
    %cst_36 = arith.constant 0.000000e+00 : f32
    %101 = vector.broadcast %cst_36 : f32 to vector<32x260xf32>
    %102 = arith.cmpf oge, %100, %101 : vector<32x260xf32>
    %cst_37 = arith.constant 2.000000e-01 : f32
    %103 = vector.broadcast %cst_37 : f32 to vector<32x260xf32>
    %104 = arith.mulf %103, %100 : vector<32x260xf32>
    %105 = arith.select %102, %100, %104 : vector<32x260xi1>, vector<32x260xf32>
    %106 = vector.shape_cast %105 : vector<32x260xf32> to vector<2x16x260xf32>
    %c0_38 = arith.constant 0 : index
    %c0_39 = arith.constant 0 : index
    %c0_40 = arith.constant 0 : index
    %c0_41 = arith.constant 0 : index
    %107 = vector.load %arg8[%c0_38, %c0_39, %c0_40, %c0_41] : memref<1x3x260x128xbf16, #tpu.memory_space<vmem>>, vector<1x3x260x128xbf16>
    %108 = vector.shape_cast %107 : vector<1x3x260x128xbf16> to vector<3x260x128xbf16>
    %c0_42 = arith.constant 0 : index
    %c0_43 = arith.constant 0 : index
    %c0_44 = arith.constant 0 : index
    %109 = vector.load %arg9[%c0_42, %c0_43, %c0_44] : memref<1x1x128xf32, #tpu.memory_space<vmem>>, vector<1x1x128xf32>
    %110 = vector.shape_cast %109 : vector<1x1x128xf32> to vector<1x128xf32>
    %111 = vector.extract_strided_slice %106 {offsets = [0, 1, 0], sizes = [2, 1, 260], strides = [1, 1, 1]} : vector<2x16x260xf32> to vector<2x1x260xf32>
    %112 = vector.extract_strided_slice %106 {offsets = [0, 14, 0], sizes = [2, 1, 260], strides = [1, 1, 1]} : vector<2x16x260xf32> to vector<2x1x260xf32>
    %113 = tpu.concatenate %111, %106, %112 in 1 : vector<2x1x260xf32>, vector<2x16x260xf32>, vector<2x1x260xf32> -> vector<2x18x260xf32>
    %114 = vector.extract_strided_slice %113 {offsets = [0, 0, 0], sizes = [2, 16, 260], strides = [1, 1, 1]} : vector<2x18x260xf32> to vector<2x16x260xf32>
    %115 = vector.extract_strided_slice %113 {offsets = [0, 1, 0], sizes = [2, 16, 260], strides = [1, 1, 1]} : vector<2x18x260xf32> to vector<2x16x260xf32>
    %116 = vector.extract_strided_slice %113 {offsets = [0, 2, 0], sizes = [2, 16, 260], strides = [1, 1, 1]} : vector<2x18x260xf32> to vector<2x16x260xf32>
    %117 = vector.shape_cast %114 : vector<2x16x260xf32> to vector<32x260xf32>
    %118 = arith.truncf %117 : vector<32x260xf32> to vector<32x260xbf16>
    %119 = vector.extract_strided_slice %108 {offsets = [0, 0, 0], sizes = [1, 260, 128], strides = [1, 1, 1]} : vector<3x260x128xbf16> to vector<1x260x128xbf16>
    %120 = vector.shape_cast %119 : vector<1x260x128xbf16> to vector<260x128xbf16>
    %cst_45 = arith.constant dense<0.000000e+00> : vector<32x128xf32>
    %121 = tpu.matmul %118, %120, %cst_45 {dimension_numbers = #tpu.dot_dimension_numbers<[1], [0], [0], [1], [0, 0, 1, 1], [], []>} : vector<32x260xbf16>, vector<260x128xbf16>, vector<32x128xf32> -> vector<32x128xf32>
    %122 = vector.shape_cast %115 : vector<2x16x260xf32> to vector<32x260xf32>
    %123 = arith.truncf %122 : vector<32x260xf32> to vector<32x260xbf16>
    %124 = vector.extract_strided_slice %108 {offsets = [1, 0, 0], sizes = [1, 260, 128], strides = [1, 1, 1]} : vector<3x260x128xbf16> to vector<1x260x128xbf16>
    %125 = vector.shape_cast %124 : vector<1x260x128xbf16> to vector<260x128xbf16>
    %cst_46 = arith.constant dense<0.000000e+00> : vector<32x128xf32>
    %126 = tpu.matmul %123, %125, %cst_46 {dimension_numbers = #tpu.dot_dimension_numbers<[1], [0], [0], [1], [0, 0, 1, 1], [], []>} : vector<32x260xbf16>, vector<260x128xbf16>, vector<32x128xf32> -> vector<32x128xf32>
    %127 = arith.addf %121, %126 : vector<32x128xf32>
    %128 = vector.shape_cast %116 : vector<2x16x260xf32> to vector<32x260xf32>
    %129 = arith.truncf %128 : vector<32x260xf32> to vector<32x260xbf16>
    %130 = vector.extract_strided_slice %108 {offsets = [2, 0, 0], sizes = [1, 260, 128], strides = [1, 1, 1]} : vector<3x260x128xbf16> to vector<1x260x128xbf16>
    %131 = vector.shape_cast %130 : vector<1x260x128xbf16> to vector<260x128xbf16>
    %cst_47 = arith.constant dense<0.000000e+00> : vector<32x128xf32>
    %132 = tpu.matmul %129, %131, %cst_47 {dimension_numbers = #tpu.dot_dimension_numbers<[1], [0], [0], [1], [0, 0, 1, 1], [], []>} : vector<32x260xbf16>, vector<260x128xbf16>, vector<32x128xf32> -> vector<32x128xf32>
    %133 = arith.addf %127, %132 : vector<32x128xf32>
    %134 = vector.broadcast %110 : vector<1x128xf32> to vector<32x128xf32>
    %135 = arith.addf %133, %134 : vector<32x128xf32>
    %136 = vector.shape_cast %135 : vector<32x128xf32> to vector<2x16x128xf32>
    %c0_48 = arith.constant 0 : index
    %c0_49 = arith.constant 0 : index
    %c0_50 = arith.constant 0 : index
    %c0_51 = arith.constant 0 : index
    %137 = vector.load %arg10[%c0_48, %c0_49, %c0_50, %c0_51] : memref<1x2x16x128xf32, #tpu.memory_space<vmem>>, vector<1x2x16x128xf32>
    %138 = vector.shape_cast %137 : vector<1x2x16x128xf32> to vector<2x16x128xf32>
    %139 = vector.shape_cast %136 : vector<2x16x128xf32> to vector<1x2x16x128xf32>
    tpu.vector_store %arg10[%c0_48, %c0_49, %c0_50, %c0_51], %139 {strides = array<i32>} : memref<1x2x16x128xf32, #tpu.memory_space<vmem>>, vector<1x2x16x128xf32>,
    return
  }
  func.func @transform_0(%arg0: i32) -> (i32, i32, i32, i32) {
    %c0_i32 = arith.constant 0 : i32
    %c0_i32_0 = arith.constant 0 : i32
    %c0_i32_1 = arith.constant 0 : i32
    %c0_i32_2 = arith.constant 0 : i32
    return %arg0, %c0_i32, %c0_i32_0, %c0_i32_1 : i32, i32, i32, i32
  }
  func.func @transform_1(%arg0: i32) -> (i32, i32, i32, i32) {
    %c0_i32 = arith.constant 0 : i32
    %c0_i32_0 = arith.constant 0 : i32
    %c0_i32_1 = arith.constant 0 : i32
    %c0_i32_2 = arith.constant 0 : i32
    return %arg0, %c0_i32, %c0_i32_0, %c0_i32_1 : i32, i32, i32, i32
  }
  func.func @transform_2(%arg0: i32) -> (i32, i32, i32) {
    %c0_i32 = arith.constant 0 : i32
    %c0_i32_0 = arith.constant 0 : i32
    %c0_i32_1 = arith.constant 0 : i32
    return %arg0, %c0_i32, %c0_i32_0 : i32, i32, i32
  }
  func.func @transform_3(%arg0: i32) -> (i32, i32, i32, i32) {
    %c0_i32 = arith.constant 0 : i32
    %c0_i32_0 = arith.constant 0 : i32
    %c0_i32_1 = arith.constant 0 : i32
    %c0_i32_2 = arith.constant 0 : i32
    return %arg0, %c0_i32, %c0_i32_0, %c0_i32_1 : i32, i32, i32, i32
  }
  func.func @transform_4(%arg0: i32) -> (i32, i32, i32) {
    %c0_i32 = arith.constant 0 : i32
    %c0_i32_0 = arith.constant 0 : i32
    %c0_i32_1 = arith.constant 0 : i32
    return %arg0, %c0_i32, %c0_i32_0 : i32, i32, i32
  }
  func.func @transform_5(%arg0: i32) -> (i32, i32, i32, i32) {
    %c0_i32 = arith.constant 0 : i32
    %c0_i32_0 = arith.constant 0 : i32
    %c0_i32_1 = arith.constant 0 : i32
    %c0_i32_2 = arith.constant 0 : i32
    return %arg0, %c0_i32, %c0_i32_0, %c0_i32_1 : i32, i32, i32, i32
  }
  func.func @transform_6(%arg0: i32) -> (i32, i32, i32) {
    %c0_i32 = arith.constant 0 : i32
    %c0_i32_0 = arith.constant 0 : i32
    %c0_i32_1 = arith.constant 0 : i32
    return %arg0, %c0_i32, %c0_i32_0 : i32, i32, i32
  }
  func.func @transform_7(%arg0: i32) -> (i32, i32, i32, i32) {
    %c0_i32 = arith.constant 0 : i32
    %c0_i32_0 = arith.constant 0 : i32
    %c0_i32_1 = arith.constant 0 : i32
    %c0_i32_2 = arith.constant 0 : i32
    return %arg0, %c0_i32, %c0_i32_0, %c0_i32_1 : i32, i32, i32, i32
  }
  func.func @transform_8(%arg0: i32) -> (i32, i32, i32) {
    %c0_i32 = arith.constant 0 : i32
    %c0_i32_0 = arith.constant 0 : i32
    %c0_i32_1 = arith.constant 0 : i32
    return %arg0, %c0_i32, %c0_i32_0 : i32, i32, i32
  }
  func.func @transform_9(%arg0: i32) -> (i32, i32, i32, i32) {
    %c0_i32 = arith.constant 0 : i32
    %c0_i32_0 = arith.constant 0 : i32
    %c0_i32_1 = arith.constant 0 : i32
    %c0_i32_2 = arith.constant 0 : i32
    return %arg0, %c0_i32, %c0_i32_0, %c0_i32_1 : i32, i32, i32, i32
  }
}

</mosaic_0001>

<bundles_post_ra>
// kernel: tpu_custom_call.1
= control target key start
LH: loop header
LB: loop body
LE: loop exit
PB: predicated region body
PF: predicated region fallthrough
CT: control target
= control target key end

     0   :  { %14 = vsyncpa [#allocation3], 0  ;;  %s7355_s0 = inlined_call_operand.vmem [shape: f32[2,2,16,60], index: 0, kind: input, shape index: {}]   ;;  %s7356_s1 = inlined_call_operand.vmem [shape: bf16[2,3,60,130], index: 1, kind: input, shape index: {}]   ;;  %s7357_s2 = inlined_call_operand.vmem [shape: f32[2,1,130], index: 2, kind: input, shape index: {}]   ;;  %s7358_s3 = inlined_call_operand.vmem [shape: bf16[2,3,130,260], index: 3, kind: input, shape index: {}]   ;;  %s7359_s4 = inlined_call_operand.vmem [shape: f32[2,1,260], index: 4, kind: input, shape index: {}]   ;;  %s7360_s5 = inlined_call_operand.vmem [shape: bf16[2,3,260,260], index: 5, kind: input, shape index: {}]   ;;  %s7361_s6 = inlined_call_operand.vmem [shape: f32[2,1,260], index: 6, kind: input, shape index: {}]   ;;  %s7362_s7 = inlined_call_operand.vmem [shape: bf16[2,3,260,128], index: 7, kind: input, shape index: {}]   ;;  %s7363_s8 = inlined_call_operand.vmem [shape: f32[2,1,128], index: 8, kind: input, shape index: {}]   ;;  %s7364_s9 = inlined_call_operand.hbm [shape: f32[2,2,16,128], index: 9, kind: output, shape index: {}]  }
   0x1   :  { %16 = vsyncpa [#allocation3 + $0x1], 0  ;;  %s6306_s30 = smov 0   ;;  %s6308_s10 = smov 0  }
   0x2   :  { %s6310_s11 = smov 0   ;;  %s6312_s12 = smov 0  }
   0x3 LB: > { %s6327_s13 = sadd.s32 4294967295, %s6250_s12   ;;  %s5034_s14 = sadd.s32 4294967294, %s6250_s12   ;;  %s6250_s12 = sphi %s6312_s12, %s7370_s12   ;;  %s6246_s11 = sphi %s6310_s11, %s7369_s11   ;;  %s6242_s10 = sphi %s6308_s10, %s7368_s10   ;;  %s6238_s30 = sphi %s6306_s30, %s7367_s30  }
   0x4   : > { %s6331_s15 = sadd.s32 1, %s6250_s12   ;;  %s263_s16 = sadd.s32 1, %s6246_s11 }
   0x5   : > { %s260_s17 = ssub.s32 %s6250_s12, %s6331_s15  ;;  %p273_p0 = scmp.ne.s32.totalorder %s6246_s11, %s6242_s10 }
   0x6   : > { %p261_p1 = scmp.eq.s32.totalorder %s260_s17, 0  ;;  %p274_p2 = scmp.eq.s32.totalorder %s6327_s13, 1 }
   0x7   : > { %p279_p3 = scmp.ne.s32.totalorder %s6242_s10, %s6238_s30  ;;  %p280_p4 = scmp.eq.s32.totalorder %s5034_s14, 1 }
   0x8   : > { %s6342_s18 = scalar_select %p261_p1, %s6246_s11, %s263_s16  }
   0x9   : > { %p6344_p5 = por %p274_p2, %p273_p0  ;;  %p6348_p6 = por %p280_p4, %p279_p3 }
   0xa   : > { %p5037_p7 = scmp.ge.s32.totalorder %s6250_s12, 1  ;;  %p365_p8 = scmp.lt.s32.totalorder %s6250_s12, 3 }
   0xc   : > { %p366_p9 = pnand %p5037_p7, %p365_p8 }
   0xd   : > { %p436_p10 = scmp.lt.s32.totalorder (!%p366_p9), %s6327_s13, 1  ;;  %v6252_v0 = vmov (!%p366_p9), 0   ;;  %vm514_vm0 = vcmask (!%p366_p9), 1040384   ;;  %vm541_vm1 = vcmask (!%p366_p9), 1046528   ;;  %vm603_vm2 = vcmask (!%p366_p9), 1045504   ;;  %s6253_s17 = smov (!%p366_p9), [#allocation2]  }
   0xe   : > { %369 = sbr.rel (%p366_p9) target bundleno = 1374 (0x55e), region = 56  ;;  %642 = vmatprep.mubr.bf16.mxu0 (!%p366_p9), %v6252_v0  ;;  %vm596_vm3 = vcmask (!%p366_p9), 490496   ;;  %vm1275_vm8 = vcmask (!%p366_p9), 15360   ;;  %vm2627_vm13 = vcmask (!%p366_p9), 1041408  }
  0x15   : > { %s6357_s21 = scalar_select %p436_p10, %s6327_s13, 1 }
  0x17   : > { %s5748_s22 = smul.u32 192, %s6357_s21  ;;  %s5406_s23 = sshll.u32 %s6357_s21, 5 }
  0x18   : > { %s6364_s26 = scalar_lea.vmem %s7355_s0, %s5406_s23  ;;  %s5749_s14 = smul.u32 612, %s6357_s21 }
  0x19   : > { %s6369_s29 = scalar_lea.vmem %s7356_s1, %s5748_s22  ;;  %v477_v1 = vld [vmem:[%s6364_s26] sm:$0xff]  ;;  %v478_v2 = vld [vmem:[%s6364_s26 + $0x8] sm:$0xff]  ;;  %v479_v15 = vld [vmem:[%s6364_s26 + $0x10] sm:$0xff]  ;;  %s5751_s23 = smul.u32 1188, %s6357_s21 }
  0x1a   : > { %v5795_v3 = vld [vmem:[%s6369_s29 + $0x44] ss:$8 sps:$4 sm:$0xff]   ;;  %v508_v4 = vrot.slane %v477_v1, 1  ;;  %v5797_v5 = vld [vmem:[%s6369_s29 + $0x40] ss:$8 sps:$4 sm:$0xff]   ;;  %v515_v6 = vrot.slane %v477_v1, 7  ;;  %s6417_s22 = scalar_lea.vmem %s7358_s3, %s5749_s14 }
  0x1b   : > { %v516_v7 = vrot.slane %v478_v2, 7  ;;  %610 = vmatprep.subr.bf16.mxu0 %v5795_v3  ;;  %v5798_v8 = vld [vmem:[%s6369_s29 + $0x54] ss:$8 sps:$4 sm:$0xff]   ;;  %v527_v9 = vrot.slane %v478_v2, 5  ;;  %v5800_v10 = vld [vmem:[%s6369_s29 + $0x50] ss:$8 sps:$4 sm:$0xff]  }
  0x1c   : > { %611 = vmatpush1.bf16.msra.mxu0 %v5797_v5  ;;  %v5801_v11 = vld [vmem:[%s6369_s29 + $0x64] ss:$8 sps:$4 sm:$0xff]   ;;  %v6382_v13 = vsel %vm514_vm0, %v508_v4, %v515_v6  ;;  %v5804_v16 = vld [vmem:[%s6369_s29 + $0x74] ss:$8 sps:$4 sm:$0x3f]   ;;  %v509_v23 = vrot.slane %v479_v15, 1 }
  0x1d   : > { %612 = vmatprep.subr.bf16.mxu0 %v5798_v8  ;;  %v6379_v12 = vsel %vm514_vm0, %v515_v6, %v516_v7  ;;  %v6385_v14 = vsel %vm514_vm0, %v516_v7, %v527_v9  ;;  %v5803_v17 = vld [vmem:[%s6369_s29 + $0x60] ss:$8 sps:$4 sm:$0xff]   ;;  %v542_v18 = vrot.slane %v6382_v13, 1  ;;  %v5806_v21 = vld [vmem:[%s6369_s29 + $0x70] ss:$8 sps:$4 sm:$0x3f]  }
  0x1e   : > { %v543_v19 = vrot.slane %v6379_v12, 1  ;;  %v545_v20 = vrot.slane %v6385_v14, 1  ;;  %v480_v22 = vld [vmem:[%s6364_s26 + $0x18] sm:$0xff]  ;;  %v518_v24 = vrot.slane %v479_v15, 7  ;;  %v605_v29 = vsel %vm603_vm2, %v5806_v21, 0  ;;  %s6482_s26 = scalar_lea.vmem %s7360_s5, %s5751_s23  ;;  %s5752_s27 = smul.u32 396, %s6357_s21 }
  0x1f   : > { %v519_v25 = vrot.slane %v480_v22, 7  ;;  %v528_v26 = vrot.slane %v480_v22, 5  ;;  %v5809_v30 = vld [vmem:[%s6369_s29 + $0x4] ss:$8 sps:$4 sm:$0xff]   ;;  %v5807_v35 = vld [vmem:[%s6369_s29] ss:$8 sps:$4 sm:$0xff]   ;;  %v535_v59 = vpack.c.bf16 %v6379_v12, %v6382_v13 }
  0x20   : > { %613 = vmatpush1.bf16.msra.mxu0 %v5800_v10  ;;  %v544_v27 = vsel %vm541_vm1, %v542_v18, %v543_v19  ;;  %v546_v28 = vsel %vm541_vm1, %v543_v19, %v545_v20  ;;  %v6405_v32 = vsel %vm514_vm0, %v509_v23, %v518_v24  ;;  %v5812_v39 = vld [vmem:[%s6369_s29 + $0x14] ss:$8 sps:$4 sm:$0xff]   ;;  %v5810_v40 = vld [vmem:[%s6369_s29 + $0x10] ss:$8 sps:$4 sm:$0xff]   ;;  %v5815_v45 = vld [vmem:[%s6369_s29 + $0x24] ss:$8 sps:$4 sm:$0xff]   ;;  %s6497_s14 = scalar_lea.vmem %s7362_s7, %s5752_s27 }
  0x21   : > { %614 = vmatprep.subr.bf16.mxu0 %v5801_v11  ;;  %v6402_v31 = vsel %vm514_vm0, %v518_v24, %v519_v25  ;;  %v6408_v33 = vsel %vm514_vm0, %v519_v25, %v528_v26  ;;  %v556_v34 = vpack.c.bf16 %v546_v28, %v544_v27  ;;  %v547_v36 = vrot.slane %v6405_v32, 1  ;;  %v5832_v43 = vld [vmem:[%s6417_s22 + $0xd0] ss:$12 sps:$4 sm:$0xff]   ;;  %v5834_v44 = vld [vmem:[%s6417_s22 + $0xcc] ss:$12 sps:$4 sm:$0xff]   ;;  %s5042_s16 = sshll.u32 %s6357_s21, 1 }
  0x22   : > { %v548_v37 = vrot.slane %v6402_v31, 1  ;;  %v550_v38 = vrot.slane %v6408_v33, 1  ;;  %v5813_v46 = vld [vmem:[%s6369_s29 + $0x20] ss:$8 sps:$4 sm:$0xff]   ;;  %1291 = vmatprep.subr.bf16.mxu1 %v5832_v43  ;;  %v5838_v50 = vld [vmem:[%s6417_s22 + $0xe4] ss:$12 sps:$4 sm:$0xff]   ;;  %v536_v8 = vpack.c.bf16 %v6402_v31, %v6405_v32  ;;  %s449_s24 = scalar_lea.vmem %s7357_s2, %s5042_s16 }
  0x23   : > { %v5836_v47 = vld [vmem:[%s6417_s22 + $0xe8] ss:$12 sps:$4 sm:$0xff]   ;;  %1292 = vmatpush1.bf16.msra.mxu1 %v5834_v44  ;;  %v5818_v51 = vld [vmem:[%s6369_s29 + $0x30] ss:$8 sps:$4 sm:$0x3f]   ;;  %v766_v63 = vrot.slane %v6382_v13, 2 }
  0x24   : > { %615 = vmatpush1.bf16.msra.mxu0 %v5803_v17  ;;  %v549_v41 = vsel %vm541_vm1, %v547_v36, %v548_v37  ;;  %v551_v42 = vsel %vm541_vm1, %v548_v37, %v550_v38  ;;  %v5816_v49 = vld [vmem:[%s6369_s29 + $0x34] ss:$8 sps:$4 sm:$0x3f]   ;;  %1293 = vmatprep.subr.bf16.mxu1 %v5836_v47  ;;  %v5840_v52 = vld [vmem:[%s6417_s22 + $0x100] ss:$12 sps:$4 sm:$0xff]   ;;  %v708_v56 = vsel %vm603_vm2, %v5818_v51, 0 }
  0x25   : > { %5054 = vmatprep.subr.msk.bf16.mxu0 %vm603_vm2, %v5804_v16  ;;  %v557_v48 = vpack.c.bf16 %v551_v42, %v549_v41  ;;  %v5821_v53 = vld [vmem:[%s6369_s29 + $0x84] ss:$8 sps:$4 sm:$0xff]   ;;  %v5842_v54 = vld [vmem:[%s6417_s22 + $0xfc] ss:$12 sps:$4 sm:$0xff]   ;;  %v5846_v61 = vld [vmem:[%s6417_s22 + $0x114] ss:$12 sps:$4 sm:$0xff]  }
  0x26   : > { %v5844_v55 = vld [vmem:[%s6417_s22 + $0x118] ss:$12 sps:$4 sm:$0xff]   ;;  %v5819_v58 = vld [vmem:[%s6369_s29 + $0x80] ss:$8 sps:$4 sm:$0xff]   ;;  %v5824_v60 = vld [vmem:[%s6369_s29 + $0x94] ss:$8 sps:$4 sm:$0xff]  }
  0x27   : > { %1294 = vmatpush1.bf16.msra.mxu1 %v5838_v50  ;;  %v5830_v57 = vld [vmem:[%s6369_s29 + $0xb0] ss:$8 sps:$4 sm:$0x3f]   ;;  %v767_v1 = vrot.slane %v6379_v12, 2  ;;  %v769_v3 = vrot.slane %v6385_v14, 2  ;;  %v771_v14 = vrot.slane %v6405_v32, 2 }
  0x28   : > { %617 = vmatpush1.bf16.msra.mxu0 %v605_v29  ;;  %1295 = vmatprep.subr.bf16.mxu1 %v5840_v52  ;;  %v5848_v62 = vld [vmem:[%s6417_s22 + $0x130] ss:$12 sps:$4 sm:$0xff]   ;;  %v5850_v2 = vld [vmem:[%s6417_s22 + $0x12c] ss:$12 sps:$4 sm:$0xff]   ;;  %v827_v5 = vsel %vm603_vm2, %v5830_v57, 0  ;;  %v772_v15 = vrot.slane %v6402_v31, 2 }
  0x29   : > { %713 = vmatprep.subr.bf16.mxu0 %v5809_v30  ;;  %v5822_v4 = vld [vmem:[%s6369_s29 + $0x90] ss:$8 sps:$4 sm:$0xff]   ;;  %v5827_v6 = vld [vmem:[%s6369_s29 + $0xa4] ss:$8 sps:$4 sm:$0xff]   ;;  %v5825_v7 = vld [vmem:[%s6369_s29 + $0xa0] ss:$8 sps:$4 sm:$0xff]   ;;  %v768_v10 = vsel %vm603_vm2, %v766_v63, %v767_v1  ;;  %v770_v11 = vsel %vm603_vm2, %v767_v1, %v769_v3 }
  0x2a   : > { %v5828_v9 = vld [vmem:[%s6369_s29 + $0xb4] ss:$8 sps:$4 sm:$0x3f]   ;;  %v780_v13 = vpack.c.bf16 %v770_v11, %v768_v10  ;;  %v774_v16 = vrot.slane %v6408_v33, 2  ;;  %v5835_v17 = vld [vmem:[%s6417_s22 + $0x20] ss:$12 sps:$4 sm:$0xff]   ;;  %v773_v18 = vsel %vm603_vm2, %v771_v14, %v772_v15 }
  0x2b   : > { %5055 = vmatmul.mubr.msk.bf16.vlgmr.msra.gmra.mrb[0].mxu0 %vm596_vm3, %v556_v34  ;;  %1296 = vmatpush1.bf16.msra.mxu1 %v5842_v54  ;;  %v5831_v12 = vld [vmem:[%s6417_s22 + $0x8] ss:$12 sps:$4 sm:$0xff]   ;;  %v5839_v20 = vld [vmem:[%s6417_s22 + $0x38] ss:$12 sps:$4 sm:$0xff]   ;;  %v5843_v22 = vld [vmem:[%s6417_s22 + $0x50] ss:$12 sps:$4 sm:$0xff]  }
  0x2c   : > { %714 = vmatpush1.bf16.msra.mxu0 %v5807_v35  ;;  %652 = vmatprep.mubr.bf16.mxu0 %v6252_v0  ;;  %v775_v19 = vsel %vm603_vm2, %v772_v15, %v774_v16  ;;  %v5847_v23 = vld [vmem:[%s6417_s22 + $0x68] ss:$12 sps:$4 sm:$0xff]   ;;  %v5851_v24 = vld [vmem:[%s6417_s22 + $0x80] ss:$12 sps:$4 sm:$0xff]   ;;  %v5854_v26 = vld [vmem:[%s6417_s22 + $0x144] ss:$12 sps:$4 sm:$0xff]  }
  0x2d   : > { %715 = vmatprep.subr.bf16.mxu0 %v5812_v39  ;;  %1297 = vmatprep.subr.bf16.mxu1 %v5844_v55  ;;  %v781_v21 = vpack.c.bf16 %v775_v19, %v773_v18  ;;  %v5852_v25 = vld [vmem:[%s6417_s22 + $0x148] ss:$12 sps:$4 sm:$0xff]   ;;  %v5855_v27 = vld [vmem:[%s6417_s22 + $0x98] ss:$12 sps:$4 sm:$0xff]   ;;  %v5856_v28 = vld [vmem:[%s6417_s22 + $0x160] ss:$12 sps:$4 sm:$0xff]   ;;  %v894_v39 = vlaneseq }
  0x2e   : > { %v5858_v29 = vld [vmem:[%s6417_s22 + $0x15c] ss:$12 sps:$4 sm:$0xff]   ;;  %v5860_v31 = vld [vmem:[%s6417_s22 + $0x178] ss:$12 sps:$4 sm:$0xff]   ;;  %v5862_v32 = vld [vmem:[%s6417_s22 + $0x174] ss:$12 sps:$4 sm:$0xff]  }
  0x2f   : > { %1298 = vmatpush1.bf16.msra.mxu1 %v5846_v61  ;;  %v5859_v30 = vld [vmem:[%s6417_s22 + $0xb0] ss:$12 sps:$4 sm:$0xff]   ;;  %v5863_v33 = vld [vmem:[%s6417_s22 + $0xc8] ss:$0 sps:$4 sm:$0x11]   ;;  %s6192_s23 = sshll.u32 %s6253_s17, 4  ;;  %s6193_s23 = int_to_ptr.vmem [resolvable:$false] %s6192_s23 }
  0x30   : > { %716 = vmatpush1.bf16.msra.mxu0 %v5810_v40  ;;  %1299 = vmatprep.subr.bf16.mxu1 %v5848_v62  ;;  %v1542_v34 = vsel %vm514_vm0, %v5863_v33, 0  ;;  %v1002_v35 = vld [vmem:[%s6417_s22 + $0x18c] sm:$0x11]  ;;  %v6517_v40 = vshrl.u32 %v894_v39, 7  ;;  %v505_v42 = vld [vmem:[%s449_s24] sm:$0x3]  ;;  %s475_s24 = scalar_lea.vmem %s7363_s8, %s6357_s21 }
  0x31   : > { %717 = vmatprep.subr.bf16.mxu0 %v5815_v45  ;;  %v5104_v36 = vcombine.high %v1002_v35, %v1002_v35  ;;  %v5103_v37 = vcombine.low %v1002_v35, %v1002_v35 }
  0x32   : > { %v6523_v41 = vsub.s32 0, %v6517_v40  ;;  %v6526_v43 = vsub.s32 1, %v6517_v40 }
  0x33   : > { %5056 = vmatmul.mubr.msk.bf16.gmra.mrb[4].mxu0 %vm596_vm3, %v557_v48  ;;  %1300 = vmatpush1.bf16.msra.mxu1 %v5850_v2  ;;  %v1283_v38 = vsel %vm514_vm0, %v5103_v37, 0 }
  0x34   : > { %718 = vmatpush1.bf16.msra.mxu0 %v5813_v46  ;;  %745 = vmatprep.mubr.bf16.mxu0 %v6252_v0  ;;  %v897_v44 = vrot.slane %v505_v42, %v6523_v41  ;;  %v901_v45 = vrot.slane %v505_v42, %v6526_v43 }
  0x35   : > { %5065 = vmatprep.subr.msk.bf16.mxu0 %vm603_vm2, %v5816_v49  ;;  %1301 = vmatprep.subr.bf16.mxu1 %v5852_v25 }
  0x37   : > { %1302 = vmatpush1.bf16.msra.mxu1 %v5854_v26 }
  0x38   : > { %720 = vmatpush1.bf16.msra.mxu0 %v708_v56  ;;  %1303 = vmatprep.subr.bf16.mxu1 %v5856_v28 }
  0x39   : > { %832 = vmatprep.subr.bf16.mxu0 %v5821_v53 }
  0x3b   : > { %5066 = vmatmul.mubr.msk.bf16.vlgmr.msra.gmra.mrb[0].mxu0 %vm596_vm3, %v535_v59  ;;  %1304 = vmatpush1.bf16.msra.mxu1 %v5858_v29 }
  0x3c   : > { %833 = vmatpush1.bf16.msra.mxu0 %v5819_v58  ;;  %755 = vmatprep.mubr.bf16.mxu0 %v6252_v0 }
  0x3d   : > { %834 = vmatprep.subr.bf16.mxu0 %v5824_v60  ;;  %1305 = vmatprep.subr.bf16.mxu1 %v5860_v31 }
  0x3f   : > { %1306 = vmatpush1.bf16.msra.mxu1 %v5862_v32 }
  0x40   : > { %835 = vmatpush1.bf16.msra.mxu0 %v5822_v4  ;;  %5106 = vmatprep.subr.msk.bf16.mxu1 %vm514_vm0, %v5104_v36  ;;  %v5866_v36 = vld [vmem:[%s6417_s22 + $0x1a0] ss:$12 sps:$4 sm:$0xff]  }
  0x41   : > { %836 = vmatprep.subr.bf16.mxu0 %v5827_v6 }
  0x43   : > { %5067 = vmatmul.mubr.msk.bf16.gmra.mrb[4].mxu0 %vm596_vm3, %v536_v8  ;;  %1308 = vmatpush1.bf16.msra.mxu1 %v1283_v38 }
  0x44   : > { %837 = vmatpush1.bf16.msra.mxu0 %v5825_v7  ;;  %864 = vmatprep.mubr.bf16.mxu0 %v6252_v0 }
  0x45   : > { %5076 = vmatprep.subr.msk.bf16.mxu0 %vm603_vm2, %v5828_v9  ;;  %1344 = vmatprep.subr.bf16.mxu1 %v6252_v0 }
  0x48   : > { %839 = vmatpush1.bf16.msra.mxu0 %v827_v5 }
  0x49   : > { %1597 = vmatprep.subr.bf16.mxu0 %v6252_v0 }
  0x4b   : > { %5077 = vmatmul.mubr.msk.bf16.vlgmr.msra.gmra.mrb[0].mxu0 %vm596_vm3, %v780_v13 }
  0x4c   : > { %874 = vmatprep.mubr.bf16.mxu0 %v6252_v0  ;;  %1598 = vmatpush1.bf16.msra.mxu0 %v5831_v12 }
  0x4d   : > { %1599 = vmatprep.subr.bf16.mxu0 %v6252_v0 }
  0x50   : > { %1600 = vmatpush1.bf16.msra.mxu0 %v5835_v17 }
  0x51   : > { %1601 = vmatprep.subr.bf16.mxu0 %v6252_v0 }
  0x53   : > { %5078 = vmatmul.mubr.msk.bf16.gmra.mrb[4].mxu0 %vm596_vm3, %v781_v21 }
  0x54   : > { %1602 = vmatpush1.bf16.msra.mxu0 %v5839_v20 }
  0x55   : > { %1603 = vmatprep.subr.bf16.mxu0 %v6252_v0 }
  0x58   : > { %1604 = vmatpush1.bf16.msra.mxu0 %v5843_v22 }
  0x59   : > { %1605 = vmatprep.subr.bf16.mxu0 %v6252_v0 }
  0x5c   : > { %1606 = vmatpush1.bf16.msra.mxu0 %v5847_v23 }
  0x5d   : > { %1607 = vmatprep.subr.bf16.mxu0 %v6252_v0 }
  0x60   : > { %1608 = vmatpush1.bf16.msra.mxu0 %v5851_v24 }
  0x61   : > { %1609 = vmatprep.subr.bf16.mxu0 %v6252_v0 }
  0x64   : > { %1610 = vmatpush1.bf16.msra.mxu0 %v5855_v27 }
  0x65   : > { %1611 = vmatprep.subr.bf16.mxu0 %v6252_v0 }
  0x68   : > { %1612 = vmatpush1.bf16.msra.mxu0 %v5859_v30 }
  0x69   : > { %1613 = vmatprep.subr.bf16.mxu0 %v6252_v0 }
  0x6c   : > { %1614 = vmatpush1.bf16.msra.mxu0 %v1542_v34 }
  0x6d   : > { %1882 = vmatprep.subr.bf16.mxu0 %v6252_v0 }
 0x11e   : > { %v866_v46 = vpop.f32.mrb[0].mxu0 }
 0x11f   : > { %v904_v47 = vadd.f32 %v897_v44, %v866_v46  ;;  %v868_v48 = vpop.f32.mrb[1].mxu0 }
 0x120   : > { %v905_v49 = vadd.f32 %v901_v45, %v868_v48  ;;  %v870_v50 = vpop.f32.mrb[2].mxu0 }
 0x121   : > { %vm912_vm4 = vcmp.ge.f32.partialorder %v904_v47, 0.0  ;;  %v920_v51 = vmul.f32 0.2, %v904_v47  ;;  %v906_v52 = vadd.f32 %v897_v44, %v870_v50  ;;  %v872_v53 = vpop.f32.mrb[3].mxu0 }
 0x122   : > { %vm913_vm5 = vcmp.ge.f32.partialorder %v905_v49, 0.0  ;;  %v921_v54 = vmul.f32 0.2, %v905_v49  ;;  %v907_v55 = vadd.f32 %v901_v45, %v872_v53 }
 0x123   : > { %v928_v56 = vsel %vm912_vm4, %v904_v47, %v920_v51  ;;  %vm914_vm6 = vcmp.ge.f32.partialorder %v906_v52, 0.0  ;;  %v922_v57 = vmul.f32 0.2, %v906_v52 }
 0x124   : > { %v1043_v58 = vrot.slane %v928_v56, 1  ;;  %v1055_v59 = vrot.slane %v928_v56, 7  ;;  %v929_v60 = vsel %vm913_vm5, %v905_v49, %v921_v54  ;;  %vm915_vm7 = vcmp.ge.f32.partialorder %v907_v55, 0.0  ;;  %v5868_v56 = vld [vmem:[%s6417_s22 + $0x1b8] ss:$12 sps:$4 sm:$0xff]  }
 0x125   : > { %v1044_v61 = vrot.slane %v929_v60, 1  ;;  %v1056_v62 = vrot.slane %v929_v60, 7  ;;  %v930_v63 = vsel %vm914_vm6, %v906_v52, %v922_v57  ;;  %v923_v1 = vmul.f32 0.2, %v907_v55 }
 0x126   : > { %v6531_v2 = vsel %vm514_vm0, %v1043_v58, %v1055_v59  ;;  %v1057_v3 = vrot.slane %v930_v63, 7  ;;  %v876_v4 = vpop.f32.mrb[4].mxu0  ;;  %v1079_v6 = vrot.slane %v930_v63, 5  ;;  %v5867_v63 = vld [vmem:[%s6417_s22 + $0xd4] ss:$12 sps:$4 sm:$0xff]  }
 0x127   : > { %v1646_v5 = vrot.slane %v6531_v2, 2  ;;  %v931_v7 = vsel %vm915_vm7, %v907_v55, %v923_v1  ;;  %v908_v8 = vadd.f32 %v897_v44, %v876_v4  ;;  %v878_v9 = vpop.f32.mrb[5].mxu0  ;;  %v6538_v14 = vsel %vm514_vm0, %v1044_v61, %v1056_v62 }
 0x128   : > { %v6535_v10 = vsel %vm514_vm0, %v1055_v59, %v1057_v3  ;;  %v1059_v11 = vrot.slane %v931_v7, 7  ;;  %v909_v12 = vadd.f32 %v901_v45, %v878_v9  ;;  %v880_v13 = vpop.f32.mrb[6].mxu0  ;;  %v1080_v15 = vrot.slane %v931_v7, 5 }
 0x129   : > { %vm916_vm9 = vcmp.ge.f32.partialorder %v908_v8, 0.0  ;;  %v924_v16 = vmul.f32 0.2, %v908_v8  ;;  %v910_v17 = vadd.f32 %v897_v44, %v880_v13  ;;  %v882_v18 = vpop.f32.mrb[7].mxu0  ;;  %v1647_v25 = vrot.slane %v6535_v10, 2 }
 0x12a   : > { %vm917_vm10 = vcmp.ge.f32.partialorder %v909_v12, 0.0  ;;  %v925_v19 = vmul.f32 0.2, %v909_v12  ;;  %v911_v20 = vadd.f32 %v901_v45, %v882_v18  ;;  %v6541_v21 = vsel %vm514_vm0, %v1056_v62, %v1059_v11 }
 0x12b   : > { %v932_v22 = vsel %vm916_vm9, %v908_v8, %v924_v16  ;;  %vm918_vm11 = vcmp.ge.f32.partialorder %v910_v17, 0.0  ;;  %v926_v23 = vmul.f32 0.2, %v910_v17  ;;  %v6545_v24 = vpack.c.bf16 %v6541_v21, %v6538_v14 }
 0x12c   : > { %v1045_v26 = vrot.slane %v932_v22, 1  ;;  %v933_v27 = vsel %vm917_vm10, %v909_v12, %v925_v19  ;;  %vm919_vm12 = vcmp.ge.f32.partialorder %v911_v20, 0.0  ;;  %v1061_v28 = vrot.slane %v932_v22, 7  ;;  %v5869_v19 = vld [vmem:[%s6417_s22 + $0xec] ss:$12 sps:$4 sm:$0xff]  }
 0x12d   : > { %v1046_v29 = vrot.slane %v933_v27, 1  ;;  %v6548_v30 = vsel %vm918_vm11, %v910_v17, %v926_v23  ;;  %v927_v31 = vmul.f32 0.2, %v911_v20  ;;  %5141 = vmatprep.mubr.msk.bf16.mxu0 %vm1275_vm8, %v6545_v24  ;;  %v1062_v32 = vrot.slane %v933_v27, 7 }
 0x12e   : > { %v1063_v33 = vrot.slane %v6548_v30, 7  ;;  %v1081_v34 = vrot.slane %v6548_v30, 5  ;;  %v1649_v35 = vrot.slane %v6538_v14, 2  ;;  %v6558_v38 = vpack.c.bf16 %v6535_v10, %v6531_v2 }
 0x12f   : > { %v935_v37 = vsel %vm919_vm12, %v911_v20, %v927_v31  ;;  %v1092_v39 = vsel %vm514_vm0, %v1059_v11, %v1080_v15  ;;  %v1110_v42 = vrot.slane %v6538_v14, 1  ;;  %v1111_v46 = vrot.slane %v6541_v21, 1  ;;  %v5870_v14 = vld [vmem:[%s6417_s22 + $0x1d0] ss:$12 sps:$4 sm:$0xff]  }
 0x130   : > { %v1065_v44 = vrot.slane %v935_v37, 7  ;;  %v1082_v45 = vrot.slane %v935_v37, 5  ;;  %v1115_v47 = vrot.slane %v1092_v39, 1  ;;  %v1650_v48 = vrot.slane %v6541_v21, 2  ;;  %1630 = vmatmul.mubr.bf16.vlgmr.msra.gmra.mrb[8].mxu0 %v6558_v38 }
 0x131   : > { %v1091_v49 = vsel %vm514_vm0, %v1057_v3, %v1079_v6  ;;  %v1107_v50 = vrot.slane %v6531_v2, 1  ;;  %v1108_v51 = vrot.slane %v6535_v10, 1  ;;  %1883 = vmatpush1.bf16.msra.mxu0 %v5866_v36  ;;  %v1112_v53 = vsel %vm541_vm1, %v1110_v42, %v1111_v46  ;;  %v5872_v36 = vld [vmem:[%s6417_s22 + $0x1e8] ss:$12 sps:$4 sm:$0xff]  }
 0x132   : > { %v1094_v52 = vsel %vm514_vm0, %v1065_v44, %v1082_v45  ;;  %v1116_v54 = vsel %vm541_vm1, %v1111_v46, %v1115_v47  ;;  %v1113_v55 = vrot.slane %v1091_v49, 1  ;;  %v1654_v59 = vrot.slane %v1092_v39, 2  ;;  %1884 = vmatprep.subr.bf16.mxu0 %v6252_v0  ;;  %v5874_v46 = vld [vmem:[%s6417_s22 + $0x200] ss:$12 sps:$4 sm:$0xff]  }
 0x133   : > { %v1125_v57 = vrot.slane %v1094_v52, 1  ;;  %v6572_v58 = vpack.c.bf16 %v1116_v54, %v1112_v53  ;;  %v1109_v60 = vsel %vm541_vm1, %v1107_v50, %v1108_v51  ;;  %v1664_v61 = vrot.slane %v1094_v52, 2  ;;  %v5875_v50 = vld [vmem:[%s6417_s22 + $0x134] ss:$12 sps:$4 sm:$0xff]   ;;  %v5877_v52 = vld [vmem:[%s6417_s22 + $0x14c] ss:$12 sps:$4 sm:$0xff]  }
 0x134   : > { %v1114_v62 = vsel %vm541_vm1, %v1108_v51, %v1113_v55  ;;  %v1066_v1 = vsel %vm514_vm0, %v1062_v32, %v1065_v44  ;;  %v1090_v3 = vsel %vm514_vm0, %v1046_v29, %v1062_v32  ;;  %v1652_v6 = vrot.slane %v1091_v49, 2  ;;  %v5876_v49 = vld [vmem:[%s6417_s22 + $0x218] ss:$12 sps:$4 sm:$0xff]   ;;  %v5878_v51 = vld [vmem:[%s6417_s22 + $0x230] ss:$12 sps:$4 sm:$0xff]  }
 0x135   : > { %5107 = vmatprep.mubr.msk.bf16.mxu1 %vm1275_vm8, %v6572_v58  ;;  %v6582_v4 = vpack.c.bf16 %v1114_v62, %v1109_v60  ;;  %v6584_v7 = vpack.c.bf16 %v1066_v1, %v1090_v3  ;;  %v1121_v8 = vrot.slane %v1066_v1, 1  ;;  %1885 = vmatpush1.bf16.msra.mxu0 %v5868_v56  ;;  %v1120_v9 = vrot.slane %v1090_v3, 1  ;;  %v5880_v53 = vld [vmem:[%s6417_s22 + $0x248] ss:$12 sps:$4 sm:$0xff]   ;;  %v5879_v55 = vld [vmem:[%s6417_s22 + $0x164] ss:$12 sps:$4 sm:$0xff]  }
 0x136   : > { %v1659_v11 = vrot.slane %v1090_v3, 2  ;;  %v1064_v12 = vsel %vm514_vm0, %v1061_v28, %v1063_v33  ;;  %v1089_v13 = vsel %vm514_vm0, %v1045_v26, %v1061_v28  ;;  %v1660_v15 = vrot.slane %v1066_v1, 2  ;;  %1886 = vmatprep.subr.bf16.mxu0 %v6252_v0  ;;  %v5882_v54 = vld [vmem:[%s6417_s22 + $0x260] ss:$0 sps:$4 sm:$0x11]  }
 0x137   : > { %1324 = vmatmul.mubr.bf16.vlgmr.msra.gmra.mrb[0].mxu1 %v6582_v4  ;;  %5142 = vmatprep.mubr.msk.bf16.mxu0 %vm1275_vm8, %v6584_v7  ;;  %v6594_v16 = vpack.c.bf16 %v1064_v12, %v1089_v13  ;;  %v1117_v17 = vrot.slane %v1089_v13, 1  ;;  %v1118_v18 = vrot.slane %v1064_v12, 1  ;;  %v1656_v20 = vrot.slane %v1089_v13, 2  ;;  %v5886_v60 = vld [vmem:[%s6417_s22 + $0x4] ss:$12 sps:$4 sm:$0xff]  }
 0x138   : > { %1345 = vmatpush1.bf16.msra.mxu1 %v5867_v63  ;;  %v1651_v21 = vsel %vm603_vm2, %v1649_v35, %v1650_v48  ;;  %v1655_v22 = vsel %vm603_vm2, %v1650_v48, %v1654_v59  ;;  %v1122_v23 = vsel %vm541_vm1, %v1120_v9, %v1121_v8  ;;  %v1657_v26 = vrot.slane %v1064_v12, 2  ;;  %v5873_v48 = vld [vmem:[%s6417_s22 + $0x11c] ss:$12 sps:$4 sm:$0xff]   ;;  %v5887_v63 = vld [vmem:[%s6417_s22 + $0x18] ss:$12 sps:$4 sm:$0xff]  }
 0x139   : > { %1346 = vmatprep.subr.bf16.mxu1 %v6252_v0  ;;  %1638 = vmatmul.mubr.bf16.gmra.mrb[12].mxu0 %v6594_v16  ;;  %v6603_v27 = vpack.c.bf16 %v1655_v22, %v1651_v21  ;;  %v1126_v28 = vsel %vm541_vm1, %v1121_v8, %v1125_v57  ;;  %v1093_v29 = vsel %vm514_vm0, %v1063_v33, %v1081_v34  ;;  %v1827_v56 = vsel %vm514_vm0, %v5882_v54, 0  ;;  %v5881_v57 = vld [vmem:[%s6417_s22 + $0x17c] ss:$12 sps:$4 sm:$0xff]   ;;  %v5892_v1 = vld [vmem:[%s6417_s22 + $0x34] ss:$12 sps:$4 sm:$0xff]  }
 0x13a   : > { %1887 = vmatpush1.bf16.msra.mxu0 %v5870_v14  ;;  %v6609_v31 = vpack.c.bf16 %v1126_v28, %v1122_v23  ;;  %v1119_v32 = vsel %vm541_vm1, %v1117_v17, %v1118_v18  ;;  %v1123_v35 = vrot.slane %v1093_v29, 1  ;;  %v1648_v37 = vsel %vm603_vm2, %v1646_v5, %v1647_v25  ;;  %v5871_v5 = vld [vmem:[%s6417_s22 + $0x104] ss:$12 sps:$4 sm:$0xff]   ;;  %v5889_v62 = vld [vmem:[%s6417_s22 + $0x1c] ss:$12 sps:$4 sm:$0xff]  }
 0x13b   : > { %5173 = vmatprep.mubr.msk.bf16.mxu0 %vm1275_vm8, %v6603_v27  ;;  %1888 = vmatprep.subr.bf16.mxu0 %v6252_v0  ;;  %v1653_v30 = vsel %vm603_vm2, %v1647_v25, %v1652_v6  ;;  %v1661_v33 = vsel %vm603_vm2, %v1659_v11, %v1660_v15  ;;  %v1665_v34 = vsel %vm603_vm2, %v1660_v15, %v1664_v61  ;;  %v1662_v39 = vrot.slane %v1093_v29, 2  ;;  %v5884_v61 = vld [vmem:[%s6417_s22] ss:$12 sps:$4 sm:$0xff]   ;;  %v5890_v3 = vld [vmem:[%s6417_s22 + $0x30] ss:$12 sps:$4 sm:$0xff]  }
 0x13c   : > { %1347 = vmatpush1.bf16.msra.mxu1 %v5869_v19  ;;  %5108 = vmatprep.mubr.msk.bf16.mxu1 %vm1275_vm8, %v6609_v31  ;;  %v1124_v2 = vsel %vm541_vm1, %v1118_v18, %v1123_v35  ;;  %v6630_v42 = vpack.c.bf16 %v1653_v30, %v1648_v37  ;;  %v6632_v10 = vpack.c.bf16 %v1665_v34, %v1661_v33  ;;  %v5895_v6 = vld [vmem:[%s6417_s22 + $0x4c] ss:$12 sps:$4 sm:$0xff]   ;;  %v5898_v8 = vld [vmem:[%s6417_s22 + $0x64] ss:$12 sps:$4 sm:$0xff]   ;;  %v5901_v11 = vld [vmem:[%s6417_s22 + $0x7c] ss:$12 sps:$4 sm:$0xff]  }
 0x13d   : > { %1348 = vmatprep.subr.bf16.mxu1 %v6252_v0  ;;  %v1137_v25 = vpack.c.bf16 %v1124_v2, %v1119_v32  ;;  %v1658_v44 = vsel %vm603_vm2, %v1656_v20, %v1657_v26  ;;  %v1663_v45 = vsel %vm603_vm2, %v1657_v26, %v1662_v39  ;;  %v5896_v9 = vld [vmem:[%s6417_s22 + $0x60] ss:$12 sps:$4 sm:$0xff]   ;;  %v5899_v12 = vld [vmem:[%s6417_s22 + $0x78] ss:$12 sps:$4 sm:$0xff]   ;;  %v5902_v14 = vld [vmem:[%s6417_s22 + $0x90] ss:$12 sps:$4 sm:$0xff]  }
 0x13e   : > { %1889 = vmatpush1.bf16.msra.mxu0 %v5872_v36  ;;  %v6638_v47 = vpack.c.bf16 %v1663_v45, %v1658_v44  ;;  %v5904_v13 = vld [vmem:[%s6417_s22 + $0x94] ss:$12 sps:$4 sm:$0xff]   ;;  %v5912_v21 = vld [vmem:[%s6417_s22 + $0x19c] ss:$12 sps:$4 sm:$0xff]   ;;  %v5910_v22 = vld [vmem:[%s6417_s22 + $0x198] ss:$12 sps:$4 sm:$0xff]  }
 0x13f   : > { %1334 = vmatmul.mubr.bf16.gmra.mrb[4].mxu1 %v1137_v25  ;;  %1890 = vmatprep.subr.bf16.mxu0 %v6252_v0  ;;  %v968_v15 = vld [vmem:[%s6417_s22 + $0xc0] sm:$0x11]  ;;  %v5905_v17 = vld [vmem:[%s6417_s22 + $0xa8] ss:$12 sps:$4 sm:$0xff]   ;;  %v5913_v26 = vld [vmem:[%s6417_s22 + $0x1b0] ss:$12 sps:$4 sm:$0xff]  }
 0x140   : > { %1349 = vmatpush1.bf16.msra.mxu1 %v5871_v5  ;;  %5109 = vmatprep.mubr.msk.bf16.mxu1 %vm1275_vm8, %v6572_v58  ;;  %v5883_v58 = vld [vmem:[%s6417_s22 + $0x194] ss:$0 sps:$4 sm:$0x11]   ;;  %v5136_v18 = vcombine.high %v968_v15, %v968_v15  ;;  %v5135_v19 = vcombine.low %v968_v15, %v968_v15  ;;  %v5918_v28 = vld [vmem:[%s6417_s22 + $0x1cc] ss:$12 sps:$4 sm:$0xff]  }
 0x141   : > { %1350 = vmatprep.subr.bf16.mxu1 %v6252_v0  ;;  %v1289_v59 = vsel %vm514_vm0, %v5883_v58, 0  ;;  %v5915_v23 = vld [vmem:[%s6417_s22 + $0x1b4] ss:$12 sps:$4 sm:$0xff]   ;;  %v5922_v32 = vld [vmem:[%s6417_s22 + $0x1f8] ss:$12 sps:$4 sm:$0xff]  }
 0x142   : > { %1891 = vmatpush1.bf16.msra.mxu0 %v5874_v46  ;;  %v1536_v20 = vsel %vm514_vm0, %v5135_v19, 0  ;;  %v5916_v29 = vld [vmem:[%s6417_s22 + $0x1c8] ss:$12 sps:$4 sm:$0xff]   ;;  %v5925_v36 = vld [vmem:[%s6417_s22 + $0x210] ss:$12 sps:$4 sm:$0xff]  }
 0x143   : > { %1892 = vmatprep.subr.bf16.mxu0 %v6252_v0  ;;  %v5927_v35 = vld [vmem:[%s6417_s22 + $0x214] ss:$12 sps:$4 sm:$0xff]   ;;  %v5930_v37 = vld [vmem:[%s6417_s22 + $0x22c] ss:$12 sps:$4 sm:$0xff]   ;;  %v5933_v30 = vld [vmem:[%s6417_s22 + $0x244] ss:$12 sps:$4 sm:$0xff]  }
 0x144   : > { %1351 = vmatpush1.bf16.msra.mxu1 %v5873_v48  ;;  %v5931_v33 = vld [vmem:[%s6417_s22 + $0x240] ss:$12 sps:$4 sm:$0xff]   ;;  %v5941_v44 = vld [vmem:[%s6482_s26 + $0x1a8] ss:$12 sps:$4 sm:$0xff]   ;;  %v5939_v45 = vld [vmem:[%s6482_s26 + $0x1a4] ss:$12 sps:$4 sm:$0xff]  }
 0x145   : > { %1352 = vmatprep.subr.bf16.mxu1 %v6252_v0  ;;  %v5936_v5 = vld [vmem:[%s6482_s26 + $0x18c] ss:$12 sps:$4 sm:$0xff]   ;;  %v5963_v48 = vld [vmem:[%s6482_s26 + $0x254] ss:$12 sps:$4 sm:$0xff]   ;;  %v5974_v54 = vld [vmem:[%s6482_s26 + $0x1c4] ss:$12 sps:$4 sm:$0xff]  }
 0x146   : > { %1893 = vmatpush1.bf16.msra.mxu0 %v5876_v49  ;;  %v5944_v46 = vld [vmem:[%s6482_s26 + $0x1c0] ss:$12 sps:$4 sm:$0xff]   ;;  %v5979_v58 = vld [vmem:[%s6482_s26 + $0x1dc] ss:$12 sps:$4 sm:$0xff]  }
 0x147   : > { %1894 = vmatprep.subr.bf16.mxu0 %v6252_v0  ;;  %v5968_v49 = vld [vmem:[%s6482_s26 + $0x26c] ss:$12 sps:$4 sm:$0xff]   ;;  %v5984_v15 = vld [vmem:[%s6482_s26 + $0x1f4] ss:$12 sps:$4 sm:$0xff]  }
 0x148   : > { %1353 = vmatpush1.bf16.msra.mxu1 %v5875_v50  ;;  %v5969_v50 = vld [vmem:[%s6482_s26 + $0x1ac] ss:$12 sps:$4 sm:$0xff]  }
 0x149   : > { %1354 = vmatprep.subr.bf16.mxu1 %v6252_v0  ;;  %v5988_v19 = vld [vmem:[%s6482_s26 + $0x2cc] ss:$12 sps:$4 sm:$0xff]  }
 0x14a   : > { %1895 = vmatpush1.bf16.msra.mxu0 %v5878_v51  ;;  %v5973_v51 = vld [vmem:[%s6482_s26 + $0x284] ss:$12 sps:$4 sm:$0xff]  }
 0x14b   : > { %1896 = vmatprep.subr.bf16.mxu0 %v6252_v0 }
 0x14c   : > { %1355 = vmatpush1.bf16.msra.mxu1 %v5877_v52  ;;  %v5945_v52 = vld [vmem:[%s6482_s26 + $0x1d4] ss:$12 sps:$4 sm:$0xff]  }
 0x14d   : > { %1356 = vmatprep.subr.bf16.mxu1 %v6252_v0 }
 0x14e   : > { %1897 = vmatpush1.bf16.msra.mxu0 %v5880_v53  ;;  %v5950_v53 = vld [vmem:[%s6482_s26 + $0x1f0] ss:$12 sps:$4 sm:$0xff]  }
 0x14f   : > { %1898 = vmatprep.subr.bf16.mxu0 %v6252_v0 }
 0x150   : > { %1357 = vmatpush1.bf16.msra.mxu1 %v5879_v55  ;;  %v5978_v55 = vld [vmem:[%s6482_s26 + $0x29c] ss:$12 sps:$4 sm:$0xff]  }
 0x151   : > { %1358 = vmatprep.subr.bf16.mxu1 %v6252_v0 }
 0x152   : > { %1899 = vmatpush1.bf16.msra.mxu0 %v1827_v56  ;;  %v5948_v56 = vld [vmem:[%s6482_s26 + $0x1ec] ss:$12 sps:$4 sm:$0xff]  }
 0x154   : > { %1359 = vmatpush1.bf16.msra.mxu1 %v5881_v57  ;;  %v5953_v57 = vld [vmem:[%s6482_s26 + $0x208] ss:$12 sps:$4 sm:$0xff]  }
 0x155   : > { %1360 = vmatprep.subr.bf16.mxu1 %v6252_v0  ;;  %1915 = vmatmul.mubr.bf16.vlgmr.msra.gmra.mrb[16].mxu0 %v6630_v42 }
 0x156   : > { %5174 = vmatprep.mubr.msk.bf16.mxu0 %vm1275_vm8, %v6632_v10 }
 0x158   : > { %1361 = vmatpush1.bf16.msra.mxu1 %v1289_v59  ;;  %v5951_v59 = vld [vmem:[%s6482_s26 + $0x204] ss:$12 sps:$4 sm:$0xff]  }
 0x159   : > { %1544 = vmatprep.subr.bf16.mxu1 %v5886_v60  ;;  %v5956_v60 = vld [vmem:[%s6482_s26 + $0x220] ss:$12 sps:$4 sm:$0xff]  }
 0x15b   : > { %1377 = vmatmul.mubr.bf16.vlgmr.msra.gmra.mrb[8].mxu1 %v6582_v4  ;;  %v5893_v4 = vld [vmem:[%s6417_s22 + $0x48] ss:$12 sps:$4 sm:$0xff]  }
 0x15c   : > { %5110 = vmatprep.mubr.msk.bf16.mxu1 %vm1275_vm8, %v6609_v31  ;;  %1545 = vmatpush1.bf16.msra.mxu1 %v5884_v61  ;;  %v5921_v31 = vld [vmem:[%s6417_s22 + $0x1e4] ss:$12 sps:$4 sm:$0xff]   ;;  %v5954_v61 = vld [vmem:[%s6482_s26 + $0x21c] ss:$12 sps:$4 sm:$0xff]  }
 0x15d   : > { %1546 = vmatprep.subr.bf16.mxu1 %v5889_v62  ;;  %1923 = vmatmul.mubr.bf16.gmra.mrb[20].mxu0 %v6638_v47  ;;  %v5959_v62 = vld [vmem:[%s6482_s26 + $0x238] ss:$12 sps:$4 sm:$0xff]  }
 0x160   : > { %1547 = vmatpush1.bf16.msra.mxu1 %v5887_v63  ;;  %v5957_v63 = vld [vmem:[%s6482_s26 + $0x234] ss:$12 sps:$4 sm:$0xff]  }
 0x161   : > { %1548 = vmatprep.subr.bf16.mxu1 %v5892_v1  ;;  %v5962_v1 = vld [vmem:[%s6482_s26 + $0x250] ss:$12 sps:$4 sm:$0xff]  }
 0x163   : > { %1385 = vmatmul.mubr.bf16.gmra.mrb[12].mxu1 %v1137_v25  ;;  %v5938_v25 = vld [vmem:[%s6482_s26 + $0x190] ss:$12 sps:$4 sm:$0xff]  }
 0x164   : > { %1549 = vmatpush1.bf16.msra.mxu1 %v5890_v3  ;;  %5139 = vmatprep.mubr.msk.bf16.mxu1 %vm1275_vm8, %v6545_v24  ;;  %v5907_v24 = vld [vmem:[%s6417_s22 + $0xac] ss:$12 sps:$4 sm:$0xff]  }
 0x165   : > { %1550 = vmatprep.subr.bf16.mxu1 %v5895_v6  ;;  %2637 = vmatprep.subr.bf16.mxu0 %v5938_v25  ;;  %v5960_v3 = vld [vmem:[%s6482_s26 + $0x24c] ss:$12 sps:$4 sm:$0xff]   ;;  %v5967_v6 = vld [vmem:[%s6482_s26 + $0x268] ss:$12 sps:$4 sm:$0xff]  }
 0x166   : > { %2638 = vmatpush1.bf16.msra.mxu0 %v5936_v5 }
 0x167   : > { %2639 = vmatprep.subr.bf16.mxu0 %v5941_v44  ;;  %v1954_v44 = vsub.s32 2, %v6517_v40 }
 0x168   : > { %1551 = vmatpush1.bf16.msra.mxu1 %v5893_v4  ;;  %v5965_v4 = vld [vmem:[%s6482_s26 + $0x264] ss:$12 sps:$4 sm:$0xff]  }
 0x169   : > { %1552 = vmatprep.subr.bf16.mxu1 %v5898_v8  ;;  %v5972_v8 = vld [vmem:[%s6482_s26 + $0x280] ss:$12 sps:$4 sm:$0xff]  }
 0x16a   : > { %2640 = vmatpush1.bf16.msra.mxu0 %v5939_v45 }
 0x16b   : > { %2641 = vmatprep.subr.bf16.mxu0 %v5944_v46 }
 0x16c   : > { %1553 = vmatpush1.bf16.msra.mxu1 %v5896_v9  ;;  %v5970_v9 = vld [vmem:[%s6482_s26 + $0x27c] ss:$12 sps:$4 sm:$0xff]  }
 0x16d   : > { %1554 = vmatprep.subr.bf16.mxu1 %v5901_v11  ;;  %v5977_v11 = vld [vmem:[%s6482_s26 + $0x298] ss:$12 sps:$4 sm:$0xff]  }
 0x170   : > { %1555 = vmatpush1.bf16.msra.mxu1 %v5899_v12  ;;  %v5975_v12 = vld [vmem:[%s6482_s26 + $0x294] ss:$12 sps:$4 sm:$0xff]  }
 0x171   : > { %1556 = vmatprep.subr.bf16.mxu1 %v5904_v13  ;;  %v5982_v13 = vld [vmem:[%s6482_s26 + $0x2b0] ss:$12 sps:$4 sm:$0xff]  }
 0x174   : > { %1557 = vmatpush1.bf16.msra.mxu1 %v5902_v14  ;;  %v5983_v14 = vld [vmem:[%s6482_s26 + $0x2b4] ss:$12 sps:$4 sm:$0xff]  }
 0x175   : > { %1558 = vmatprep.subr.bf16.mxu1 %v5907_v24  ;;  %v5980_v24 = vld [vmem:[%s6482_s26 + $0x2ac] ss:$12 sps:$4 sm:$0xff]  }
 0x178   : > { %1559 = vmatpush1.bf16.msra.mxu1 %v5905_v17  ;;  %v5985_v17 = vld [vmem:[%s6482_s26 + $0x2c4] ss:$12 sps:$4 sm:$0xff]  }
 0x179   : > { %5138 = vmatprep.subr.msk.bf16.mxu1 %vm514_vm0, %v5136_v18  ;;  %v5987_v18 = vld [vmem:[%s6482_s26 + $0x2c8] ss:$12 sps:$4 sm:$0xff]  }
 0x17c   : > { %1561 = vmatpush1.bf16.msra.mxu1 %v1536_v20  ;;  %v5989_v20 = vld [vmem:[%s6482_s26 + $0x20c] ss:$12 sps:$4 sm:$0xff]  }
 0x17d   : > { %1829 = vmatprep.subr.bf16.mxu1 %v5912_v21 }
 0x17f   : > { %1577 = vmatmul.mubr.bf16.vlgmr.msra.gmra.mrb[0].mxu1 %v6558_v38  ;;  %v5919_v38 = vld [vmem:[%s6417_s22 + $0x1e0] ss:$12 sps:$4 sm:$0xff]  }
 0x180   : > { %5140 = vmatprep.mubr.msk.bf16.mxu1 %vm1275_vm8, %v6584_v7  ;;  %1830 = vmatpush1.bf16.msra.mxu1 %v5910_v22  ;;  %v5924_v7 = vld [vmem:[%s6417_s22 + $0x1fc] ss:$12 sps:$4 sm:$0xff]  }
 0x181   : > { %1831 = vmatprep.subr.bf16.mxu1 %v5915_v23 }
 0x184   : > { %1832 = vmatpush1.bf16.msra.mxu1 %v5913_v26  ;;  %v5992_v26 = vld [vmem:[%s6482_s26 + $0x2e0] ss:$12 sps:$4 sm:$0xff]  }
 0x185   : > { %1833 = vmatprep.subr.bf16.mxu1 %v5918_v28  ;;  %v5993_v28 = vld [vmem:[%s6482_s26 + $0x2e4] ss:$12 sps:$4 sm:$0xff]  }
 0x187   : > { %1587 = vmatmul.mubr.bf16.gmra.mrb[4].mxu1 %v6594_v16  ;;  %v5928_v16 = vld [vmem:[%s6417_s22 + $0x228] ss:$12 sps:$4 sm:$0xff]  }
 0x188   : > { %1834 = vmatpush1.bf16.msra.mxu1 %v5916_v29  ;;  %5171 = vmatprep.mubr.msk.bf16.mxu1 %vm1275_vm8, %v6603_v27  ;;  %v1036_v27 = vld [vmem:[%s6417_s22 + $0x258] sm:$0x11]  ;;  %s5750_s22 = smul.u32 3, %s6357_s21 }
 0x189   : > { %1835 = vmatprep.subr.bf16.mxu1 %v5921_v31  ;;  %v5168_v34 = vcombine.high %v1036_v27, %v1036_v27  ;;  %v5167_v39 = vcombine.low %v1036_v27, %v1036_v27  ;;  %v5990_v31 = vld [vmem:[%s6482_s26 + $0x2dc] ss:$12 sps:$4 sm:$0xff]  }
 0x18a   : > { %s458_s28 = scalar_lea.vmem %s7359_s4, %s5750_s22  ;;  %s467_s16 = scalar_lea.vmem %s7361_s6, %s5750_s22 }
 0x18b   : > { %v1821_v2 = vsel %vm514_vm0, %v5167_v39, 0  ;;  %v6777_v39 = vld [vmem:[%s6482_s26 + $0x314] ss:$0 sps:$4 sm:$0x33]   ;;  %v6788_v46 = vld [vmem:[%s458_s28] sm:$0x7] }
 0x18c   : > { %1836 = vmatpush1.bf16.msra.mxu1 %v5919_v38  ;;  %v5994_v38 = vld [vmem:[%s6482_s26 + $0x224] ss:$12 sps:$4 sm:$0xff]   ;;  %s5407_s28 = sshll.u32 %s6327_s13, 9 }
 0x18d   : > { %1837 = vmatprep.subr.bf16.mxu1 %v5924_v7  ;;  %v5997_v7 = vld [vmem:[%s6482_s26 + $0x2f8] ss:$12 sps:$4 sm:$0xff]   ;;  %s7312_s29 = scalar_lea.hbm %s7364_s9, %s5407_s28 }
 0x190   : > { %1838 = vmatpush1.bf16.msra.mxu1 %v5922_v32  ;;  %v5998_v32 = vld [vmem:[%s6482_s26 + $0x2fc] ss:$12 sps:$4 sm:$0xff]  }
 0x191   : > { %1839 = vmatprep.subr.bf16.mxu1 %v5927_v35  ;;  %v5995_v35 = vld [vmem:[%s6482_s26 + $0x2f4] ss:$12 sps:$4 sm:$0xff]  }
 0x194   : > { %1840 = vmatpush1.bf16.msra.mxu1 %v5925_v36  ;;  %v5999_v36 = vld [vmem:[%s6482_s26 + $0x23c] ss:$12 sps:$4 sm:$0xff]  }
 0x195   : > { %1841 = vmatprep.subr.bf16.mxu1 %v5930_v37 }
 0x198   : > { %1842 = vmatpush1.bf16.msra.mxu1 %v5928_v16 }
 0x199   : > { %1843 = vmatprep.subr.bf16.mxu1 %v5933_v30  ;;  %v6771_v30 = vld [vmem:[%s6482_s26 + $0x30c] sm:$0x33] }
 0x19c   : > { %1844 = vmatpush1.bf16.msra.mxu1 %v5931_v33  ;;  %v5224_v33 = vcombine.high %v6771_v30, %v6771_v30 }
 0x19d   : > { %5170 = vmatprep.subr.msk.bf16.mxu1 %vm514_vm0, %v5168_v34 }
 0x1a0   : > { %1846 = vmatpush1.bf16.msra.mxu1 %v1821_v2 }
 0x1a1   : > { %5408 = vmatprep.subr.bf16.mxu1 %v5963_v48 }
 0x1a3   : > { %1862 = vmatmul.mubr.bf16.vlgmr.msra.gmra.mrb[0].mxu1 %v6630_v42  ;;  %v5964_v42 = vld [vmem:[%s6482_s26 + $0x194] ss:$12 sps:$4 sm:$0xff]  }
 0x1a4   : > { %5172 = vmatprep.mubr.msk.bf16.mxu1 %vm1275_vm8, %v6632_v10  ;;  %v5942_v10 = vld [vmem:[%s6482_s26 + $0x1bc] ss:$12 sps:$4 sm:$0xff]   ;;  %5409 = vmatpush3.bf16.msra.mxu1 %v5964_v42 }
 0x1a5   : > { %5410 = vmatprep.subr.bf16.mxu1 %v5968_v49  ;;  %2642 = vmatpush1.bf16.msra.mxu0 %v5942_v10  ;;  %v1955_v10 = vrot.slane %v6788_v46, %v1954_v44 }
 0x1a8   : > { %5411 = vmatpush3.bf16.msra.mxu1 %v5969_v50 }
 0x1a9   : > { %5412 = vmatprep.subr.bf16.mxu1 %v5973_v51 }
 0x1ab   : > { %1872 = vmatmul.mubr.bf16.gmra.mrb[4].mxu1 %v6638_v47  ;;  %v5947_v47 = vld [vmem:[%s6482_s26 + $0x1d8] ss:$12 sps:$4 sm:$0xff]  }
 0x1ac   : > { %2643 = vmatprep.subr.bf16.mxu0 %v5947_v47  ;;  %5413 = vmatpush3.bf16.msra.mxu1 %v5974_v54 }
 0x1ad   : > { %2644 = vmatpush1.bf16.msra.mxu0 %v5945_v52  ;;  %5414 = vmatprep.subr.bf16.mxu1 %v5978_v55 }
 0x1ae   : > { %2645 = vmatprep.subr.bf16.mxu0 %v5950_v53 }
 0x1b0   : > { %5415 = vmatpush3.bf16.msra.mxu1 %v5979_v58 }
 0x1b1   : > { %2646 = vmatpush1.bf16.msra.mxu0 %v5948_v56  ;;  %5416 = vmatprep.subr.bf16.mxu1 %v5983_v14 }
 0x1b2   : > { %2647 = vmatprep.subr.bf16.mxu0 %v5953_v57 }
 0x1b4   : > { %5417 = vmatpush3.bf16.msra.mxu1 %v5984_v15 }
 0x1b5   : > { %2648 = vmatpush1.bf16.msra.mxu0 %v5951_v59  ;;  %5418 = vmatprep.subr.bf16.mxu1 %v5988_v19 }
 0x1b6   : > { %2649 = vmatprep.subr.bf16.mxu0 %v5956_v60 }
 0x1b8   : > { %5419 = vmatpush3.bf16.msra.mxu1 %v5989_v20 }
 0x1b9   : > { %2650 = vmatpush1.bf16.msra.mxu0 %v5954_v61  ;;  %5420 = vmatprep.subr.bf16.mxu1 %v5993_v28 }
 0x1ba   : > { %2651 = vmatprep.subr.bf16.mxu0 %v5959_v62 }
 0x1bc   : > { %5421 = vmatpush3.bf16.msra.mxu1 %v5994_v38 }
 0x1bd   : > { %2652 = vmatpush1.bf16.msra.mxu0 %v5957_v63  ;;  %5422 = vmatprep.subr.bf16.mxu1 %v5998_v32 }
 0x1be   : > { %2653 = vmatprep.subr.bf16.mxu0 %v5962_v1 }
 0x1c0   : > { %5423 = vmatpush3.bf16.msra.mxu1 %v5999_v36 }
 0x1c1   : > { %2654 = vmatpush1.bf16.msra.mxu0 %v5960_v3  ;;  %5742 = vmatprep.subr.msk.bf16.mxu1 %vm2627_vm13, %v6777_v39 }
 0x1c2   : > { %2655 = vmatprep.subr.bf16.mxu0 %v5967_v6 }
 0x1c5   : > { %2656 = vmatpush1.bf16.msra.mxu0 %v5965_v4 }
 0x1c6   : > { %2657 = vmatprep.subr.bf16.mxu0 %v5972_v8 }
 0x1c9   : > { %2658 = vmatpush1.bf16.msra.mxu0 %v5970_v9 }
 0x1ca   : > { %2659 = vmatprep.subr.bf16.mxu0 %v5977_v11 }
 0x1cd   : > { %2660 = vmatpush1.bf16.msra.mxu0 %v5975_v12 }
 0x1ce   : > { %2661 = vmatprep.subr.bf16.mxu0 %v5982_v13 }
 0x1d1   : > { %2662 = vmatpush1.bf16.msra.mxu0 %v5980_v24 }
 0x1d2   : > { %2663 = vmatprep.subr.bf16.mxu0 %v5987_v18 }
 0x1d5   : > { %2664 = vmatpush1.bf16.msra.mxu0 %v5985_v17 }
 0x1d6   : > { %2665 = vmatprep.subr.bf16.mxu0 %v5992_v26 }
 0x1d9   : > { %2666 = vmatpush1.bf16.msra.mxu0 %v5990_v31 }
 0x1da   : > { %2667 = vmatprep.subr.bf16.mxu0 %v5997_v7 }
 0x1dd   : > { %2668 = vmatpush1.bf16.msra.mxu0 %v5995_v35 }
 0x1de   : > { %5226 = vmatprep.subr.msk.bf16.mxu0 %vm2627_vm13, %v5224_v33 }
 0x203   : > { %v1631_v21 = vpop.f32.mrb[8].mxu0 }
 0x204   : > { %v1633_v22 = vpop.f32.mrb[9].mxu0 }
 0x205   : > { %v1634_v23 = vpop.f32.mrb[10].mxu0 }
 0x206   : > { %v1636_v29 = vpop.f32.mrb[11].mxu0 }
 0x20c   : > { %v1639_v37 = vpop.f32.mrb[12].mxu0 }
 0x20d   : > { %v1641_v16 = vpop.f32.mrb[13].mxu0 }
 0x20e   : > { %v1642_v27 = vpop.f32.mrb[14].mxu0 }
 0x20f   : > { %v1644_v34 = vpop.f32.mrb[15].mxu0 }
 0x228   : > { %v1916_v2 = vpop.f32.mrb[16].mxu0 }
 0x229   : > { %v1918_v5 = vpop.f32.mrb[17].mxu0 }
 0x22a   : > { %v1919_v25 = vpop.f32.mrb[18].mxu0 }
 0x22b   : > { %v1921_v45 = vpop.f32.mrb[19].mxu0 }
 0x22e   : > { %v1378_v48 = vpop.f32.mrb[8].mxu1 }
 0x22f   : > { %v1632_v42 = vadd.f32 %v1631_v21, %v1378_v48  ;;  %v1380_v49 = vpop.f32.mrb[9].mxu1 }
 0x230   : > { %v1381_v47 = vpop.f32.mrb[10].mxu1  ;;  %v1924_v50 = vpop.f32.mrb[20].mxu0 }
 0x231   : > { %v1933_v51 = vadd.f32 %v1916_v2, %v1632_v42  ;;  %v1635_v52 = vadd.f32 %v1634_v23, %v1381_v47  ;;  %v1383_v53 = vpop.f32.mrb[11].mxu1  ;;  %v1926_v54 = vpop.f32.mrb[21].mxu0 }
 0x232   : > { %v1927_v55 = vpop.f32.mrb[22].mxu0 }
 0x233   : > { %v1961_v56 = vadd.f32 %v1955_v10, %v1933_v51  ;;  %v1936_v57 = vadd.f32 %v1919_v25, %v1635_v52  ;;  %v1929_v58 = vpop.f32.mrb[23].mxu0 }
 0x235   : > { %vm1973_vm14 = vcmp.ge.f32.partialorder %v1961_v56, 0.0  ;;  %v1985_v59 = vmul.f32 0.2, %v1961_v56  ;;  %v1964_v60 = vadd.f32 %v1955_v10, %v1936_v57 }
 0x236   : > { %v1386_v61 = vpop.f32.mrb[12].mxu1 }
 0x237   : > { %v1997_v62 = vsel %vm1973_vm14, %v1961_v56, %v1985_v59  ;;  %vm1976_vm15 = vcmp.ge.f32.partialorder %v1964_v60, 0.0  ;;  %v1988_v63 = vmul.f32 0.2, %v1964_v60  ;;  %v1640_v1 = vadd.f32 %v1639_v37, %v1386_v61  ;;  %v1388_v3 = vpop.f32.mrb[13].mxu1 }
 0x238   : > { %v2214_v6 = vrot.slane %v1997_v62, 1  ;;  %v2232_v4 = vrot.slane %v1997_v62, 7  ;;  %v1389_v8 = vpop.f32.mrb[14].mxu1  ;;  %v1947_v62 = vrot.slane %v6788_v46, %v6523_v41  ;;  %vm2620_vm14 = vcmask 31744  }
 0x239   : > { %v2000_v9 = vsel %vm1976_vm15, %v1964_v60, %v1988_v63  ;;  %v1939_v11 = vadd.f32 %v1924_v50, %v1640_v1  ;;  %v1643_v12 = vadd.f32 %v1642_v27, %v1389_v8  ;;  %v1391_v13 = vpop.f32.mrb[15].mxu1  ;;  %v1951_v63 = vrot.slane %v6788_v46, %v6526_v43 }
 0x23a   : > { %v2280_v14 = vsel %vm514_vm0, %v2214_v6, %v2232_v4  ;;  %v2237_v24 = vrot.slane %v2000_v9, 7  ;;  %v2268_v15 = vrot.slane %v2000_v9, 5 }
 0x23b   : > { %v1967_v17 = vadd.f32 %v1955_v10, %v1939_v11  ;;  %v1942_v18 = vadd.f32 %v1927_v55, %v1643_v12  ;;  %v2314_v21 = vrot.slane %v2280_v14, 1  ;;  %v3330_v31 = vrot.slane %v2280_v14, 2 }
 0x23c   : > { %v2238_v19 = vsel %vm514_vm0, %v2232_v4, %v2237_v24  ;;  %v2286_v20 = vsel %vm514_vm0, %v2237_v24, %v2268_v15  ;;  %v5223_v4 = vcombine.low %v6771_v30, %v6771_v30 }
 0x23d   : > { %vm1979_vm3 = vcmp.ge.f32.partialorder %v1967_v17, 0.0  ;;  %v1991_v22 = vmul.f32 0.2, %v1967_v17  ;;  %v1970_v23 = vadd.f32 %v1955_v10, %v1942_v18  ;;  %v2315_v26 = vrot.slane %v2238_v19, 1 }
 0x23e   : > { %v2321_v28 = vrot.slane %v2286_v20, 1  ;;  %v6796_v29 = vpack.c.bf16 %v2238_v19, %v2280_v14  ;;  %v3331_v38 = vrot.slane %v2238_v19, 2  ;;  %v3337_v2 = vrot.slane %v2286_v20, 2 }
 0x23f   : > { %v2003_v7 = vsel %vm1979_vm3, %v1967_v17, %v1991_v22  ;;  %vm1982_vm4 = vcmp.ge.f32.partialorder %v1970_v23, 0.0  ;;  %v1994_v32 = vmul.f32 0.2, %v1970_v23  ;;  %v2316_v35 = vsel %vm541_vm1, %v2314_v21, %v2315_v26 }
 0x240   : > { %v2217_v36 = vrot.slane %v2003_v7, 1  ;;  %v2241_v37 = vrot.slane %v2003_v7, 7  ;;  %v2322_v16 = vsel %vm541_vm1, %v2315_v26, %v2321_v28  ;;  %v3332_v27 = vsel %vm603_vm2, %v3330_v31, %v3331_v38 }
 0x241   : > { %v2006_v33 = vsel %vm1982_vm4, %v1970_v23, %v1994_v32  ;;  %v6801_v34 = vpack.c.bf16 %v2322_v16, %v2316_v35  ;;  %v3338_v42 = vsel %vm603_vm2, %v3331_v38, %v3337_v2  ;;  %v6826_v46 = vsel %vm2627_vm13, %v5223_v4, 0 }
 0x242   : > { %v2283_v5 = vsel %vm514_vm0, %v2217_v36, %v2241_v37  ;;  %v2246_v25 = vrot.slane %v2006_v33, 7  ;;  %v2271_v45 = vrot.slane %v2006_v33, 5  ;;  %v6807_v50 = vpack.c.bf16 %v3338_v42, %v3332_v27 }
 0x243   : > { %v2329_v48 = vrot.slane %v2283_v5, 1  ;;  %v3345_v10 = vrot.slane %v2283_v5, 2  ;;  %v6833_v7 = vsel %vm2627_vm13, %v6777_v39, 0 }
 0x244   : > { %v2247_v49 = vsel %vm514_vm0, %v2241_v37, %v2246_v25  ;;  %v2289_v47 = vsel %vm514_vm0, %v2246_v25, %v2271_v45 }
 0x245   : > { %v6809_v51 = vpack.c.bf16 %v2247_v49, %v2283_v5  ;;  %v2330_v52 = vrot.slane %v2247_v49, 1  ;;  %v2336_v53 = vrot.slane %v2289_v47, 1  ;;  %v3346_v54 = vrot.slane %v2247_v49, 2 }
 0x246   : > { %v3352_v55 = vrot.slane %v2289_v47, 2 }
 0x247   : > { %v2331_v56 = vsel %vm541_vm1, %v2329_v48, %v2330_v52  ;;  %v2337_v57 = vsel %vm541_vm1, %v2330_v52, %v2336_v53  ;;  %v3347_v58 = vsel %vm603_vm2, %v3345_v10, %v3346_v54 }
 0x248   : > { %v6814_v59 = vpack.c.bf16 %v2337_v57, %v2331_v56  ;;  %v3353_v60 = vsel %vm603_vm2, %v3346_v54, %v3352_v55 }
 0x249   : > { %v6817_v61 = vpack.c.bf16 %v3353_v60, %v3347_v58 }
 0x276   : > { %v1863_v1 = vpop.f32.mrb[0].mxu1 }
 0x277   : > { %v1959_v3 = vadd.f32 %v1947_v62, %v1863_v1  ;;  %v1865_v6 = vpop.f32.mrb[1].mxu1 }
 0x278   : > { %v1960_v8 = vadd.f32 %v1951_v63, %v1865_v6  ;;  %v1867_v9 = vpop.f32.mrb[2].mxu1 }
 0x279   : > { %vm1971_vm5 = vcmp.ge.f32.partialorder %v1959_v3, 0.0  ;;  %v1983_v11 = vmul.f32 0.2, %v1959_v3  ;;  %v1962_v12 = vadd.f32 %v1947_v62, %v1867_v9  ;;  %v1869_v13 = vpop.f32.mrb[3].mxu1 }
 0x27a   : > { %vm1972_vm6 = vcmp.ge.f32.partialorder %v1960_v8, 0.0  ;;  %v1984_v14 = vmul.f32 0.2, %v1960_v8  ;;  %v1963_v24 = vadd.f32 %v1951_v63, %v1869_v13 }
 0x27b   : > { %v1995_v15 = vsel %vm1971_vm5, %v1959_v3, %v1983_v11  ;;  %vm1974_vm7 = vcmp.ge.f32.partialorder %v1962_v12, 0.0  ;;  %v1986_v17 = vmul.f32 0.2, %v1962_v12 }
 0x27c   : > { %v2212_v18 = vrot.slane %v1995_v15, 1  ;;  %v2230_v19 = vrot.slane %v1995_v15, 7  ;;  %v1996_v20 = vsel %vm1972_vm6, %v1960_v8, %v1984_v14  ;;  %vm1975_vm8 = vcmp.ge.f32.partialorder %v1963_v24, 0.0 }
 0x27d   : > { %v2213_v30 = vrot.slane %v1996_v20, 1  ;;  %v2231_v21 = vrot.slane %v1996_v20, 7  ;;  %v1998_v22 = vsel %vm1974_vm7, %v1962_v12, %v1986_v17  ;;  %v1987_v23 = vmul.f32 0.2, %v1963_v24 }
 0x27e   : > { %v6829_v26 = vsel %vm514_vm0, %v2212_v18, %v2230_v19  ;;  %v2233_v28 = vrot.slane %v1998_v22, 7  ;;  %v2266_v31 = vrot.slane %v1998_v22, 5  ;;  %v1873_v38 = vpop.f32.mrb[4].mxu1 }
 0x27f   : > { %v2308_v32 = vrot.slane %v6829_v26, 1  ;;  %v3324_v35 = vrot.slane %v6829_v26, 2  ;;  %v6838_v36 = vsel %vm514_vm0, %v2213_v30, %v2231_v21  ;;  %v1999_v37 = vsel %vm1975_vm8, %v1963_v24, %v1987_v23  ;;  %v1875_v16 = vpop.f32.mrb[5].mxu1 }
 0x280   : > { %v6841_v27 = vsel %vm514_vm0, %v2230_v19, %v2233_v28  ;;  %v6844_v33 = vsel %vm514_vm0, %v2233_v28, %v2266_v31  ;;  %v2235_v2 = vrot.slane %v1999_v37, 7  ;;  %v2267_v5 = vrot.slane %v1999_v37, 5  ;;  %v1877_v25 = vpop.f32.mrb[6].mxu1 }
 0x281   : > { %v2309_v39 = vrot.slane %v6841_v27, 1  ;;  %v2317_v45 = vrot.slane %v6844_v33, 1  ;;  %v3325_v48 = vrot.slane %v6841_v27, 2  ;;  %v3333_v42 = vrot.slane %v6844_v33, 2  ;;  %v1879_v10 = vpop.f32.mrb[7].mxu1 }
 0x282   : > { %v6851_v49 = vsel %vm514_vm0, %v2231_v21, %v2235_v2  ;;  %v1965_v47 = vadd.f32 %v1947_v62, %v1873_v38  ;;  %v1966_v52 = vadd.f32 %v1951_v63, %v1875_v16  ;;  %v1968_v53 = vadd.f32 %v1947_v62, %v1877_v25  ;;  %v6006_v16 = vld [vmem:[%s6482_s26 + $0xc8] ss:$12 sps:$4 sm:$0xff]  }
 0x283   : > { %v1969_v54 = vadd.f32 %v1951_v63, %v1879_v10  ;;  %v6854_v55 = vsel %vm514_vm0, %v2235_v2, %v2267_v5  ;;  %v2311_v56 = vrot.slane %v6838_v36, 1  ;;  %v2312_v57 = vrot.slane %v6851_v49, 1 }
 0x284   : > { %vm1977_vm9 = vcmp.ge.f32.partialorder %v1965_v47, 0.0  ;;  %v1989_v58 = vmul.f32 0.2, %v1965_v47  ;;  %vm1978_vm10 = vcmp.ge.f32.partialorder %v1966_v52, 0.0  ;;  %v1990_v60 = vmul.f32 0.2, %v1966_v52 }
 0x285   : > { %vm1980_vm11 = vcmp.ge.f32.partialorder %v1968_v53, 0.0  ;;  %v1992_v1 = vmul.f32 0.2, %v1968_v53  ;;  %vm1981_vm12 = vcmp.ge.f32.partialorder %v1969_v54, 0.0  ;;  %v1993_v3 = vmul.f32 0.2, %v1969_v54 }
 0x286   : > { %v2001_v6 = vsel %vm1977_vm9, %v1965_v47, %v1989_v58  ;;  %v2002_v4 = vsel %vm1978_vm10, %v1966_v52, %v1990_v60  ;;  %v2313_v62 = vsel %vm541_vm1, %v2311_v56, %v2312_v57  ;;  %v2319_v63 = vrot.slane %v6854_v55, 1 }
 0x287   : > { %v2215_v8 = vrot.slane %v2001_v6, 1  ;;  %v2239_v9 = vrot.slane %v2001_v6, 7  ;;  %v2216_v11 = vrot.slane %v2002_v4, 1  ;;  %v2240_v12 = vrot.slane %v2002_v4, 7 }
 0x288   : > { %v2004_v13 = vsel %vm1980_vm11, %v1968_v53, %v1992_v1  ;;  %v2005_v14 = vsel %vm1981_vm12, %v1969_v54, %v1993_v3  ;;  %v2320_v24 = vsel %vm541_vm1, %v2312_v57, %v2319_v63  ;;  %v2310_v15 = vsel %vm541_vm1, %v2308_v32, %v2309_v39  ;;  %v6005_v32 = vld [vmem:[%s6482_s26 + $0x4] ss:$12 sps:$4 sm:$0xff]  }
 0x289   : > { %v6863_v17 = vsel %vm514_vm0, %v2215_v8, %v2239_v9  ;;  %v2282_v18 = vsel %vm514_vm0, %v2216_v11, %v2240_v12  ;;  %v2242_v19 = vrot.slane %v2004_v13, 7  ;;  %v2269_v20 = vrot.slane %v2004_v13, 5 }
 0x28a   : > { %v2244_v30 = vrot.slane %v2005_v14, 7  ;;  %v2270_v21 = vrot.slane %v2005_v14, 5  ;;  %v2351_v22 = vpack.c.bf16 %v2320_v24, %v2313_v62  ;;  %v2318_v23 = vsel %vm541_vm1, %v2309_v39, %v2317_v45 }
 0x28b   : > { %v2243_v28 = vsel %vm514_vm0, %v2239_v9, %v2242_v19  ;;  %v2350_v31 = vpack.c.bf16 %v2318_v23, %v2310_v15  ;;  %v2326_v38 = vrot.slane %v2282_v18, 1  ;;  %v2287_v37 = vsel %vm514_vm0, %v2242_v19, %v2269_v20  ;;  %v6003_v15 = vld [vmem:[%s6482_s26] ss:$12 sps:$4 sm:$0xff]   ;;  %v6008_v20 = vld [vmem:[%s6482_s26 + $0x18] ss:$12 sps:$4 sm:$0xff]  }
 0x28c   : > { %v2245_v2 = vsel %vm514_vm0, %v2240_v12, %v2244_v30  ;;  %2669 = vmatprep.mubr.bf16.mxu0 %v2351_v22  ;;  %2775 = vmatprep.mubr.bf16.mxu1 %v2351_v22  ;;  %v2288_v5 = vsel %vm514_vm0, %v2244_v30, %v2270_v21  ;;  %v2323_v25 = vrot.slane %v6863_v17, 1  ;;  %v2324_v10 = vrot.slane %v2243_v28, 1  ;;  %v6011_v19 = vld [vmem:[%s6482_s26 + $0xe0] ss:$12 sps:$4 sm:$0xff]   ;;  %v6016_v22 = vld [vmem:[%s6482_s26 + $0xf8] ss:$12 sps:$4 sm:$0xff]  }
 0x28d   : > { %2670 = vmatmul.mubr.bf16.vlgmr.msra.gmra.mrb[24].mxu0 %v2350_v31  ;;  %2776 = vmatmul.mubr.bf16.vlgmr.msra.gmra.mrb[16].mxu1 %v2350_v31  ;;  %v2327_v39 = vrot.slane %v2245_v2, 1  ;;  %v2334_v45 = vrot.slane %v2288_v5, 1  ;;  %v2332_v47 = vrot.slane %v2287_v37, 1  ;;  %v6876_v52 = vpack.c.bf16 %v6851_v49, %v6838_v36  ;;  %v6012_v30 = vld [vmem:[%s6482_s26 + $0x20] ss:$12 sps:$4 sm:$0xff]  }
 0x28e   : > { %2691 = vmatpush1.bf16.msra.mxu0 %v6826_v46  ;;  %v2325_v53 = vsel %vm541_vm1, %v2323_v25, %v2324_v10  ;;  %5595 = vmatpush3.bf16.msra.mxu1 %v6833_v7  ;;  %v6883_v54 = vpack.c.bf16 %v6841_v27, %v6829_v26  ;;  %v6885_v56 = vpack.c.bf16 %v2245_v2, %v2282_v18  ;;  %v3327_v57 = vrot.slane %v6838_v36, 2  ;;  %v6015_v21 = vld [vmem:[%s6482_s26 + $0x34] ss:$12 sps:$4 sm:$0xff]   ;;  %v6017_v23 = vld [vmem:[%s6482_s26 + $0x38] ss:$12 sps:$4 sm:$0xff]  }
 0x28f   : > { %v2328_v58 = vsel %vm541_vm1, %v2326_v38, %v2327_v39  ;;  %v2335_v60 = vsel %vm541_vm1, %v2327_v39, %v2334_v45  ;;  %v2333_v1 = vsel %vm541_vm1, %v2324_v10, %v2332_v47  ;;  %3120 = vmatprep.subr.bf16.mxu0 %v6005_v32  ;;  %5439 = vmatprep.subr.bf16.mxu1 %v6006_v16  ;;  %v3328_v46 = vrot.slane %v6851_v49, 2  ;;  %v6021_v31 = vld [vmem:[%s6482_s26 + $0x110] ss:$12 sps:$4 sm:$0xff]   ;;  %v6018_v38 = vld [vmem:[%s6482_s26 + $0x48] ss:$12 sps:$4 sm:$0xff]  }
 0x290   : > { %v2354_v3 = vpack.c.bf16 %v2335_v60, %v2328_v58  ;;  %v2353_v7 = vpack.c.bf16 %v2333_v1, %v2325_v53  ;;  %v6893_v6 = vpack.c.bf16 %v2243_v28, %v6863_v17  ;;  %v3335_v4 = vrot.slane %v6854_v55, 2  ;;  %v6025_v32 = vld [vmem:[%s6482_s26 + $0x64] ss:$12 sps:$4 sm:$0xff]   ;;  %v6026_v16 = vld [vmem:[%s6482_s26 + $0x128] ss:$12 sps:$4 sm:$0xff]  }
 0x291   : > { %v3329_v62 = vsel %vm603_vm2, %v3327_v57, %v3328_v46  ;;  %v3326_v36 = vsel %vm603_vm2, %v3324_v35, %v3325_v48  ;;  %v3334_v49 = vsel %vm603_vm2, %v3325_v48, %v3333_v42  ;;  %v3342_v63 = vrot.slane %v2282_v18, 2  ;;  %v6010_v18 = vld [vmem:[%s6482_s26 + $0x1c] ss:$12 sps:$4 sm:$0xff]   ;;  %v6031_v25 = vld [vmem:[%s6482_s26 + $0x140] ss:$12 sps:$4 sm:$0xff]  }
 0x292   : > { %2679 = vmatprep.mubr.bf16.mxu0 %v2354_v3  ;;  %2783 = vmatprep.mubr.bf16.mxu1 %v2354_v3  ;;  %v3336_v8 = vsel %vm603_vm2, %v3328_v46, %v3335_v4  ;;  %v6908_v55 = vpack.c.bf16 %v3334_v49, %v3326_v36  ;;  %v3343_v9 = vrot.slane %v2245_v2, 2  ;;  %v3350_v11 = vrot.slane %v2288_v5, 2  ;;  %v6023_v2 = vld [vmem:[%s6482_s26 + $0x60] ss:$12 sps:$4 sm:$0xff]   ;;  %v6030_v5 = vld [vmem:[%s6482_s26 + $0x7c] ss:$12 sps:$4 sm:$0xff]  }
 0x293   : > { %v6910_v26 = vpack.c.bf16 %v3336_v8, %v3329_v62  ;;  %v3339_v35 = vrot.slane %v6863_v17, 2  ;;  %v3340_v27 = vrot.slane %v2243_v28, 2  ;;  %v3348_v33 = vrot.slane %v2287_v37, 2  ;;  %v6007_v17 = vld [vmem:[%s6482_s26 + $0x8] ss:$12 sps:$4 sm:$0xff]  }
 0x294   : > { %v3344_v48 = vsel %vm603_vm2, %v3342_v63, %v3343_v9  ;;  %v3351_v42 = vsel %vm603_vm2, %v3343_v9, %v3350_v11  ;;  %v6020_v28 = vld [vmem:[%s6482_s26 + $0x4c] ss:$12 sps:$4 sm:$0xff]   ;;  %v6022_v37 = vld [vmem:[%s6482_s26 + $0x50] ss:$12 sps:$4 sm:$0xff]   ;;  %v6035_v45 = vld [vmem:[%s6482_s26 + $0x94] ss:$12 sps:$4 sm:$0xff]  }
 0x295   : > { %2680 = vmatmul.mubr.bf16.gmra.mrb[28].mxu0 %v2353_v7  ;;  %2784 = vmatmul.mubr.bf16.gmra.mrb[20].mxu1 %v2353_v7  ;;  %v6915_v12 = vpack.c.bf16 %v3351_v42, %v3344_v48  ;;  %v3341_v13 = vsel %vm603_vm2, %v3339_v35, %v3340_v27  ;;  %v3349_v14 = vsel %vm603_vm2, %v3340_v27, %v3348_v33  ;;  %v6028_v10 = vld [vmem:[%s6482_s26 + $0x78] ss:$12 sps:$4 sm:$0xff]   ;;  %v6032_v39 = vld [vmem:[%s6482_s26 + $0x80] ss:$12 sps:$4 sm:$0xff]   ;;  %v6041_v58 = vld [vmem:[%s6482_s26 + $0x170] ss:$12 sps:$4 sm:$0xff]  }
 0x296   : > { %5596 = vmatprep.mubr.msk.bf16.mxu1 %vm2620_vm14, %v6801_v34  ;;  %2722 = vmatprep.mubr.bf16.mxu0 %v6252_v0  ;;  %v6922_v24 = vpack.c.bf16 %v3349_v14, %v3341_v13  ;;  %v6036_v47 = vld [vmem:[%s6482_s26 + $0x158] ss:$12 sps:$4 sm:$0xff]   ;;  %v6038_v60 = vld [vmem:[%s6482_s26 + $0xa8] ss:$12 sps:$4 sm:$0xff]   ;;  %v6042_v1 = vld [vmem:[%s6482_s26 + $0xb0] ss:$12 sps:$4 sm:$0xff]  }
 0x297   : > { %v6037_v53 = vld [vmem:[%s6482_s26 + $0x98] ss:$12 sps:$4 sm:$0xff]   ;;  %v6052_v3 = vld [vmem:[%s6482_s26 + $0x188] ss:$0 sps:$4 sm:$0x33]  }
 0x298   : > { %v6040_v57 = vld [vmem:[%s6482_s26 + $0xac] ss:$12 sps:$4 sm:$0xff]   ;;  %v6045_v46 = vld [vmem:[%s6482_s26 + $0xc4] ss:$12 sps:$4 sm:$0xff]   ;;  %v6048_v4 = vld [vmem:[%s6482_s26 + $0xdc] ss:$12 sps:$4 sm:$0xff]  }
 0x299   : > { %v6043_v7 = vld [vmem:[%s6482_s26 + $0xc0] ss:$12 sps:$4 sm:$0xff]   ;;  %v3118_v62 = vsel %vm2627_vm13, %v6052_v3, 0  ;;  %v6046_v49 = vld [vmem:[%s6482_s26 + $0xd8] ss:$12 sps:$4 sm:$0xff]  }
 0x29a   : > { %v6056_v36 = vld [vmem:[%s6482_s26 + $0x3e0] ss:$12 sps:$4 sm:$0xff]   ;;  %v6049_v8 = vld [vmem:[%s6482_s26 + $0xf0] ss:$12 sps:$4 sm:$0xff]   ;;  %v6053_v11 = vld [vmem:[%s6482_s26 + $0x108] ss:$12 sps:$4 sm:$0xff]  }
 0x29b   : > { %v6051_v63 = vld [vmem:[%s6482_s26 + $0xf4] ss:$12 sps:$4 sm:$0xff]   ;;  %v6055_v9 = vld [vmem:[%s6482_s26 + $0x10c] ss:$12 sps:$4 sm:$0xff]   ;;  %v6059_v35 = vld [vmem:[%s6482_s26 + $0x124] ss:$12 sps:$4 sm:$0xff]  }
 0x29c   : > { %v6057_v27 = vld [vmem:[%s6482_s26 + $0x120] ss:$12 sps:$4 sm:$0xff]   ;;  %v6061_v48 = vld [vmem:[%s6482_s26 + $0x3f8] ss:$12 sps:$4 sm:$0xff]   ;;  %v6064_v42 = vld [vmem:[%s6482_s26 + $0x13c] ss:$12 sps:$4 sm:$0xff]  }
 0x29d   : > { %5227 = vmatmul.mubr.msk.bf16.vlgmr.msra.gmra.mrb[24].mxu0 %vm2620_vm14, %v6801_v34  ;;  %5597 = vmatmul.mubr.msk.bf16.vlgmr.msra.gmra.mrb[24].mxu1 %vm2620_vm14, %v6814_v59  ;;  %v6013_v34 = vld [vmem:[%s6482_s26 + $0x30] ss:$12 sps:$4 sm:$0xff]   ;;  %v6060_v33 = vld [vmem:[%s6482_s26 + $0x320] ss:$12 sps:$4 sm:$0xff]   ;;  %v6062_v13 = vld [vmem:[%s6482_s26 + $0x138] ss:$12 sps:$4 sm:$0xff]  }
 0x29e   : > { %3121 = vmatpush1.bf16.msra.mxu0 %v6003_v15  ;;  %5440 = vmatpush3.bf16.msra.mxu1 %v6007_v17  ;;  %v6065_v14 = vld [vmem:[%s6482_s26 + $0x338] ss:$12 sps:$4 sm:$0xff]   ;;  %v6066_v15 = vld [vmem:[%s6482_s26 + $0x410] ss:$12 sps:$4 sm:$0xff]   ;;  %v6069_v17 = vld [vmem:[%s6482_s26 + $0x154] ss:$12 sps:$4 sm:$0xff]  }
 0x29f   : > { %3258 = vmatprep.mubr.bf16.mxu1 %v6876_v52  ;;  %3122 = vmatprep.subr.bf16.mxu0 %v6010_v18  ;;  %v6067_v18 = vld [vmem:[%s6482_s26 + $0x150] ss:$12 sps:$4 sm:$0xff]  }
 0x2a0   : > { %5441 = vmatprep.subr.bf16.mxu1 %v6011_v19  ;;  %2732 = vmatprep.mubr.bf16.mxu0 %v6252_v0  ;;  %v6070_v19 = vld [vmem:[%s6482_s26 + $0x350] ss:$12 sps:$4 sm:$0xff]  }
 0x2a2   : > { %3123 = vmatpush1.bf16.msra.mxu0 %v6008_v20  ;;  %5442 = vmatpush3.bf16.msra.mxu1 %v6012_v30  ;;  %v6071_v20 = vld [vmem:[%s6482_s26 + $0x428] ss:$12 sps:$4 sm:$0xff]   ;;  %v6074_v30 = vld [vmem:[%s6482_s26 + $0x16c] ss:$12 sps:$4 sm:$0xff]  }
 0x2a3   : > { %3124 = vmatprep.subr.bf16.mxu0 %v6015_v21  ;;  %5443 = vmatprep.subr.bf16.mxu1 %v6016_v22  ;;  %v2071_v21 = vld [vmem:[%s6482_s26 + $0x180] sm:$0x33]  ;;  %v6072_v22 = vld [vmem:[%s6482_s26 + $0x168] ss:$12 sps:$4 sm:$0xff]  }
 0x2a5   : > { %5228 = vmatmul.mubr.msk.bf16.gmra.mrb[28].mxu0 %vm2620_vm14, %v6814_v59  ;;  %v6027_v59 = vld [vmem:[%s6482_s26 + $0x68] ss:$12 sps:$4 sm:$0xff]  }
 0x2a6   : > { %3125 = vmatpush1.bf16.msra.mxu0 %v6013_v34  ;;  %5444 = vmatpush3.bf16.msra.mxu1 %v6017_v23  ;;  %v6075_v34 = vld [vmem:[%s6482_s26 + $0x368] ss:$12 sps:$4 sm:$0xff]   ;;  %v6076_v23 = vld [vmem:[%s6482_s26 + $0x440] ss:$12 sps:$4 sm:$0xff]  }
 0x2a7   : > { %3152 = vmatprep.mubr.bf16.mxu0 %v6876_v52  ;;  %3126 = vmatprep.subr.bf16.mxu0 %v6020_v28  ;;  %v6033_v52 = vld [vmem:[%s6482_s26 + $0x90] ss:$12 sps:$4 sm:$0xff]   ;;  %v5280_v28 = vcombine.high %v2071_v21, %v2071_v21 }
 0x2a8   : > { %5445 = vmatprep.subr.bf16.mxu1 %v6021_v31  ;;  %v5279_v31 = vcombine.low %v2071_v21, %v2071_v21 }
 0x2aa   : > { %3127 = vmatpush1.bf16.msra.mxu0 %v6018_v38  ;;  %5446 = vmatpush3.bf16.msra.mxu1 %v6022_v37  ;;  %v6078_v38 = vld [vmem:[%s6482_s26 + $0x380] ss:$12 sps:$4 sm:$0xff]   ;;  %v6080_v37 = vld [vmem:[%s6482_s26 + $0x458] ss:$12 sps:$4 sm:$0xff]  }
 0x2ab   : > { %3128 = vmatprep.subr.bf16.mxu0 %v6025_v32  ;;  %5447 = vmatprep.subr.bf16.mxu1 %v6026_v16  ;;  %v3112_v32 = vsel %vm2627_vm13, %v5279_v31, 0  ;;  %v6088_v16 = vld [vmem:[%s6482_s26 + $0x31c] ss:$12 sps:$4 sm:$0xff]   ;;  %v6145_v31 = vld [vmem:[%s6497_s14 + $0xd4] sm:$0xff]  }
 0x2ae   : > { %3129 = vmatpush1.bf16.msra.mxu0 %v6023_v2  ;;  %5448 = vmatpush3.bf16.msra.mxu1 %v6027_v59  ;;  %v6081_v2 = vld [vmem:[%s6482_s26 + $0x398] ss:$12 sps:$4 sm:$0xff]   ;;  %v6082_v59 = vld [vmem:[%s6482_s26 + $0x470] ss:$12 sps:$4 sm:$0xff]  }
 0x2af   : > { %3130 = vmatprep.subr.bf16.mxu0 %v6030_v5  ;;  %5449 = vmatprep.subr.bf16.mxu1 %v6031_v25  ;;  %v6083_v5 = vld [vmem:[%s6482_s26 + $0x3b0] ss:$12 sps:$4 sm:$0xff]   ;;  %v6084_v25 = vld [vmem:[%s6482_s26 + $0x488] ss:$12 sps:$4 sm:$0xff]  }
 0x2b2   : > { %3131 = vmatpush1.bf16.msra.mxu0 %v6028_v10  ;;  %5450 = vmatpush3.bf16.msra.mxu1 %v6032_v39  ;;  %v6086_v10 = vld [vmem:[%s6482_s26 + $0x318] ss:$12 sps:$4 sm:$0xff]   ;;  %v6091_v39 = vld [vmem:[%s6482_s26 + $0x334] ss:$12 sps:$4 sm:$0xff]  }
 0x2b3   : > { %3132 = vmatprep.subr.bf16.mxu0 %v6035_v45  ;;  %5451 = vmatprep.subr.bf16.mxu1 %v6036_v47  ;;  %v6089_v45 = vld [vmem:[%s6482_s26 + $0x330] ss:$12 sps:$4 sm:$0xff]   ;;  %v6094_v47 = vld [vmem:[%s6482_s26 + $0x34c] ss:$12 sps:$4 sm:$0xff]  }
 0x2b6   : > { %3133 = vmatpush1.bf16.msra.mxu0 %v6033_v52  ;;  %5452 = vmatpush3.bf16.msra.mxu1 %v6037_v53  ;;  %v6092_v52 = vld [vmem:[%s6482_s26 + $0x348] ss:$12 sps:$4 sm:$0xff]   ;;  %v6095_v53 = vld [vmem:[%s6482_s26 + $0x360] ss:$12 sps:$4 sm:$0xff]  }
 0x2b7   : > { %3134 = vmatprep.subr.bf16.mxu0 %v6040_v57  ;;  %5453 = vmatprep.subr.bf16.mxu1 %v6041_v58  ;;  %v6101_v57 = vld [vmem:[%s6482_s26 + $0x37c] ss:$12 sps:$4 sm:$0xff]   ;;  %v6099_v58 = vld [vmem:[%s6482_s26 + $0x378] ss:$12 sps:$4 sm:$0xff]  }
 0x2ba   : > { %3135 = vmatpush1.bf16.msra.mxu0 %v6038_v60  ;;  %5454 = vmatpush3.bf16.msra.mxu1 %v6042_v1  ;;  %v6104_v60 = vld [vmem:[%s6482_s26 + $0x394] ss:$12 sps:$4 sm:$0xff]   ;;  %v6107_v1 = vld [vmem:[%s6482_s26 + $0x3ac] ss:$12 sps:$4 sm:$0xff]  }
 0x2bb   : > { %3136 = vmatprep.subr.bf16.mxu0 %v6045_v46  ;;  %5743 = vmatprep.subr.msk.bf16.mxu1 %vm2627_vm13, %v6052_v3  ;;  %v6110_v46 = vld [vmem:[%s6482_s26 + $0x3c4] ss:$12 sps:$4 sm:$0xff]   ;;  %v6108_v3 = vld [vmem:[%s6482_s26 + $0x3c0] ss:$12 sps:$4 sm:$0xff]  }
 0x2bd   : > { %3259 = vmatmul.mubr.bf16.vlgmr.msra.gmra.mrb[28].mxu1 %v6883_v54 }
 0x2be   : > { %3137 = vmatpush1.bf16.msra.mxu0 %v6043_v7  ;;  %3266 = vmatprep.mubr.bf16.mxu1 %v6885_v56  ;;  %v6113_v7 = vld [vmem:[%s6482_s26 + $0x3dc] ss:$12 sps:$4 sm:$0xff]  }
 0x2bf   : > { %3138 = vmatprep.subr.bf16.mxu0 %v6048_v4  ;;  %5601 = vmatpush3.bf16.msra.mxu1 %v3118_v62  ;;  %v6111_v4 = vld [vmem:[%s6482_s26 + $0x3d8] ss:$12 sps:$4 sm:$0xff]   ;;  %v6116_v62 = vld [vmem:[%s6482_s26 + $0x3f4] ss:$12 sps:$4 sm:$0xff]  }
 0x2c0   : > { %5470 = vmatprep.subr.bf16.mxu1 %v6056_v36  ;;  %v6114_v36 = vld [vmem:[%s6482_s26 + $0x3f0] ss:$12 sps:$4 sm:$0xff]  }
 0x2c2   : > { %3139 = vmatpush1.bf16.msra.mxu0 %v6046_v49  ;;  %v6119_v49 = vld [vmem:[%s6482_s26 + $0x40c] ss:$12 sps:$4 sm:$0xff]  }
 0x2c3   : > { %3140 = vmatprep.subr.bf16.mxu0 %v6051_v63  ;;  %v6117_v63 = vld [vmem:[%s6482_s26 + $0x408] ss:$12 sps:$4 sm:$0xff]  }
 0x2c5   : > { %3267 = vmatmul.mubr.bf16.gmra.mrb[32].mxu1 %v6893_v6 }
 0x2c6   : > { %3141 = vmatpush1.bf16.msra.mxu0 %v6049_v8  ;;  %5602 = vmatprep.mubr.msk.bf16.mxu1 %vm2620_vm14, %v6796_v29  ;;  %v6122_v8 = vld [vmem:[%s6482_s26 + $0x424] ss:$12 sps:$4 sm:$0xff]  }
 0x2c7   : > { %3142 = vmatprep.subr.bf16.mxu0 %v6055_v9  ;;  %v6120_v9 = vld [vmem:[%s6482_s26 + $0x420] ss:$12 sps:$4 sm:$0xff]  }
 0x2ca   : > { %3143 = vmatpush1.bf16.msra.mxu0 %v6053_v11  ;;  %v6125_v11 = vld [vmem:[%s6482_s26 + $0x43c] ss:$12 sps:$4 sm:$0xff]  }
 0x2cb   : > { %3144 = vmatprep.subr.bf16.mxu0 %v6059_v35  ;;  %v6123_v35 = vld [vmem:[%s6482_s26 + $0x438] ss:$12 sps:$4 sm:$0xff]  }
 0x2cd   : > { %5603 = vmatmul.mubr.msk.bf16.vlgmr.msra.gmra.mrb[24].mxu1 %vm2620_vm14, %v6809_v51 }
 0x2ce   : > { %5471 = vmatpush3.bf16.msra.mxu1 %v6060_v33  ;;  %3145 = vmatpush1.bf16.msra.mxu0 %v6057_v27  ;;  %v6128_v27 = vld [vmem:[%s6482_s26 + $0x454] ss:$12 sps:$4 sm:$0xff]   ;;  %v6126_v33 = vld [vmem:[%s6482_s26 + $0x450] ss:$12 sps:$4 sm:$0xff]  }
 0x2cf   : > { %3789 = vmatprep.mubr.bf16.mxu1 %v6910_v26  ;;  %5472 = vmatprep.subr.bf16.mxu1 %v6061_v48  ;;  %v6131_v48 = vld [vmem:[%s6482_s26 + $0x46c] ss:$12 sps:$4 sm:$0xff]  }
 0x2d0   : > { %3146 = vmatprep.subr.bf16.mxu0 %v6064_v42  ;;  %v6129_v42 = vld [vmem:[%s6482_s26 + $0x468] ss:$12 sps:$4 sm:$0xff]  }
 0x2d2   : > { %5473 = vmatpush3.bf16.msra.mxu1 %v6065_v14  ;;  %3147 = vmatpush1.bf16.msra.mxu0 %v6062_v13  ;;  %v6134_v13 = vld [vmem:[%s6482_s26 + $0x484] ss:$12 sps:$4 sm:$0xff]   ;;  %v2203_v14 = vld [vmem:[%s6482_s26 + $0x498] sm:$0x33] }
 0x2d3   : > { %5474 = vmatprep.subr.bf16.mxu1 %v6066_v15  ;;  %3148 = vmatprep.subr.bf16.mxu0 %v6069_v17  ;;  %v6132_v15 = vld [vmem:[%s6482_s26 + $0x480] ss:$12 sps:$4 sm:$0xff]   ;;  %v5336_v17 = vcombine.high %v2203_v14, %v2203_v14 }
 0x2d6   : > { %5475 = vmatpush3.bf16.msra.mxu1 %v6070_v19  ;;  %3149 = vmatpush1.bf16.msra.mxu0 %v6067_v18  ;;  %v5335_v18 = vcombine.low %v2203_v14, %v2203_v14  ;;  %v6164_v14 = vld [vmem:[%s6497_s14 + $0x138] sm:$0xff]  }
 0x2d7   : > { %5476 = vmatprep.subr.bf16.mxu1 %v6071_v20  ;;  %3150 = vmatprep.subr.bf16.mxu0 %v6074_v30  ;;  %v6137_v20 = vld [vmem:[%s6497_s14 + $0xc4] sm:$0xff]  }
 0x2d8   : > { %v3643_v19 = vsel %vm2627_vm13, %v5335_v18, 0  ;;  %v6138_v30 = vld [vmem:[%s6497_s14 + $0x148] sm:$0xff]   ;;  %v6167_v18 = vld [vmem:[%s6497_s14 + $0xbc] sm:$0xff]  }
 0x2da   : > { %5477 = vmatpush3.bf16.msra.mxu1 %v6075_v34  ;;  %3151 = vmatpush1.bf16.msra.mxu0 %v6072_v22  ;;  %v6142_v22 = vld [vmem:[%s6497_s14 + $0x150] sm:$0xff]  }
 0x2db   : > { %5478 = vmatprep.subr.bf16.mxu1 %v6076_v23  ;;  %5282 = vmatprep.subr.msk.bf16.mxu0 %vm2627_vm13, %v5280_v28  ;;  %v6144_v23 = vld [vmem:[%s6497_s14 + $0x110] sm:$0xff]  }
 0x2dd   : > { %3153 = vmatmul.mubr.bf16.vlgmr.msra.gmra.mrb[24].mxu0 %v6883_v54  ;;  %v6085_v54 = vld [vmem:[%s6482_s26 + $0x3c8] ss:$12 sps:$4 sm:$0xff]  }
 0x2de   : > { %5479 = vmatpush3.bf16.msra.mxu1 %v6078_v38  ;;  %3162 = vmatprep.mubr.bf16.mxu0 %v6885_v56  ;;  %v6098_v56 = vld [vmem:[%s6482_s26 + $0x4a0] ss:$0 sps:$4 sm:$0x33]   ;;  %v6146_v38 = vld [vmem:[%s6497_s14 + $0x158] sm:$0xff]  }
 0x2df   : > { %3174 = vmatpush1.bf16.msra.mxu0 %v3112_v32  ;;  %5480 = vmatprep.subr.bf16.mxu1 %v6080_v37  ;;  %v6147_v32 = vld [vmem:[%s6497_s14 + $0x94] sm:$0xff]  }
 0x2e0   : > { %3651 = vmatprep.subr.bf16.mxu0 %v6088_v16  ;;  %v6148_v16 = vld [vmem:[%s6497_s14 + $0x118] sm:$0xff]  }
 0x2e2   : > { %5481 = vmatpush3.bf16.msra.mxu1 %v6081_v2  ;;  %v6149_v2 = vld [vmem:[%s6497_s14 + $0xdc] sm:$0xff]  }
 0x2e3   : > { %5482 = vmatprep.subr.bf16.mxu1 %v6082_v59  ;;  %v6150_v59 = vld [vmem:[%s6497_s14 + $0x160] sm:$0xff]  }
 0x2e5   : > { %3163 = vmatmul.mubr.bf16.gmra.mrb[28].mxu0 %v6893_v6  ;;  %v3649_v6 = vsel %vm2627_vm13, %v6098_v56, 0 }
 0x2e6   : > { %5483 = vmatpush3.bf16.msra.mxu1 %v6083_v5  ;;  %3205 = vmatprep.mubr.bf16.mxu0 %v6252_v0 }
 0x2e7   : > { %5484 = vmatprep.subr.bf16.mxu1 %v6084_v25 }
 0x2ea   : > { %5485 = vmatpush3.bf16.msra.mxu1 %v6085_v54 }
 0x2eb   : > { %5744 = vmatprep.subr.msk.bf16.mxu1 %vm2627_vm13, %v6098_v56 }
 0x2ed   : > { %3790 = vmatmul.mubr.bf16.vlgmr.msra.gmra.mrb[36].mxu1 %v6908_v55  ;;  %5283 = vmatmul.mubr.msk.bf16.vlgmr.msra.gmra.mrb[24].mxu0 %vm2620_vm14, %v6796_v29  ;;  %v6097_v29 = vld [vmem:[%s6482_s26 + $0x364] ss:$12 sps:$4 sm:$0xff]  }
 0x2ee   : > { %3652 = vmatpush1.bf16.msra.mxu0 %v6086_v10  ;;  %3797 = vmatprep.mubr.bf16.mxu1 %v6915_v12  ;;  %v6151_v10 = vld [vmem:[%s6497_s14 + $0x9c] sm:$0xff]  }
 0x2ef   : > { %3653 = vmatprep.subr.bf16.mxu0 %v6091_v39  ;;  %3215 = vmatprep.mubr.bf16.mxu0 %v6252_v0  ;;  %v6152_v39 = vld [vmem:[%s6497_s14 + $0x120] sm:$0xff]  }
 0x2f0   : > { %5607 = vmatpush3.bf16.msra.mxu1 %v3649_v6 }
 0x2f1   : > { %5501 = vmatprep.subr.bf16.mxu1 %v6137_v20  ;;  %v7106_v20 = vld [vmem:[%s6497_s14 + $0x104] ss:$0 sps:$4 sm:$0x33]  }
 0x2f2   : > { %3654 = vmatpush1.bf16.msra.mxu0 %v6089_v45 }
 0x2f3   : > { %3655 = vmatprep.subr.bf16.mxu0 %v6094_v47 }
 0x2f5   : > { %3798 = vmatmul.mubr.bf16.gmra.mrb[40].mxu1 %v6922_v24  ;;  %5284 = vmatmul.mubr.msk.bf16.gmra.mrb[28].mxu0 %vm2620_vm14, %v6809_v51  ;;  %v6102_v51 = vld [vmem:[%s6482_s26 + $0x390] ss:$12 sps:$4 sm:$0xff]  }
 0x2f6   : > { %3656 = vmatpush1.bf16.msra.mxu0 %v6092_v52  ;;  %5608 = vmatprep.mubr.msk.bf16.mxu1 %vm2620_vm14, %v6807_v50 }
 0x2f7   : > { %3683 = vmatprep.mubr.bf16.mxu0 %v6910_v26  ;;  %3657 = vmatprep.subr.bf16.mxu0 %v6097_v29  ;;  %v6105_v26 = vld [vmem:[%s6482_s26 + $0x3a8] ss:$12 sps:$4 sm:$0xff]  }
 0x2fa   : > { %3658 = vmatpush1.bf16.msra.mxu0 %v6095_v53 }
 0x2fb   : > { %3659 = vmatprep.subr.bf16.mxu0 %v6101_v57 }
 0x2fd   : > { %5609 = vmatmul.mubr.msk.bf16.vlgmr.msra.gmra.mrb[24].mxu1 %vm2620_vm14, %v6817_v61 }
 0x2fe   : > { %3660 = vmatpush1.bf16.msra.mxu0 %v6099_v58 }
 0x2ff   : > { %3661 = vmatprep.subr.bf16.mxu0 %v6104_v60 }
 0x302   : > { %3662 = vmatpush1.bf16.msra.mxu0 %v6102_v51 }
 0x303   : > { %3663 = vmatprep.subr.bf16.mxu0 %v6107_v1  ;;  %v6153_v1 = vld [vmem:[%s6497_s14 + $0xe4] sm:$0xff]  }
 0x306   : > { %3664 = vmatpush1.bf16.msra.mxu0 %v6105_v26  ;;  %v6154_v26 = vld [vmem:[%s6497_s14 + $0x168] sm:$0xff]  }
 0x307   : > { %3665 = vmatprep.subr.bf16.mxu0 %v6110_v46 }
 0x30a   : > { %3666 = vmatpush1.bf16.msra.mxu0 %v6108_v3  ;;  %v6155_v3 = vld [vmem:[%s6497_s14 + $0xa4] sm:$0xff]  }
 0x30b   : > { %3667 = vmatprep.subr.bf16.mxu0 %v6113_v7  ;;  %v6156_v7 = vld [vmem:[%s6497_s14 + $0x128] sm:$0xff]  }
 0x30e   : > { %3668 = vmatpush1.bf16.msra.mxu0 %v6111_v4 }
 0x30f   : > { %3669 = vmatprep.subr.bf16.mxu0 %v6116_v62 }
 0x312   : > { %3670 = vmatpush1.bf16.msra.mxu0 %v6114_v36 }
 0x313   : > { %3671 = vmatprep.subr.bf16.mxu0 %v6119_v49 }
 0x316   : > { %3672 = vmatpush1.bf16.msra.mxu0 %v6117_v63  ;;  %v6157_v63 = vld [vmem:[%s6497_s14 + $0xec] sm:$0xff]  }
 0x317   : > { %3673 = vmatprep.subr.bf16.mxu0 %v6122_v8  ;;  %v6158_v8 = vld [vmem:[%s6497_s14 + $0x170] sm:$0xff]  }
 0x31a   : > { %3674 = vmatpush1.bf16.msra.mxu0 %v6120_v9 }
 0x31b   : > { %3675 = vmatprep.subr.bf16.mxu0 %v6125_v11 }
 0x31e   : > { %3676 = vmatpush1.bf16.msra.mxu0 %v6123_v35  ;;  %v6159_v35 = vld [vmem:[%s6497_s14 + $0xac] sm:$0xff]  }
 0x31f   : > { %3677 = vmatprep.subr.bf16.mxu0 %v6128_v27  ;;  %v6160_v27 = vld [vmem:[%s6497_s14 + $0x130] sm:$0xff]  }
 0x322   : > { %3678 = vmatpush1.bf16.msra.mxu0 %v6126_v33 }
 0x323   : > { %3679 = vmatprep.subr.bf16.mxu0 %v6131_v48  ;;  %v6161_v48 = vld [vmem:[%s6497_s14 + $0xf4] sm:$0xff]  }
 0x326   : > { %3680 = vmatpush1.bf16.msra.mxu0 %v6129_v42  ;;  %v6162_v42 = vld [vmem:[%s6497_s14 + $0x178] sm:$0xff]  }
 0x327   : > { %3681 = vmatprep.subr.bf16.mxu0 %v6134_v13  ;;  %v6163_v13 = vld [vmem:[%s6497_s14 + $0xb4] sm:$0xff]  }
 0x32a   : > { %3682 = vmatpush1.bf16.msra.mxu0 %v6132_v15  ;;  %v6165_v15 = vld [vmem:[%s6497_s14 + $0xfc] sm:$0xff]  }
 0x32b   : > { %5338 = vmatprep.subr.msk.bf16.mxu0 %vm2627_vm13, %v5336_v17  ;;  %v6166_v17 = vld [vmem:[%s6497_s14 + $0x180] sm:$0xff]  }
 0x32d   : > { %3684 = vmatmul.mubr.bf16.vlgmr.msra.gmra.mrb[24].mxu0 %v6908_v55  ;;  %v6139_v55 = vld [vmem:[%s6497_s14 + $0x84] sm:$0xff]  }
 0x32e   : > { %3693 = vmatprep.mubr.bf16.mxu0 %v6915_v12  ;;  %3705 = vmatpush1.bf16.msra.mxu0 %v3643_v19  ;;  %v6140_v12 = vld [vmem:[%s6497_s14 + $0x108] sm:$0xff]   ;;  %v6168_v19 = vld [vmem:[%s6497_s14 + $0x140] sm:$0xff]  }
 0x32f   : > { %5563 = vmatprep.subr.bf16.mxu0 %v6138_v30  ;;  %5502 = vmatpush3.bf16.msra.mxu1 %v6139_v55 }
 0x335   : > { %3694 = vmatmul.mubr.bf16.gmra.mrb[28].mxu0 %v6922_v24  ;;  %v6141_v24 = vld [vmem:[%s6497_s14 + $0xcc] sm:$0xff]  }
 0x336   : > { %3736 = vmatprep.mubr.bf16.mxu0 %v6252_v0  ;;  %5503 = vmatprep.subr.bf16.mxu1 %v6141_v24 }
 0x33d   : > { %5339 = vmatmul.mubr.msk.bf16.vlgmr.msra.gmra.mrb[24].mxu0 %vm2620_vm14, %v6807_v50 }
 0x33e   : > { %3746 = vmatprep.mubr.bf16.mxu0 %v6252_v0  ;;  %5564 = vmatpush3.bf16.msra.mxu0 %v6140_v12 }
 0x33f   : > { %5565 = vmatprep.subr.bf16.mxu0 %v6142_v22 }
 0x342   : > { %5566 = vmatpush3.bf16.msra.mxu0 %v6144_v23 }
 0x343   : > { %5567 = vmatprep.subr.bf16.mxu0 %v6146_v38 }
 0x345   : > { %5340 = vmatmul.mubr.msk.bf16.gmra.mrb[28].mxu0 %vm2620_vm14, %v6817_v61  ;;  %v6143_v61 = vld [vmem:[%s6497_s14 + $0x8c] sm:$0xff]  }
 0x346   : > { %5504 = vmatpush3.bf16.msra.mxu1 %v6143_v61  ;;  %5568 = vmatpush3.bf16.msra.mxu0 %v6148_v16 }
 0x347   : > { %5505 = vmatprep.subr.bf16.mxu1 %v6145_v31  ;;  %5569 = vmatprep.subr.bf16.mxu0 %v6150_v59 }
 0x34a   : > { %5506 = vmatpush3.bf16.msra.mxu1 %v6147_v32  ;;  %5570 = vmatpush3.bf16.msra.mxu0 %v6152_v39 }
 0x34b   : > { %5507 = vmatprep.subr.bf16.mxu1 %v6149_v2  ;;  %5571 = vmatprep.subr.bf16.mxu0 %v6154_v26 }
 0x34e   : > { %5508 = vmatpush3.bf16.msra.mxu1 %v6151_v10  ;;  %5572 = vmatpush3.bf16.msra.mxu0 %v6156_v7 }
 0x34f   : > { %5509 = vmatprep.subr.bf16.mxu1 %v6153_v1  ;;  %5573 = vmatprep.subr.bf16.mxu0 %v6158_v8 }
 0x352   : > { %5510 = vmatpush3.bf16.msra.mxu1 %v6155_v3  ;;  %5574 = vmatpush3.bf16.msra.mxu0 %v6160_v27 }
 0x353   : > { %5511 = vmatprep.subr.bf16.mxu1 %v6157_v63  ;;  %5575 = vmatprep.subr.bf16.mxu0 %v6162_v42 }
 0x356   : > { %5512 = vmatpush3.bf16.msra.mxu1 %v6159_v35  ;;  %5576 = vmatpush3.bf16.msra.mxu0 %v6164_v14 }
 0x357   : > { %5513 = vmatprep.subr.bf16.mxu1 %v6161_v48  ;;  %5577 = vmatprep.subr.bf16.mxu0 %v6166_v17 }
 0x35a   : > { %5514 = vmatpush3.bf16.msra.mxu1 %v6163_v13  ;;  %5578 = vmatpush3.bf16.msra.mxu0 %v6168_v19 }
 0x35b   : > { %5515 = vmatprep.subr.bf16.mxu1 %v6165_v15 }
 0x35e   : > { %5516 = vmatpush3.bf16.msra.mxu1 %v6167_v18 }
 0x35f   : > { %5745 = vmatprep.subr.msk.bf16.mxu1 %vm2627_vm13, %v7106_v20 }
 0x360   : > { %v5424_v21 = vpop.f32.mrb[16].mxu1 }
 0x361   : > { %v5425_v34 = vpop.f32.mrb[17].mxu1 }
 0x362   : > { %v5426_v0 = vadd.f32 %v5425_v34, %v5424_v21  ;;  %v5427_v50 = vpop.f32.mrb[18].mxu1 }
 0x363   : > { %v5428_v28 = vpop.f32.mrb[19].mxu1 }
 0x364   : > { %v5429_v37 = vadd.f32 %v5428_v28, %v5427_v50 }
 0x368   : > { %v5430_v5 = vpop.f32.mrb[20].mxu1 }
 0x369   : > { %v5431_v25 = vpop.f32.mrb[21].mxu1 }
 0x36a   : > { %v5432_v54 = vadd.f32 %v5431_v25, %v5430_v5  ;;  %v5433_v56 = vpop.f32.mrb[22].mxu1 }
 0x36b   : > { %v5434_v6 = vpop.f32.mrb[23].mxu1 }
 0x36c   : > { %v5435_v45 = vadd.f32 %v5434_v6, %v5433_v56 }
 0x390   : > { %v5455_v47 = vpop.f32.mrb[28].mxu1 }
 0x391   : > { %v5456_v52 = vpop.f32.mrb[29].mxu1 }
 0x392   : > { %v5457_v29 = vadd.f32 %v5456_v52, %v5455_v47  ;;  %v5458_v53 = vpop.f32.mrb[30].mxu1 }
 0x393   : > { %v5459_v57 = vpop.f32.mrb[31].mxu1 }
 0x394   : > { %v5633_v58 = vadd.f32 %v5457_v29, %v5426_v0  ;;  %v5460_v60 = vadd.f32 %v5459_v57, %v5458_v53 }
 0x396   : > { %v5639_v51 = vadd.f32 %v5460_v60, %v5429_v37  ;;  %v7115_v37 = vld [vmem:[%s467_s16] sm:$0x7] }
 0x397   : > { %v3879_v2 = vrot.slane %v7115_v37, %v1954_v44 }
 0x398   : > { %v5461_v46 = vpop.f32.mrb[32].mxu1 }
 0x399   : > { %v5462_v4 = vpop.f32.mrb[33].mxu1 }
 0x39a   : > { %v5463_v62 = vadd.f32 %v5462_v4, %v5461_v46  ;;  %v5464_v36 = vpop.f32.mrb[34].mxu1 }
 0x39b   : > { %v5465_v49 = vpop.f32.mrb[35].mxu1 }
 0x39c   : > { %v5630_v9 = vadd.f32 %v5463_v62, %v5432_v54  ;;  %v5466_v11 = vadd.f32 %v5465_v49, %v5464_v36 }
 0x39e   : > { %v5636_v33 = vadd.f32 %v5466_v11, %v5435_v45 }
 0x3c0   : > { %v5486_v30 = vpop.f32.mrb[36].mxu1 }
 0x3c1   : > { %v5487_v55 = vpop.f32.mrb[37].mxu1 }
 0x3c2   : > { %v5488_v21 = vadd.f32 %v5487_v55, %v5486_v30  ;;  %v5489_v12 = vpop.f32.mrb[38].mxu1 }
 0x3c3   : > { %v5490_v24 = vpop.f32.mrb[39].mxu1 }
 0x3c4   : > { %v5491_v22 = vadd.f32 %v5490_v24, %v5489_v12  ;;  %v5634_v34 = vadd.f32 %v5633_v58, %v5488_v21 }
 0x3c6   : > { %v5640_v0 = vadd.f32 %v5639_v51, %v5491_v22 }
 0x3c8   : > { %v5492_v50 = vpop.f32.mrb[40].mxu1 }
 0x3c9   : > { %v5493_v61 = vpop.f32.mrb[41].mxu1 }
 0x3ca   : > { %v5494_v23 = vadd.f32 %v5493_v61, %v5492_v50  ;;  %v5495_v28 = vpop.f32.mrb[42].mxu1 }
 0x3cb   : > { %v5496_v31 = vpop.f32.mrb[43].mxu1 }
 0x3cc   : > { %v5497_v38 = vadd.f32 %v5496_v31, %v5495_v28  ;;  %v5631_v32 = vadd.f32 %v5630_v9, %v5494_v23 }
 0x3ce   : > { %v5637_v16 = vadd.f32 %v5636_v33, %v5497_v38 }
 0x3d0   : > { %v5610_v59 = vpop.f32.mrb[24].mxu1 }
 0x3d1   : > { %v5632_v5 = vadd.f32 %v5631_v32, %v5610_v59  ;;  %v3840_v25 = vpop.f32.mrb[25].mxu1  ;;  %v3871_v59 = vrot.slane %v7115_v37, %v6523_v41 }
 0x3d2   : > { %v5635_v54 = vadd.f32 %v5634_v34, %v3840_v25  ;;  %v5611_v56 = vpop.f32.mrb[26].mxu1 }
 0x3d3   : > { %v3891_v10 = vadd.f32 %v5632_v5, %v3879_v2  ;;  %v5638_v39 = vadd.f32 %v5637_v16, %v5611_v56  ;;  %v3843_v6 = vpop.f32.mrb[27].mxu1  ;;  %v3875_v5 = vrot.slane %v7115_v37, %v6526_v43 }
 0x3d4   : > { %v3885_v45 = vadd.f32 %v5635_v54, %v3879_v2  ;;  %v5641_v47 = vadd.f32 %v5640_v0, %v3843_v6 }
 0x3d5   : > { %vm3903_vm15 = vcmp.ge.f32.partialorder %v3891_v10, 0.0  ;;  %v3915_v52 = vmul.f32 0.2, %v3891_v10  ;;  %v3894_v29 = vadd.f32 %v5638_v39, %v3879_v2 }
 0x3d6   : > { %vm3897_vm3 = vcmp.ge.f32.partialorder %v3885_v45, 0.0  ;;  %v3909_v53 = vmul.f32 0.2, %v3885_v45  ;;  %v3888_v57 = vadd.f32 %v5641_v47, %v3879_v2 }
 0x3d7   : > { %v3927_v58 = vsel %vm3903_vm15, %v3891_v10, %v3915_v52  ;;  %vm3906_vm4 = vcmp.ge.f32.partialorder %v3894_v29, 0.0  ;;  %v3918_v40 = vmul.f32 0.2, %v3894_v29 }
 0x3d8   : > { %v4042_v44 = vrot.slane %v3927_v58, 1  ;;  %v4066_v60 = vrot.slane %v3927_v58, 7  ;;  %v3921_v51 = vsel %vm3897_vm3, %v3885_v45, %v3909_v53  ;;  %vm3900_vm5 = vcmp.ge.f32.partialorder %v3888_v57, 0.0 }
 0x3d9   : > { %v4039_v1 = vrot.slane %v3921_v51, 1  ;;  %v4057_v26 = vrot.slane %v3921_v51, 7  ;;  %v3930_v46 = vsel %vm3906_vm4, %v3894_v29, %v3918_v40  ;;  %v3912_v3 = vmul.f32 0.2, %v3888_v57 }
 0x3da   : > { %v7121_v7 = vsel %vm514_vm0, %v4042_v44, %v4066_v60  ;;  %v4071_v4 = vrot.slane %v3930_v46, 7  ;;  %v4096_v62 = vrot.slane %v3930_v46, 5 }
 0x3db   : > { %v4154_v36 = vrot.slane %v7121_v7, 1  ;;  %v4614_v49 = vrot.slane %v7121_v7, 2  ;;  %v7126_v63 = vsel %vm514_vm0, %v4039_v1, %v4057_v26  ;;  %v3924_v8 = vsel %vm3900_vm5, %v3888_v57, %v3912_v3 }
 0x3dc   : > { %v7129_v9 = vsel %vm514_vm0, %v4066_v60, %v4071_v4  ;;  %v4114_v11 = vsel %vm514_vm0, %v4071_v4, %v4096_v62  ;;  %v4062_v35 = vrot.slane %v3924_v8, 7  ;;  %v4093_v27 = vrot.slane %v3924_v8, 5 }
 0x3dd   : > { %v4120_v33 = vpack.c.bf16 %v7129_v9, %v7121_v7  ;;  %v4155_v48 = vrot.slane %v7129_v9, 1  ;;  %v4161_v42 = vrot.slane %v4114_v11, 1  ;;  %v4615_v13 = vrot.slane %v7129_v9, 2 }
 0x3de   : > { %v4621_v14 = vrot.slane %v4114_v11, 2  ;;  %v7137_v15 = vsel %vm514_vm0, %v4057_v26, %v4062_v35  ;;  %v4111_v17 = vsel %vm514_vm0, %v4062_v35, %v4093_v27  ;;  %v4139_v18 = vrot.slane %v7126_v63, 1 }
 0x3df   : > { %v7142_v19 = vsel %vm541_vm1, %v4155_v48, %v4161_v42  ;;  %v4140_v30 = vrot.slane %v7137_v15, 1  ;;  %v4146_v55 = vrot.slane %v4111_v17, 1  ;;  %v7146_v21 = vsel %vm541_vm1, %v4154_v36, %v4155_v48 }
 0x3e0   : > { %v4180_v12 = vpack.c.bf16 %v7142_v19, %v7146_v21  ;;  %v4117_v24 = vpack.c.bf16 %v7137_v15, %v7126_v63  ;;  %v4599_v22 = vrot.slane %v7126_v63, 2  ;;  %v4600_v34 = vrot.slane %v7137_v15, 2  ;;  %v6178_v19 = vld [vmem:[%s6497_s14 + $0x60] sm:$0xff]  }
 0x3e1   : > { %v7155_v0 = vsel %vm541_vm1, %v4139_v18, %v4140_v30  ;;  %v7158_v50 = vsel %vm541_vm1, %v4140_v30, %v4146_v55  ;;  %v4606_v61 = vrot.slane %v4111_v17, 2  ;;  %v7161_v23 = vsel %vm603_vm2, %v4614_v49, %v4615_v13  ;;  %v6179_v21 = vld [vmem:[%s6497_s14 + $0x20] sm:$0xff]  }
 0x3e2   : > { %v4177_v28 = vpack.c.bf16 %v7158_v50, %v7155_v0  ;;  %v7166_v31 = vsel %vm603_vm2, %v4599_v22, %v4600_v34  ;;  %v7169_v38 = vsel %vm603_vm2, %v4615_v13, %v4621_v14  ;;  %v7187_v3 = vsel %vm2627_vm13, %v7106_v20, 0  ;;  %v6174_v0 = vld [vmem:[%s6497_s14 + $0x50] sm:$0xff]  }
 0x3e3   : > { %v7172_v32 = vsel %vm603_vm2, %v4600_v34, %v4606_v61  ;;  %v4640_v16 = vpack.c.bf16 %v7169_v38, %v7161_v23  ;;  %v6175_v50 = vld [vmem:[%s6497_s14 + $0x10] sm:$0xff]  }
 0x3e4   : > { %v4637_v2 = vpack.c.bf16 %v7172_v32, %v7166_v31 }
 0x410   : > { %v3738_v25 = vpop.f32.mrb[24].mxu0 }
 0x411   : > { %v3883_v54 = vadd.f32 %v3871_v59, %v3738_v25  ;;  %v3740_v56 = vpop.f32.mrb[25].mxu0 }
 0x412   : > { %v3884_v10 = vadd.f32 %v3875_v5, %v3740_v56  ;;  %v3742_v39 = vpop.f32.mrb[26].mxu0 }
 0x413   : > { %vm3895_vm6 = vcmp.ge.f32.partialorder %v3883_v54, 0.0  ;;  %v3907_v6 = vmul.f32 0.2, %v3883_v54  ;;  %v3886_v45 = vadd.f32 %v3871_v59, %v3742_v39  ;;  %v3744_v47 = vpop.f32.mrb[27].mxu0 }
 0x414   : > { %vm3896_vm7 = vcmp.ge.f32.partialorder %v3884_v10, 0.0  ;;  %v3908_v52 = vmul.f32 0.2, %v3884_v10  ;;  %v3887_v29 = vadd.f32 %v3875_v5, %v3744_v47 }
 0x415   : > { %v3919_v53 = vsel %vm3895_vm6, %v3883_v54, %v3907_v6  ;;  %vm3898_vm8 = vcmp.ge.f32.partialorder %v3886_v45, 0.0  ;;  %v3910_v57 = vmul.f32 0.2, %v3886_v45 }
 0x416   : > { %v4037_v58 = vrot.slane %v3919_v53, 1  ;;  %v4055_v41 = vrot.slane %v3919_v53, 7  ;;  %v3920_v40 = vsel %vm3896_vm7, %v3884_v10, %v3908_v52  ;;  %vm3899_vm9 = vcmp.ge.f32.partialorder %v3887_v29, 0.0 }
 0x417   : > { %v4038_v43 = vrot.slane %v3920_v40, 1  ;;  %v4056_v37 = vrot.slane %v3920_v40, 7  ;;  %v3922_v44 = vsel %vm3898_vm8, %v3886_v45, %v3910_v57  ;;  %v3911_v60 = vmul.f32 0.2, %v3887_v29 }
 0x418   : > { %v7183_v51 = vsel %vm514_vm0, %v4037_v58, %v4055_v41  ;;  %v4058_v1 = vrot.slane %v3922_v44, 7  ;;  %v4091_v26 = vrot.slane %v3922_v44, 5  ;;  %v3748_v46 = vpop.f32.mrb[28].mxu0 }
 0x419   : > { %v4133_v4 = vrot.slane %v7183_v51, 1  ;;  %v4593_v62 = vrot.slane %v7183_v51, 2  ;;  %v7192_v36 = vsel %vm514_vm0, %v4038_v43, %v4056_v37  ;;  %v3923_v49 = vsel %vm3899_vm9, %v3887_v29, %v3911_v60  ;;  %v3750_v8 = vpop.f32.mrb[29].mxu0 }
 0x41a   : > { %v7195_v11 = vsel %vm514_vm0, %v4055_v41, %v4058_v1  ;;  %v4109_v35 = vsel %vm514_vm0, %v4058_v1, %v4091_v26  ;;  %v4060_v27 = vrot.slane %v3923_v49, 7  ;;  %v4092_v48 = vrot.slane %v3923_v49, 5  ;;  %v3752_v42 = vpop.f32.mrb[30].mxu0 }
 0x41b   : > { %v4134_v20 = vrot.slane %v7195_v11, 1  ;;  %v4142_v13 = vrot.slane %v4109_v35, 1  ;;  %v4594_v14 = vrot.slane %v7195_v11, 2  ;;  %v4602_v17 = vrot.slane %v4109_v35, 2  ;;  %v3754_v18 = vpop.f32.mrb[31].mxu0 }
 0x41c   : > { %v7201_v30 = vsel %vm514_vm0, %v4056_v37, %v4060_v27  ;;  %v3889_v55 = vadd.f32 %v3871_v59, %v3748_v46  ;;  %v3890_v22 = vadd.f32 %v3875_v5, %v3750_v8  ;;  %v3892_v34 = vadd.f32 %v3871_v59, %v3752_v42 }
 0x41d   : > { %v3893_v61 = vadd.f32 %v3875_v5, %v3754_v18  ;;  %v4110_v25 = vsel %vm514_vm0, %v4060_v27, %v4092_v48  ;;  %v4136_v54 = vrot.slane %v7192_v36, 1  ;;  %v4137_v56 = vrot.slane %v7201_v30, 1 }
 0x41e   : > { %vm3901_vm10 = vcmp.ge.f32.partialorder %v3889_v55, 0.0  ;;  %v3913_v10 = vmul.f32 0.2, %v3889_v55  ;;  %vm3902_vm11 = vcmp.ge.f32.partialorder %v3890_v22, 0.0  ;;  %v3914_v39 = vmul.f32 0.2, %v3890_v22 }
 0x41f   : > { %vm3904_vm12 = vcmp.ge.f32.partialorder %v3892_v34, 0.0  ;;  %v3916_v6 = vmul.f32 0.2, %v3892_v34  ;;  %vm3905_vm15 = vcmp.ge.f32.partialorder %v3893_v61, 0.0  ;;  %v3917_v45 = vmul.f32 0.2, %v3893_v61 }
 0x420   : > { %v3925_v47 = vsel %vm3901_vm10, %v3889_v55, %v3913_v10  ;;  %v3926_v52 = vsel %vm3902_vm11, %v3890_v22, %v3914_v39  ;;  %v4138_v29 = vsel %vm541_vm1, %v4136_v54, %v4137_v56  ;;  %v4144_v59 = vrot.slane %v4110_v25, 1  ;;  %v6170_v54 = vld [vmem:[%s6497_s14 + $0x40] sm:$0xff]  }
 0x421   : > { %v4040_v5 = vrot.slane %v3925_v47, 1  ;;  %v4064_v53 = vrot.slane %v3925_v47, 7  ;;  %v4041_v57 = vrot.slane %v3926_v52, 1  ;;  %v4065_v58 = vrot.slane %v3926_v52, 7 }
 0x422   : > { %v3928_v41 = vsel %vm3904_vm12, %v3892_v34, %v3916_v6  ;;  %v3929_v40 = vsel %vm3905_vm15, %v3893_v61, %v3917_v45  ;;  %v4145_v43 = vsel %vm541_vm1, %v4137_v56, %v4144_v59  ;;  %v4596_v37 = vrot.slane %v7192_v36, 2 }
 0x423   : > { %v7210_v44 = vsel %vm514_vm0, %v4040_v5, %v4064_v53  ;;  %v7213_v60 = vsel %vm514_vm0, %v4041_v57, %v4065_v58  ;;  %v4067_v1 = vrot.slane %v3928_v41, 7  ;;  %v4094_v26 = vrot.slane %v3928_v41, 5 }
 0x424   : > { %v4069_v46 = vrot.slane %v3929_v40, 7  ;;  %v4095_v49 = vrot.slane %v3929_v40, 5  ;;  %v4176_v8 = vpack.c.bf16 %v4145_v43, %v4138_v29  ;;  %v4597_v35 = vrot.slane %v7201_v30, 2 }
 0x425   : > { %v7217_v27 = vsel %vm514_vm0, %v4064_v53, %v4067_v1  ;;  %v4604_v48 = vrot.slane %v4110_v25, 2  ;;  %v4135_v42 = vsel %vm541_vm1, %v4133_v4, %v4134_v20  ;;  %v4143_v18 = vsel %vm541_vm1, %v4134_v20, %v4142_v13 }
 0x426   : > { %v7222_v55 = vsel %vm514_vm0, %v4065_v58, %v4069_v46  ;;  %4321 = vmatprep.mubr.bf16.mxu1 %v4176_v8  ;;  %v4598_v22 = vsel %vm603_vm2, %v4596_v37, %v4597_v35  ;;  %v4175_v34 = vpack.c.bf16 %v4143_v18, %v4135_v42  ;;  %v4595_v61 = vsel %vm603_vm2, %v4593_v62, %v4594_v14  ;;  %v6183_v18 = vld [vmem:[%s6497_s14 + $0x30] sm:$0xff]  }
 0x427   : > { %v4605_v56 = vsel %vm603_vm2, %v4597_v35, %v4604_v48  ;;  %v4603_v10 = vsel %vm603_vm2, %v4594_v14, %v4602_v17  ;;  %v4113_v25 = vsel %vm514_vm0, %v4069_v46, %v4095_v49  ;;  %v4151_v4 = vrot.slane %v7213_v60, 1 }
 0x428   : > { %v4636_v39 = vpack.c.bf16 %v4605_v56, %v4598_v22  ;;  %4322 = vmatmul.mubr.bf16.vlgmr.msra.gmra.mrb[44].mxu1 %v4175_v34  ;;  %v4635_v20 = vpack.c.bf16 %v4603_v10, %v4595_v61  ;;  %v4152_v13 = vrot.slane %v7222_v55, 1  ;;  %v4159_v6 = vrot.slane %v4113_v25, 1  ;;  %v6185_v22 = vld [vmem:[%s6497_s14 + $0x38] sm:$0xff]   ;;  %v6186_v34 = vld [vmem:[%s6497_s14 + $0x80] ss:$0 sps:$4 sm:$0x33]  }
 0x429   : > { %5613 = vmatpush3.bf16.msra.mxu1 %v7187_v3  ;;  %v4611_v45 = vrot.slane %v7213_v60, 2  ;;  %v4612_v62 = vrot.slane %v7222_v55, 2  ;;  %v4619_v47 = vrot.slane %v4113_v25, 2  ;;  %v4112_v52 = vsel %vm514_vm0, %v4067_v1, %v4094_v26 }
 0x42a   : > { %4781 = vmatprep.mubr.bf16.mxu0 %v4636_v39  ;;  %v4153_v14 = vsel %vm541_vm1, %v4151_v4, %v4152_v13  ;;  %v4160_v17 = vsel %vm541_vm1, %v4152_v13, %v4159_v6  ;;  %v4148_v29 = vrot.slane %v7210_v44, 1  ;;  %v4149_v59 = vrot.slane %v7217_v27, 1  ;;  %5532 = vmatprep.subr.bf16.mxu1 %v6170_v54  ;;  %v6187_v54 = vld [vmem:[%s6497_s14 + $0x188] ss:$0 sps:$4 sm:$0x33]  }
 0x42b   : > { %4782 = vmatmul.mubr.bf16.vlgmr.msra.gmra.mrb[32].mxu0 %v4635_v20  ;;  %v4179_v5 = vpack.c.bf16 %v4160_v17, %v4153_v14  ;;  %v4613_v3 = vsel %vm603_vm2, %v4611_v45, %v4612_v62  ;;  %v4620_v53 = vsel %vm603_vm2, %v4612_v62, %v4619_v47  ;;  %v4157_v57 = vrot.slane %v4112_v52, 1 }
 0x42c   : > { %v4639_v58 = vpack.c.bf16 %v4620_v53, %v4613_v3  ;;  %v4150_v41 = vsel %vm541_vm1, %v4148_v29, %v4149_v59  ;;  %v4608_v40 = vrot.slane %v7210_v44, 2  ;;  %v4609_v43 = vrot.slane %v7217_v27, 2 }
 0x42d   : > { %4329 = vmatprep.mubr.bf16.mxu1 %v4179_v5  ;;  %v4158_v37 = vsel %vm541_vm1, %v4149_v59, %v4157_v57  ;;  %v4617_v1 = vrot.slane %v4112_v52, 2  ;;  %v4116_v26 = vpack.c.bf16 %v7201_v30, %v7192_v36  ;;  %v4115_v46 = vpack.c.bf16 %v7195_v11, %v7183_v51  ;;  %v6171_v51 = vld [vmem:[%s6497_s14] sm:$0xff]   ;;  %v6172_v11 = vld [vmem:[%s6497_s14 + $0x48] sm:$0xff]  }
 0x42e   : > { %4789 = vmatprep.mubr.bf16.mxu0 %v4639_v58  ;;  %v4178_v49 = vpack.c.bf16 %v4158_v37, %v4150_v41  ;;  %v4610_v8 = vsel %vm603_vm2, %v4608_v40, %v4609_v43  ;;  %v4119_v35 = vpack.c.bf16 %v7222_v55, %v7213_v60  ;;  %v4118_v48 = vpack.c.bf16 %v7217_v27, %v7210_v44  ;;  %v6173_v30 = vld [vmem:[%s6497_s14 + $0x8] sm:$0xff]   ;;  %v6177_v44 = vld [vmem:[%s6497_s14 + $0x18] sm:$0xff]   ;;  %v6182_v27 = vld [vmem:[%s6497_s14 + $0x70] sm:$0xff]  }
 0x42f   : > { %v4618_v42 = vsel %vm603_vm2, %v4609_v43, %v4617_v1  ;;  %v6181_v60 = vld [vmem:[%s6497_s14 + $0x28] sm:$0xff]   ;;  %v6184_v55 = vld [vmem:[%s6497_s14 + $0x78] sm:$0xff]   ;;  %v4493_v61 = vsel %vm2627_vm13, %v6186_v34, 0  ;;  %v4747_v56 = vsel %vm2627_vm13, %v6187_v54, 0 }
 0x430   : > { %4330 = vmatmul.mubr.bf16.gmra.mrb[48].mxu1 %v4178_v49  ;;  %v4638_v36 = vpack.c.bf16 %v4618_v42, %v4610_v8 }
 0x431   : > { %5614 = vmatprep.mubr.msk.bf16.mxu1 %vm2620_vm14, %v4177_v28  ;;  %v6176_v28 = vld [vmem:[%s6497_s14 + $0x58] sm:$0xff]  }
 0x433   : > { %4790 = vmatmul.mubr.bf16.gmra.mrb[36].mxu0 %v4638_v36  ;;  %v5400_v36 = vld [vmem:[%s475_s24] ss:$0 sm:$0xff]  ;;  %s6194_s24 = scalar_lea.vmem %s6193_s23, 1024 }
 0x438   : > { %5615 = vmatmul.mubr.msk.bf16.vlgmr.msra.gmra.mrb[52].mxu1 %vm2620_vm14, %v4180_v12  ;;  %v6180_v12 = vld [vmem:[%s6497_s14 + $0x68] sm:$0xff]   ;;  %s433_s14 = sand.u32 1, %s6242_s10  }
 0x439   : > { %5533 = vmatpush3.bf16.msra.mxu1 %v6171_v51  ;;  %4527 = vmatprep.mubr.bf16.mxu1 %v4116_v26  ;;  %s5038_s22 = sshll.u32 %s433_s14, 5  ;;  %s7314_s16 = scalar_lea.sflag [#allocation3], %s433_s14 }
 0x43a   : > { %5534 = vmatprep.subr.bf16.mxu1 %v6172_v11  ;;  %s435_s25 = scalar_lea.vmem [#allocation2], %s5038_s22 }
 0x43b   : > { %s4879_s27 = sshll.u32 %s435_s25, 4  ;;  %s7307_s27 = int_to_ptr.vmem [resolvable:$true] %s4879_s27 }
 0x43c   : > { %s6188_s13 = scalar_lea.vmem %s7307_s27, 512  ;;  %p6195_p0 = scmp.lt.s32.totalorder %s7307_s27, %s6193_s23 }
 0x43d   : > { %5535 = vmatpush3.bf16.msra.mxu1 %v6173_v30  ;;  %p6189_p11 = scmp.ne.s32.totalorder %s7307_s27, %s6188_s13  ;;  %p6196_p1 = scmp.lt.s32.totalorder %s6194_s24, %s6188_s13 }
 0x43e   : > { %5536 = vmatprep.subr.bf16.mxu1 %v6174_v0 }
 0x43f   : > { %p6190_p12 = pnand %p6189_p11, %p6344_p5  ;;  %p6197_p2 = por %p6196_p1, %p6195_p0 }
 0x441   : > { %5537 = vmatpush3.bf16.msra.mxu1 %v6175_v50  ;;  %p6191_p13 = pneg %p6190_p12 }
 0x442   : > { %5538 = vmatprep.subr.bf16.mxu1 %v6176_v28 }
 0x443   : > { %p6198_p3 = pnand %p6197_p2, %p6191_p13 }
 0x445   : > { %5539 = vmatpush3.bf16.msra.mxu1 %v6177_v44 }
 0x446   : > { %5540 = vmatprep.subr.bf16.mxu1 %v6178_v19 }
 0x449   : > { %5541 = vmatpush3.bf16.msra.mxu1 %v6179_v21 }
 0x44a   : > { %5542 = vmatprep.subr.bf16.mxu1 %v6180_v12 }
 0x44d   : > { %5543 = vmatpush3.bf16.msra.mxu1 %v6181_v60 }
 0x44e   : > { %5544 = vmatprep.subr.bf16.mxu1 %v6182_v27 }
 0x451   : > { %5545 = vmatpush3.bf16.msra.mxu1 %v6183_v18 }
 0x452   : > { %5546 = vmatprep.subr.bf16.mxu1 %v6184_v55 }
 0x455   : > { %5547 = vmatpush3.bf16.msra.mxu1 %v6185_v22 }
 0x456   : > { %5746 = vmatprep.subr.msk.bf16.mxu1 %vm2627_vm13, %v6186_v34 }
 0x458   : > { %4528 = vmatmul.mubr.bf16.vlgmr.msra.gmra.mrb[56].mxu1 %v4115_v46 }
 0x459   : > { %4535 = vmatprep.mubr.bf16.mxu1 %v4119_v35  ;;  %5619 = vmatpush3.bf16.msra.mxu1 %v4493_v61 }
 0x45a   : > { %5747 = vmatprep.subr.msk.bf16.mxu1 %vm2627_vm13, %v6187_v54 }
 0x460   : > { %4536 = vmatmul.mubr.bf16.gmra.mrb[60].mxu1 %v4118_v48 }
 0x461   : > { %5620 = vmatprep.mubr.msk.bf16.mxu1 %vm2620_vm14, %v4117_v24 }
 0x468   : > { %5621 = vmatmul.mubr.msk.bf16.vlgmr.msra.gmra.mrb[52].mxu1 %vm2620_vm14, %v4120_v33 }
 0x469   : > { %5625 = vmatpush3.bf16.msra.mxu1 %v4747_v56  ;;  %5626 = vmatprep.mubr.msk.bf16.mxu1 %vm2620_vm14, %v4637_v2 }
 0x474   : > { %5627 = vmatmul.mubr.msk.bf16.vlgmr.msra.gmra.mrb[52].mxu1 %vm2620_vm14, %v4640_v16 }
 0x4fb   : > { %v5517_v63 = vpop.f32.mrb[44].mxu1 }
 0x4fc   : > { %v5518_v15 = vpop.f32.mrb[45].mxu1 }
 0x4fd   : > { %v5519_v24 = vadd.f32 %v5518_v15, %v5517_v63  ;;  %v5520_v10 = vpop.f32.mrb[46].mxu1 }
 0x4fe   : > { %v5579_v25 = vpop.f32.mrb[32].mxu0  ;;  %v5521_v4 = vpop.f32.mrb[47].mxu1 }
 0x4ff   : > { %v5580_v7 = vpop.f32.mrb[33].mxu0  ;;  %v5522_v9 = vadd.f32 %v5521_v4, %v5520_v10 }
 0x500   : > { %v5581_v33 = vadd.f32 %v5580_v7, %v5579_v25  ;;  %v5582_v39 = vpop.f32.mrb[34].mxu0 }
 0x501   : > { %v5583_v20 = vpop.f32.mrb[35].mxu0 }
 0x502   : > { %v5584_v13 = vadd.f32 %v5583_v20, %v5582_v39 }
 0x503   : > { %v5523_v31 = vpop.f32.mrb[48].mxu1 }
 0x504   : > { %v5524_v32 = vpop.f32.mrb[49].mxu1 }
 0x505   : > { %v5525_v2 = vadd.f32 %v5524_v32, %v5523_v31  ;;  %v5526_v6 = vpop.f32.mrb[50].mxu1 }
 0x506   : > { %v5585_v45 = vpop.f32.mrb[36].mxu0  ;;  %v5527_v23 = vpop.f32.mrb[51].mxu1 }
 0x507   : > { %v5586_v38 = vpop.f32.mrb[37].mxu0  ;;  %v5528_v16 = vadd.f32 %v5527_v23, %v5526_v6 }
 0x508   : > { %v5587_v62 = vadd.f32 %v5586_v38, %v5585_v45  ;;  %v5588_v47 = vpop.f32.mrb[38].mxu0 }
 0x509   : > { %v5589_v52 = vpop.f32.mrb[39].mxu0 }
 0x50a   : > { %v5590_v14 = vadd.f32 %v5589_v52, %v5588_v47 }
 0x52b   : > { %v5548_v17 = vpop.f32.mrb[56].mxu1 }
 0x52c   : > { %v5549_v29 = vpop.f32.mrb[57].mxu1 }
 0x52d   : > { %v5550_v59 = vadd.f32 %v5549_v29, %v5548_v17  ;;  %v5551_v5 = vpop.f32.mrb[58].mxu1 }
 0x52e   : > { %v5552_v3 = vpop.f32.mrb[59].mxu1 }
 0x52f   : > { %v5645_v53 = vadd.f32 %v5550_v59, %v5519_v24  ;;  %v5553_v57 = vadd.f32 %v5552_v3, %v5551_v5 }
 0x531   : > { %v5651_v58 = vadd.f32 %v5553_v57, %v5522_v9  ;;  %v5646_v41 = vadd.f32 %v5645_v53, %v5581_v33 }
 0x533   : > { %v5554_v40 = vpop.f32.mrb[60].mxu1  ;;  %v5652_v43 = vadd.f32 %v5651_v58, %v5584_v13 }
 0x534   : > { %v5555_v37 = vpop.f32.mrb[61].mxu1 }
 0x535   : > { %v5556_v1 = vadd.f32 %v5555_v37, %v5554_v40  ;;  %v5557_v26 = vpop.f32.mrb[62].mxu1 }
 0x536   : > { %v5558_v46 = vpop.f32.mrb[63].mxu1 }
 0x537   : > { %v5642_v49 = vadd.f32 %v5556_v1, %v5525_v2  ;;  %v5559_v8 = vadd.f32 %v5558_v46, %v5557_v26 }
 0x539   : > { %v5648_v35 = vadd.f32 %v5559_v8, %v5528_v16  ;;  %v5643_v48 = vadd.f32 %v5642_v49, %v5587_v62 }
 0x53b   : > { %v5649_v42 = vadd.f32 %v5648_v35, %v5590_v14 }
 0x547   : > { %v5628_v51 = vpop.f32.mrb[52].mxu1 }
 0x548   : > { %v5644_v11 = vadd.f32 %v5643_v48, %v5628_v51  ;;  %v4832_v30 = vpop.f32.mrb[53].mxu1 }
 0x549   : > { %v5647_v0 = vadd.f32 %v5646_v41, %v4832_v30  ;;  %v5629_v50 = vpop.f32.mrb[54].mxu1 }
 0x54a   : > { %v4859_v28 = vadd.f32 %v5644_v11, %v5400_v36  ;;  %v5650_v44 = vadd.f32 %v5649_v42, %v5629_v50  ;;  %v4835_v19 = vpop.f32.mrb[55].mxu1 }
 0x54b   : > { %v4857_v21 = vadd.f32 %v5647_v0, %v5400_v36  ;;  %v5653_v12 = vadd.f32 %v5652_v43, %v4835_v19 }
 0x54c   : > { %4863 = vst [vmem:[%s435_s25 + $0x10] sm:$0xff] %v4859_v28  ;;  %v4860_v60 = vadd.f32 %v5650_v44, %v5400_v36 }
 0x54d   : > { %4861 = vst [vmem:[%s435_s25] sm:$0xff] %v4857_v21  ;;  %v4858_v27 = vadd.f32 %v5653_v12, %v5400_v36 }
 0x54e   : > { %4864 = vst [vmem:[%s435_s25 + $0x18] sm:$0xff] %v4860_v60 }
 0x54f   : > { %4862 = vst [vmem:[%s435_s25 + $0x8] sm:$0xff] %v4858_v27 }
 0x550   : > { %6201 = shalt.err (!%p6198_p3)
}
 0x551   : > { %s6202_s14 = scalar_lea.hbm %s7312_s29, 512  ;;  %s6206_s28 = scalar_lea.hbm %s7364_s9, 1024 }
 0x552   : > { %p6203_p4 = scmp.ne.s32.totalorder %s7312_s29, %s6202_s14  ;;  %p6207_p9 = scmp.lt.u32.totalorder %s7312_s29, %s7364_s9 }
 0x553   : > { %p6208_p10 = scmp.lt.u32.totalorder %s6206_s28, %s6202_s14  ;;  %p6210_p12 = scmp.lt.u32.totalorder %s6202_s14, %s7312_s29 }
 0x554   : > { %p6204_p7 = pnand %p6203_p4, %p6344_p5 }
 0x555   : > { %p6209_p11 = por %p6208_p10, %p6207_p9 }
 0x556   : > { %p6205_p8 = pneg %p6204_p7 }
 0x557   : > { %p6211_p13 = por %p6210_p12, %p6209_p11 }
 0x559   : > { %p6212_p0 = pnand %p6211_p13, %p6205_p8 }
 0x55b   : > { %6215 = shalt.err (!%p6212_p0)
}
 0x55c   : > { %s6254_s13 = smov 128   ;;  %s6255_s17 = smov 8  }
 0x55d   : > { %5753 = dma.vmem_to_hbm [thread:$0]  (%p6344_p5), %s7307_s27, 512, %s7312_s29, %s7314_s16, %s6254_s13, %s6254_s13, %s6255_s17  }
 0x55e PF: > { %p5759_p1 = scmp.ge.s32.totalorder %s6250_s12, 2  ;;  %s4894_s23 = sand.u32 1, %s6238_s30  }
 0x55f   : > { %s4895_s24 = scalar_lea.sflag [#allocation3], %s4894_s23 }
 0x560   : > { %p5756_p2 = pnand %p5759_p1, %p6348_p6 }
 0x562   : > { %6233 = dma.done.wait (!%p5756_p2), %s4895_s24, 512  }
 0x563   : > { %6235 = vsyncadd (!%p5756_p2), %s4895_s24, 4294966784  ;;  %p19_p3 = scmp.ge.s32.totalorder %s6331_s15, 4   ;;  %s7367_s30 = smov %s6242_s10 }
 0x564   : > { %s7368_s10 = smov %s6246_s11  ;;  %s7369_s11 = smov %s6342_s18 }
 0x565   : > { %s7370_s12 = smov %s6331_s15  ;;  %21 = sbr.rel (!%p19_p3) target bundleno = 3 (0x3), region = 115 }
 0x56c   :  { %4900 = vsyncpa [#allocation3], 1 }
 0x56d   :  { %4902 = vsyncpa [#allocation3 + $0x1], 1 }

</bundles_post_ra>
